<compile_context>
chip_gen: v7x
topology: tpu7x:2x2x1
jax: 0.10.0
libtpu: 0.0.40
codegen_flags: <defaults>
</compile_context>

<pallas_src>
import functools

import jax
import jax.numpy as jnp
from jax.experimental import pallas as pl
from jax.experimental.pallas import tpu as pltpu

FEAT = 52            # input channels  (features_size)
WIN = 100            # sequence length (window_size)
C1 = FEAT * 4        # 208 conv1 output channels
C2 = FEAT * 16       # 832 conv2 output channels
HID = 256
OUT = 29
OUT_PAD = 128        # lane-padded fc2 output width
K = 5                # kernel size == stride for both convs


def _round_up(n, m):
    return (n + m - 1) // m * m


def _conv1_time_chunk(bt):
    """Pooled-time steps per conv1 row-chunk (divisor of 10, ~<=512 rows/chunk)."""
    for tc in (10, 5, 2, 1):
        if tc * bt <= 512:
            return tc
    return 1


def cnn1dtep_kernel(x1_ref, wd1_ref, b1_ref, w2_ref, b2_ref,
                    wfc1_ref, bfc1_ref, wfc2_ref, bfc2_ref,
                    out_ref, p1_ref):
    bt = out_ref.shape[0]                       # batch tile

    # ---- conv1 (block-diagonal dense bf16 matmul) + bias + ReLU + MaxPool(2,2)
    # Computed in row chunks and written into the p1 VMEM scratch to bound live
    # ranges.  p1 row = pooled_time * bt + b, lane = conv1 channel.
    wd1 = wd1_ref[...]                          # (260, 208) bf16, stays bf16
    b1 = b1_ref[...]                            # (1, 208)  f32
    tc = _conv1_time_chunk(bt)
    rc_rows = tc * bt
    for rc in range(10 // tc):
        r0 = rc * rc_rows
        ya = jnp.dot(x1_ref[0, 0, pl.ds(r0, rc_rows), :], wd1,
                     preferred_element_type=jnp.float32)
        yb = jnp.dot(x1_ref[1, 0, pl.ds(r0, rc_rows), :], wd1,
                     preferred_element_type=jnp.float32)
        # max(relu(ya+b1), relu(yb+b1)) == relu(max(ya, yb) + b1)
        p1_ref[pl.ds(r0, rc_rows), :] = jnp.maximum(jnp.maximum(ya, yb) + b1, 0.0)

    # ---- conv2 (grouped, per-lane taps) + ReLU + MaxPool(2,2) + fc1 ----------
    # fc1 is fused as 4 accumulated (bt,208)x(208,256) bf16 dots (no lane concat).
    w2 = w2_ref[...]                            # (20, 208) f32: row j*5+k, lane = group
    b2 = b2_ref[...]                            # (4, 208)  f32
    hacc = None
    for j in range(4):                          # 4 conv2 output channels per group
        acc0 = None                             # conv2 output position t2 = 0
        acc1 = None                             # conv2 output position t2 = 1
        for k in range(K):
            wrow = w2[K * j + k:K * j + k + 1, :]      # (1, 208) implicit broadcast
            t0 = p1_ref[pl.ds(k * bt, bt), :] * wrow
            t1 = p1_ref[pl.ds((K + k) * bt, bt), :] * wrow
            acc0 = t0 if acc0 is None else acc0 + t0
            acc1 = t1 if acc1 is None else acc1 + t1
        # max(relu(a0+b2), relu(a1+b2)) == relu(max(a0, a1) + b2)
        zj = jnp.maximum(jnp.maximum(acc0, acc1) + b2[j:j + 1, :], 0.0)
        dj = jnp.dot(zj.astype(jnp.bfloat16), wfc1_ref[j],
                     preferred_element_type=jnp.float32)
        hacc = dj if hacc is None else hacc + dj

    h = jnp.maximum(hacc + bfc1_ref[...], 0.0)  # (bt, 256) f32

    # ---- fc2 (lane-padded to 128 outputs for unmasked stores) ----------------
    out_ref[...] = (jnp.dot(h.astype(jnp.bfloat16), wfc2_ref[...],
                            preferred_element_type=jnp.float32)
                    + bfc2_ref[...])


@functools.partial(jax.jit, static_argnames=("batch_tile",))
def cnn1dtep_forward(x, params, *, batch_tile=256):
    B = x.shape[0]
    Bt = _round_up(min(batch_tile, _round_up(B, 8)), 8)   # sublane-aligned tile
    # v7x megacore: make sure the ("parallel",) batch grid has >= 2 steps when
    # the batch allows it, so both TensorCores get work.
    if B > 8 and _round_up(B, Bt) // Bt < 2:
        Bt = _round_up((B + 1) // 2, 8)
    Bp = _round_up(B, Bt)
    nI = Bp // Bt

    # ------------- plain-JAX glue: layout / parameter packing only -------------
    # im2col operand in bf16 (halves the dominant HBM stream): (2, nI, 10*Bt, 260)
    # axis0 = pool1 partner, inner rows ordered pooled_time*Bt + b, lanes = (c, k).
    x = x.astype(jnp.bfloat16)
    if Bp != B:
        x = jnp.pad(x, ((0, Bp - B), (0, 0), (0, 0)))
    x1 = (x.reshape(nI, Bt, FEAT, 10, 2, K)
            .transpose(4, 0, 3, 1, 2, 5)
            .reshape(2, nI, 10 * Bt, FEAT * K))

    # conv1 block-diagonal dense weight (bf16): wd1[c*5+k, c1] = W1[c1,0,k] * (c == c1//4)
    w1k = params["w1"][:, 0, :]                                           # (208, 5)
    gmask = (jnp.arange(FEAT)[:, None]
             == (jnp.arange(C1) // 4)[None, :]).astype(jnp.float32)        # (52, 208)
    wd1 = (gmask[:, None, :] * jnp.transpose(w1k)[None, :, :]
           ).reshape(FEAT * K, C1).astype(jnp.bfloat16)
    b1 = params["b1"].reshape(1, C1)
    # conv2 per-lane weights: row j*5+k, lane g  ->  W2[g*4+j, 0, k]
    w2 = params["w2"][:, 0, :].reshape(C1, 4, K).transpose(1, 2, 0).reshape(4 * K, C1)
    b2 = params["b2"].reshape(C1, 4).T                                     # (4, 208)
    # fc1 weight as (4, 208, 256) bf16: wfc1[j, g, h] = W_fc1[h, g*4 + j]
    wfc1 = (params["wfc1"].T.reshape(C1, 4, HID).transpose(1, 0, 2)
            .astype(jnp.bfloat16))
    bfc1 = params["bfc1"].reshape(1, HID)
    # fc2 lane-padded to 128 output columns, bf16
    wfc2 = (jnp.zeros((HID, OUT_PAD), jnp.float32)
            .at[:, :OUT].set(params["wfc2"].T).astype(jnp.bfloat16))
    bfc2 = jnp.zeros((1, OUT_PAD), jnp.float32).at[:, :OUT].set(params["bfc2"][None, :])

    args = (x1, wd1, b1, w2, b2, wfc1, bfc1, wfc2, bfc2)

    def _resident(a):
        nd = a.ndim
        return pl.BlockSpec(a.shape, lambda i, nd=nd: (0,) * nd)   # same block every step

    in_specs = ([pl.BlockSpec((2, 1, 10 * Bt, FEAT * K), lambda i: (0, i, 0, 0))]
                + [_resident(a) for a in args[1:]])

    out = pl.pallas_call(
        cnn1dtep_kernel,
        out_shape=jax.ShapeDtypeStruct((Bp, OUT_PAD), jnp.float32),
        grid=(nI,),
        in_specs=in_specs,
        out_specs=pl.BlockSpec((Bt, OUT_PAD), lambda i: (i, 0)),
        scratch_shapes=[pltpu.VMEM((10 * Bt, C1), jnp.float32)],   # p1 (conv1 out, pooled)
        compiler_params=pltpu.CompilerParams(
            dimension_semantics=("parallel",),                     # megacore on v7x
            vmem_limit_bytes=32 * 1024 * 1024,                     # ~2x actual need @ Bt=256
            allow_input_fusion=[True] + [False] * (len(args) - 1), # fuse the im2col transpose
        ),
    )(*args)
    return out[:B, :OUT]


def make_params(key):
    ks = jax.random.split(key, 8)
    return dict(
        w1=jax.random.normal(ks[0], (C1, 1, K), jnp.float32) * 0.2,
        b1=jax.random.normal(ks[1], (C1,), jnp.float32) * 0.1,
        w2=jax.random.normal(ks[2], (C2, 1, K), jnp.float32) * 0.2,
        b2=jax.random.normal(ks[3], (C2,), jnp.float32) * 0.1,
        wfc1=jax.random.normal(ks[4], (HID, C2), jnp.float32) * 0.05,   # torch (out, in)
        bfc1=jax.random.normal(ks[5], (HID,), jnp.float32) * 0.1,
        wfc2=jax.random.normal(ks[6], (OUT, HID), jnp.float32) * 0.05,
        bfc2=jax.random.normal(ks[7], (OUT,), jnp.float32) * 0.1,
    )


def reference_forward(x, params):
    """Pure-JAX reference with exact PyTorch grouped-conv semantics.

    Quantization points match the kernel's bf16 MXU operands (x, w1, wfc1, wfc2
    and the z / h matmul LHS) so the comparison isolates accumulation-order
    differences only; accumulation is f32 on both sides.
    """
    def q(a):
        return a.astype(jnp.bfloat16).astype(jnp.float32)

    B = x.shape[0]
    x = q(x)
    w1, b1 = q(params["w1"]), params["b1"]
    w2, b2 = params["w2"], params["b2"]
    # conv1: groups=52, each group 1 in / 4 out channels, kernel 5, stride 5
    xg = x[:, jnp.arange(C1) // 4, :]                               # (B, 208, 100)
    y1 = b1[None, :, None] + sum(
        w1[None, :, 0, k, None] * xg[:, :, k::K][:, :, :20] for k in range(K))
    p1 = jnp.maximum(y1, 0.0).reshape(B, C1, 10, 2).max(-1)         # (B, 208, 10)
    # conv2: groups=208
    xg2 = p1[:, jnp.arange(C2) // 4, :]                             # (B, 832, 10)
    y2 = b2[None, :, None] + sum(
        w2[None, :, 0, k, None] * xg2[:, :, k::K][:, :, :2] for k in range(K))
    p2 = jnp.maximum(y2, 0.0).reshape(B, C2, 1, 2).max(-1).reshape(B, C2)
    h = jnp.maximum(q(p2) @ q(params["wfc1"]).T + params["bfc1"], 0.0)
    return q(h) @ q(params["wfc2"]).T + params["bfc2"]


if __name__ == "__main__":
    key = jax.random.PRNGKey(0)
    kx, kp = jax.random.split(key)
    # 52 channels x 100 timesteps are fixed by the architecture (fc1 expects 832);
    # batch 30 with batch_tile=8 exercises the batch grid (4 tiles) + tail padding.
    B = 30
    x = jax.random.normal(kx, (B, FEAT, WIN), jnp.float32)
    params = make_params(kp)

    out = jax.block_until_ready(cnn1dtep_forward(x, params, batch_tile=8))
    assert out.shape == (B, OUT), out.shape

    ref = jax.block_until_ready(reference_forward(x, params))
    err = float(jnp.max(jnp.abs(out - ref)))
    assert err < 5e-3, f"kernel/reference mismatch: max abs err = {err}"
    print("KERNEL_OK")
</pallas_src>

<mosaic_0001>
module attributes {stable_mosaic.version = 11 : i64} {
  func.func @cnn1dtep_kernel(%arg0: i32, %arg1: memref<2x1x80x260xbf16, #tpu.memory_space<vmem>>, %arg2: memref<260x208xbf16, #tpu.memory_space<vmem>>, %arg3: memref<1x208xf32, #tpu.memory_space<vmem>>, %arg4: memref<20x208xf32, #tpu.memory_space<vmem>>, %arg5: memref<4x208xf32, #tpu.memory_space<vmem>>, %arg6: memref<4x208x256xbf16, #tpu.memory_space<vmem>>, %arg7: memref<1x256xf32, #tpu.memory_space<vmem>>, %arg8: memref<256x128xbf16, #tpu.memory_space<vmem>>, %arg9: memref<1x128xf32, #tpu.memory_space<vmem>>, %arg10: memref<8x128xf32, #tpu.memory_space<vmem>>, %arg11: memref<80x208xf32, #tpu.memory_space<vmem>>) attributes {dimension_semantics = [#tpu.dimension_semantics<parallel>], iteration_bounds = array<i64: 4>, scalar_prefetch = 0 : i64, scratch_operands = 1 : i64, tpu.core_type = #tpu.core_type<tc>, window_params = [{transform_indices = @transform_0, window_bounds = array<i64: 2, 1, 80, 260>}, {pipeline_mode = #tpu.pipeline_mode<synchronous>, transform_indices = @transform_1, window_bounds = array<i64: 260, 208>}, {pipeline_mode = #tpu.pipeline_mode<synchronous>, transform_indices = @transform_2, window_bounds = array<i64: 1, 208>}, {pipeline_mode = #tpu.pipeline_mode<synchronous>, transform_indices = @transform_3, window_bounds = array<i64: 20, 208>}, {pipeline_mode = #tpu.pipeline_mode<synchronous>, transform_indices = @transform_4, window_bounds = array<i64: 4, 208>}, {pipeline_mode = #tpu.pipeline_mode<synchronous>, transform_indices = @transform_5, window_bounds = array<i64: 4, 208, 256>}, {pipeline_mode = #tpu.pipeline_mode<synchronous>, transform_indices = @transform_6, window_bounds = array<i64: 1, 256>}, {pipeline_mode = #tpu.pipeline_mode<synchronous>, transform_indices = @transform_7, window_bounds = array<i64: 256, 128>}, {pipeline_mode = #tpu.pipeline_mode<synchronous>, transform_indices = @transform_8, window_bounds = array<i64: 1, 128>}, {transform_indices = @transform_9, window_bounds = array<i64: 8, 128>}]} {
    %c0 = arith.constant 0 : index
    %c0_0 = arith.constant 0 : index
    %0 = vector.load %arg2[%c0, %c0_0] : memref<260x208xbf16, #tpu.memory_space<vmem>>, vector<260x208xbf16>
    %c0_1 = arith.constant 0 : index
    %c0_2 = arith.constant 0 : index
    %1 = vector.load %arg3[%c0_1, %c0_2] : memref<1x208xf32, #tpu.memory_space<vmem>>, vector<1x208xf32>
    %c0_3 = arith.constant 0 : index
    %c0_4 = arith.constant 0 : index
    %c0_5 = arith.constant 0 : index
    %c0_6 = arith.constant 0 : index
    %2 = vector.load %arg1[%c0_3, %c0_4, %c0_5, %c0_6] : memref<2x1x80x260xbf16, #tpu.memory_space<vmem>>, vector<1x1x80x260xbf16>
    %3 = vector.shape_cast %2 : vector<1x1x80x260xbf16> to vector<80x260xbf16>
    %cst = arith.constant dense<0.000000e+00> : vector<80x208xf32>
    %4 = tpu.matmul %3, %0, %cst {dimension_numbers = #tpu.dot_dimension_numbers<[1], [0], [0], [1], [0, 0, 1, 1], [], []>} : vector<80x260xbf16>, vector<260x208xbf16>, vector<80x208xf32> -> vector<80x208xf32>
    %c1 = arith.constant 1 : index
    %c0_7 = arith.constant 0 : index
    %c0_8 = arith.constant 0 : index
    %c0_9 = arith.constant 0 : index
    %5 = vector.load %arg1[%c1, %c0_7, %c0_8, %c0_9] : memref<2x1x80x260xbf16, #tpu.memory_space<vmem>>, vector<1x1x80x260xbf16>
    %6 = vector.shape_cast %5 : vector<1x1x80x260xbf16> to vector<80x260xbf16>
    %cst_10 = arith.constant dense<0.000000e+00> : vector<80x208xf32>
    %7 = tpu.matmul %6, %0, %cst_10 {dimension_numbers = #tpu.dot_dimension_numbers<[1], [0], [0], [1], [0, 0, 1, 1], [], []>} : vector<80x260xbf16>, vector<260x208xbf16>, vector<80x208xf32> -> vector<80x208xf32>
    %8 = arith.maximumf %4, %7 : vector<80x208xf32>
    %9 = vector.broadcast %1 : vector<1x208xf32> to vector<80x208xf32>
    %10 = arith.addf %8, %9 : vector<80x208xf32>
    %cst_11 = arith.constant 0.000000e+00 : f32
    %11 = vector.broadcast %cst_11 : f32 to vector<80x208xf32>
    %12 = arith.maximumf %10, %11 : vector<80x208xf32>
    %c0_12 = arith.constant 0 : index
    %c0_13 = arith.constant 0 : index
    %13 = vector.load %arg11[%c0_12, %c0_13] : memref<80x208xf32, #tpu.memory_space<vmem>>, vector<80x208xf32>
    tpu.vector_store %arg11[%c0_12, %c0_13], %12 {strides = array<i32>} : memref<80x208xf32, #tpu.memory_space<vmem>>, vector<80x208xf32>,
    %c0_14 = arith.constant 0 : index
    %c0_15 = arith.constant 0 : index
    %14 = vector.load %arg4[%c0_14, %c0_15] : memref<20x208xf32, #tpu.memory_space<vmem>>, vector<20x208xf32>
    %c0_16 = arith.constant 0 : index
    %c0_17 = arith.constant 0 : index
    %15 = vector.load %arg5[%c0_16, %c0_17] : memref<4x208xf32, #tpu.memory_space<vmem>>, vector<4x208xf32>
    %16 = vector.extract_strided_slice %14 {offsets = [0, 0], sizes = [1, 208], strides = [1, 1]} : vector<20x208xf32> to vector<1x208xf32>
    %c0_18 = arith.constant 0 : index
    %c0_19 = arith.constant 0 : index
    %17 = vector.load %arg11[%c0_18, %c0_19] : memref<80x208xf32, #tpu.memory_space<vmem>>, vector<8x208xf32>
    %18 = vector.broadcast %16 : vector<1x208xf32> to vector<8x208xf32>
    %19 = arith.mulf %17, %18 : vector<8x208xf32>
    %c40 = arith.constant 40 : index
    %c0_20 = arith.constant 0 : index
    %20 = vector.load %arg11[%c40, %c0_20] : memref<80x208xf32, #tpu.memory_space<vmem>>, vector<8x208xf32>
    %21 = vector.broadcast %16 : vector<1x208xf32> to vector<8x208xf32>
    %22 = arith.mulf %20, %21 : vector<8x208xf32>
    %23 = vector.extract_strided_slice %14 {offsets = [1, 0], sizes = [1, 208], strides = [1, 1]} : vector<20x208xf32> to vector<1x208xf32>
    %c8 = arith.constant 8 : index
    %c0_21 = arith.constant 0 : index
    %24 = vector.load %arg11[%c8, %c0_21] : memref<80x208xf32, #tpu.memory_space<vmem>>, vector<8x208xf32>
    %25 = vector.broadcast %23 : vector<1x208xf32> to vector<8x208xf32>
    %26 = arith.mulf %24, %25 : vector<8x208xf32>
    %c48 = arith.constant 48 : index
    %c0_22 = arith.constant 0 : index
    %27 = vector.load %arg11[%c48, %c0_22] : memref<80x208xf32, #tpu.memory_space<vmem>>, vector<8x208xf32>
    %28 = vector.broadcast %23 : vector<1x208xf32> to vector<8x208xf32>
    %29 = arith.mulf %27, %28 : vector<8x208xf32>
    %30 = arith.addf %19, %26 : vector<8x208xf32>
    %31 = arith.addf %22, %29 : vector<8x208xf32>
    %32 = vector.extract_strided_slice %14 {offsets = [2, 0], sizes = [1, 208], strides = [1, 1]} : vector<20x208xf32> to vector<1x208xf32>
    %c16 = arith.constant 16 : index
    %c0_23 = arith.constant 0 : index
    %33 = vector.load %arg11[%c16, %c0_23] : memref<80x208xf32, #tpu.memory_space<vmem>>, vector<8x208xf32>
    %34 = vector.broadcast %32 : vector<1x208xf32> to vector<8x208xf32>
    %35 = arith.mulf %33, %34 : vector<8x208xf32>
    %c56 = arith.constant 56 : index
    %c0_24 = arith.constant 0 : index
    %36 = vector.load %arg11[%c56, %c0_24] : memref<80x208xf32, #tpu.memory_space<vmem>>, vector<8x208xf32>
    %37 = vector.broadcast %32 : vector<1x208xf32> to vector<8x208xf32>
    %38 = arith.mulf %36, %37 : vector<8x208xf32>
    %39 = arith.addf %30, %35 : vector<8x208xf32>
    %40 = arith.addf %31, %38 : vector<8x208xf32>
    %41 = vector.extract_strided_slice %14 {offsets = [3, 0], sizes = [1, 208], strides = [1, 1]} : vector<20x208xf32> to vector<1x208xf32>
    %c24 = arith.constant 24 : index
    %c0_25 = arith.constant 0 : index
    %42 = vector.load %arg11[%c24, %c0_25] : memref<80x208xf32, #tpu.memory_space<vmem>>, vector<8x208xf32>
    %43 = vector.broadcast %41 : vector<1x208xf32> to vector<8x208xf32>
    %44 = arith.mulf %42, %43 : vector<8x208xf32>
    %c64 = arith.constant 64 : index
    %c0_26 = arith.constant 0 : index
    %45 = vector.load %arg11[%c64, %c0_26] : memref<80x208xf32, #tpu.memory_space<vmem>>, vector<8x208xf32>
    %46 = vector.broadcast %41 : vector<1x208xf32> to vector<8x208xf32>
    %47 = arith.mulf %45, %46 : vector<8x208xf32>
    %48 = arith.addf %39, %44 : vector<8x208xf32>
    %49 = arith.addf %40, %47 : vector<8x208xf32>
    %50 = vector.extract_strided_slice %14 {offsets = [4, 0], sizes = [1, 208], strides = [1, 1]} : vector<20x208xf32> to vector<1x208xf32>
    %c32 = arith.constant 32 : index
    %c0_27 = arith.constant 0 : index
    %51 = vector.load %arg11[%c32, %c0_27] : memref<80x208xf32, #tpu.memory_space<vmem>>, vector<8x208xf32>
    %52 = vector.broadcast %50 : vector<1x208xf32> to vector<8x208xf32>
    %53 = arith.mulf %51, %52 : vector<8x208xf32>
    %c72 = arith.constant 72 : index
    %c0_28 = arith.constant 0 : index
    %54 = vector.load %arg11[%c72, %c0_28] : memref<80x208xf32, #tpu.memory_space<vmem>>, vector<8x208xf32>
    %55 = vector.broadcast %50 : vector<1x208xf32> to vector<8x208xf32>
    %56 = arith.mulf %54, %55 : vector<8x208xf32>
    %57 = arith.addf %48, %53 : vector<8x208xf32>
    %58 = arith.addf %49, %56 : vector<8x208xf32>
    %59 = arith.maximumf %57, %58 : vector<8x208xf32>
    %60 = vector.extract_strided_slice %15 {offsets = [0, 0], sizes = [1, 208], strides = [1, 1]} : vector<4x208xf32> to vector<1x208xf32>
    %61 = vector.broadcast %60 : vector<1x208xf32> to vector<8x208xf32>
    %62 = arith.addf %59, %61 : vector<8x208xf32>
    %cst_29 = arith.constant 0.000000e+00 : f32
    %63 = vector.broadcast %cst_29 : f32 to vector<8x208xf32>
    %64 = arith.maximumf %62, %63 : vector<8x208xf32>
    %65 = arith.truncf %64 : vector<8x208xf32> to vector<8x208xbf16>
    %c0_30 = arith.constant 0 : index
    %c0_31 = arith.constant 0 : index
    %c0_32 = arith.constant 0 : index
    %66 = vector.load %arg6[%c0_30, %c0_31, %c0_32] : memref<4x208x256xbf16, #tpu.memory_space<vmem>>, vector<1x208x256xbf16>
    %67 = vector.shape_cast %66 : vector<1x208x256xbf16> to vector<208x256xbf16>
    %cst_33 = arith.constant dense<0.000000e+00> : vector<8x256xf32>
    %68 = tpu.matmul %65, %67, %cst_33 {dimension_numbers = #tpu.dot_dimension_numbers<[1], [0], [0], [1], [0, 0, 1, 1], [], []>} : vector<8x208xbf16>, vector<208x256xbf16>, vector<8x256xf32> -> vector<8x256xf32>
    %69 = vector.extract_strided_slice %14 {offsets = [5, 0], sizes = [1, 208], strides = [1, 1]} : vector<20x208xf32> to vector<1x208xf32>
    %c0_34 = arith.constant 0 : index
    %c0_35 = arith.constant 0 : index
    %70 = vector.load %arg11[%c0_34, %c0_35] : memref<80x208xf32, #tpu.memory_space<vmem>>, vector<8x208xf32>
    %71 = vector.broadcast %69 : vector<1x208xf32> to vector<8x208xf32>
    %72 = arith.mulf %70, %71 : vector<8x208xf32>
    %c40_36 = arith.constant 40 : index
    %c0_37 = arith.constant 0 : index
    %73 = vector.load %arg11[%c40_36, %c0_37] : memref<80x208xf32, #tpu.memory_space<vmem>>, vector<8x208xf32>
    %74 = vector.broadcast %69 : vector<1x208xf32> to vector<8x208xf32>
    %75 = arith.mulf %73, %74 : vector<8x208xf32>
    %76 = vector.extract_strided_slice %14 {offsets = [6, 0], sizes = [1, 208], strides = [1, 1]} : vector<20x208xf32> to vector<1x208xf32>
    %c8_38 = arith.constant 8 : index
    %c0_39 = arith.constant 0 : index
    %77 = vector.load %arg11[%c8_38, %c0_39] : memref<80x208xf32, #tpu.memory_space<vmem>>, vector<8x208xf32>
    %78 = vector.broadcast %76 : vector<1x208xf32> to vector<8x208xf32>
    %79 = arith.mulf %77, %78 : vector<8x208xf32>
    %c48_40 = arith.constant 48 : index
    %c0_41 = arith.constant 0 : index
    %80 = vector.load %arg11[%c48_40, %c0_41] : memref<80x208xf32, #tpu.memory_space<vmem>>, vector<8x208xf32>
    %81 = vector.broadcast %76 : vector<1x208xf32> to vector<8x208xf32>
    %82 = arith.mulf %80, %81 : vector<8x208xf32>
    %83 = arith.addf %72, %79 : vector<8x208xf32>
    %84 = arith.addf %75, %82 : vector<8x208xf32>
    %85 = vector.extract_strided_slice %14 {offsets = [7, 0], sizes = [1, 208], strides = [1, 1]} : vector<20x208xf32> to vector<1x208xf32>
    %c16_42 = arith.constant 16 : index
    %c0_43 = arith.constant 0 : index
    %86 = vector.load %arg11[%c16_42, %c0_43] : memref<80x208xf32, #tpu.memory_space<vmem>>, vector<8x208xf32>
    %87 = vector.broadcast %85 : vector<1x208xf32> to vector<8x208xf32>
    %88 = arith.mulf %86, %87 : vector<8x208xf32>
    %c56_44 = arith.constant 56 : index
    %c0_45 = arith.constant 0 : index
    %89 = vector.load %arg11[%c56_44, %c0_45] : memref<80x208xf32, #tpu.memory_space<vmem>>, vector<8x208xf32>
    %90 = vector.broadcast %85 : vector<1x208xf32> to vector<8x208xf32>
    %91 = arith.mulf %89, %90 : vector<8x208xf32>
    %92 = arith.addf %83, %88 : vector<8x208xf32>
    %93 = arith.addf %84, %91 : vector<8x208xf32>
    %94 = vector.extract_strided_slice %14 {offsets = [8, 0], sizes = [1, 208], strides = [1, 1]} : vector<20x208xf32> to vector<1x208xf32>
    %c24_46 = arith.constant 24 : index
    %c0_47 = arith.constant 0 : index
    %95 = vector.load %arg11[%c24_46, %c0_47] : memref<80x208xf32, #tpu.memory_space<vmem>>, vector<8x208xf32>
    %96 = vector.broadcast %94 : vector<1x208xf32> to vector<8x208xf32>
    %97 = arith.mulf %95, %96 : vector<8x208xf32>
    %c64_48 = arith.constant 64 : index
    %c0_49 = arith.constant 0 : index
    %98 = vector.load %arg11[%c64_48, %c0_49] : memref<80x208xf32, #tpu.memory_space<vmem>>, vector<8x208xf32>
    %99 = vector.broadcast %94 : vector<1x208xf32> to vector<8x208xf32>
    %100 = arith.mulf %98, %99 : vector<8x208xf32>
    %101 = arith.addf %92, %97 : vector<8x208xf32>
    %102 = arith.addf %93, %100 : vector<8x208xf32>
    %103 = vector.extract_strided_slice %14 {offsets = [9, 0], sizes = [1, 208], strides = [1, 1]} : vector<20x208xf32> to vector<1x208xf32>
    %c32_50 = arith.constant 32 : index
    %c0_51 = arith.constant 0 : index
    %104 = vector.load %arg11[%c32_50, %c0_51] : memref<80x208xf32, #tpu.memory_space<vmem>>, vector<8x208xf32>
    %105 = vector.broadcast %103 : vector<1x208xf32> to vector<8x208xf32>
    %106 = arith.mulf %104, %105 : vector<8x208xf32>
    %c72_52 = arith.constant 72 : index
    %c0_53 = arith.constant 0 : index
    %107 = vector.load %arg11[%c72_52, %c0_53] : memref<80x208xf32, #tpu.memory_space<vmem>>, vector<8x208xf32>
    %108 = vector.broadcast %103 : vector<1x208xf32> to vector<8x208xf32>
    %109 = arith.mulf %107, %108 : vector<8x208xf32>
    %110 = arith.addf %101, %106 : vector<8x208xf32>
    %111 = arith.addf %102, %109 : vector<8x208xf32>
    %112 = arith.maximumf %110, %111 : vector<8x208xf32>
    %113 = vector.extract_strided_slice %15 {offsets = [1, 0], sizes = [1, 208], strides = [1, 1]} : vector<4x208xf32> to vector<1x208xf32>
    %114 = vector.broadcast %113 : vector<1x208xf32> to vector<8x208xf32>
    %115 = arith.addf %112, %114 : vector<8x208xf32>
    %cst_54 = arith.constant 0.000000e+00 : f32
    %116 = vector.broadcast %cst_54 : f32 to vector<8x208xf32>
    %117 = arith.maximumf %115, %116 : vector<8x208xf32>
    %118 = arith.truncf %117 : vector<8x208xf32> to vector<8x208xbf16>
    %c1_55 = arith.constant 1 : index
    %c0_56 = arith.constant 0 : index
    %c0_57 = arith.constant 0 : index
    %119 = vector.load %arg6[%c1_55, %c0_56, %c0_57] : memref<4x208x256xbf16, #tpu.memory_space<vmem>>, vector<1x208x256xbf16>
    %120 = vector.shape_cast %119 : vector<1x208x256xbf16> to vector<208x256xbf16>
    %cst_58 = arith.constant dense<0.000000e+00> : vector<8x256xf32>
    %121 = tpu.matmul %118, %120, %cst_58 {dimension_numbers = #tpu.dot_dimension_numbers<[1], [0], [0], [1], [0, 0, 1, 1], [], []>} : vector<8x208xbf16>, vector<208x256xbf16>, vector<8x256xf32> -> vector<8x256xf32>
    %122 = arith.addf %68, %121 : vector<8x256xf32>
    %123 = vector.extract_strided_slice %14 {offsets = [10, 0], sizes = [1, 208], strides = [1, 1]} : vector<20x208xf32> to vector<1x208xf32>
    %c0_59 = arith.constant 0 : index
    %c0_60 = arith.constant 0 : index
    %124 = vector.load %arg11[%c0_59, %c0_60] : memref<80x208xf32, #tpu.memory_space<vmem>>, vector<8x208xf32>
    %125 = vector.broadcast %123 : vector<1x208xf32> to vector<8x208xf32>
    %126 = arith.mulf %124, %125 : vector<8x208xf32>
    %c40_61 = arith.constant 40 : index
    %c0_62 = arith.constant 0 : index
    %127 = vector.load %arg11[%c40_61, %c0_62] : memref<80x208xf32, #tpu.memory_space<vmem>>, vector<8x208xf32>
    %128 = vector.broadcast %123 : vector<1x208xf32> to vector<8x208xf32>
    %129 = arith.mulf %127, %128 : vector<8x208xf32>
    %130 = vector.extract_strided_slice %14 {offsets = [11, 0], sizes = [1, 208], strides = [1, 1]} : vector<20x208xf32> to vector<1x208xf32>
    %c8_63 = arith.constant 8 : index
    %c0_64 = arith.constant 0 : index
    %131 = vector.load %arg11[%c8_63, %c0_64] : memref<80x208xf32, #tpu.memory_space<vmem>>, vector<8x208xf32>
    %132 = vector.broadcast %130 : vector<1x208xf32> to vector<8x208xf32>
    %133 = arith.mulf %131, %132 : vector<8x208xf32>
    %c48_65 = arith.constant 48 : index
    %c0_66 = arith.constant 0 : index
    %134 = vector.load %arg11[%c48_65, %c0_66] : memref<80x208xf32, #tpu.memory_space<vmem>>, vector<8x208xf32>
    %135 = vector.broadcast %130 : vector<1x208xf32> to vector<8x208xf32>
    %136 = arith.mulf %134, %135 : vector<8x208xf32>
    %137 = arith.addf %126, %133 : vector<8x208xf32>
    %138 = arith.addf %129, %136 : vector<8x208xf32>
    %139 = vector.extract_strided_slice %14 {offsets = [12, 0], sizes = [1, 208], strides = [1, 1]} : vector<20x208xf32> to vector<1x208xf32>
    %c16_67 = arith.constant 16 : index
    %c0_68 = arith.constant 0 : index
    %140 = vector.load %arg11[%c16_67, %c0_68] : memref<80x208xf32, #tpu.memory_space<vmem>>, vector<8x208xf32>
    %141 = vector.broadcast %139 : vector<1x208xf32> to vector<8x208xf32>
    %142 = arith.mulf %140, %141 : vector<8x208xf32>
    %c56_69 = arith.constant 56 : index
    %c0_70 = arith.constant 0 : index
    %143 = vector.load %arg11[%c56_69, %c0_70] : memref<80x208xf32, #tpu.memory_space<vmem>>, vector<8x208xf32>
    %144 = vector.broadcast %139 : vector<1x208xf32> to vector<8x208xf32>
    %145 = arith.mulf %143, %144 : vector<8x208xf32>
    %146 = arith.addf %137, %142 : vector<8x208xf32>
    %147 = arith.addf %138, %145 : vector<8x208xf32>
    %148 = vector.extract_strided_slice %14 {offsets = [13, 0], sizes = [1, 208], strides = [1, 1]} : vector<20x208xf32> to vector<1x208xf32>
    %c24_71 = arith.constant 24 : index
    %c0_72 = arith.constant 0 : index
    %149 = vector.load %arg11[%c24_71, %c0_72] : memref<80x208xf32, #tpu.memory_space<vmem>>, vector<8x208xf32>
    %150 = vector.broadcast %148 : vector<1x208xf32> to vector<8x208xf32>
    %151 = arith.mulf %149, %150 : vector<8x208xf32>
    %c64_73 = arith.constant 64 : index
    %c0_74 = arith.constant 0 : index
    %152 = vector.load %arg11[%c64_73, %c0_74] : memref<80x208xf32, #tpu.memory_space<vmem>>, vector<8x208xf32>
    %153 = vector.broadcast %148 : vector<1x208xf32> to vector<8x208xf32>
    %154 = arith.mulf %152, %153 : vector<8x208xf32>
    %155 = arith.addf %146, %151 : vector<8x208xf32>
    %156 = arith.addf %147, %154 : vector<8x208xf32>
    %157 = vector.extract_strided_slice %14 {offsets = [14, 0], sizes = [1, 208], strides = [1, 1]} : vector<20x208xf32> to vector<1x208xf32>
    %c32_75 = arith.constant 32 : index
    %c0_76 = arith.constant 0 : index
    %158 = vector.load %arg11[%c32_75, %c0_76] : memref<80x208xf32, #tpu.memory_space<vmem>>, vector<8x208xf32>
    %159 = vector.broadcast %157 : vector<1x208xf32> to vector<8x208xf32>
    %160 = arith.mulf %158, %159 : vector<8x208xf32>
    %c72_77 = arith.constant 72 : index
    %c0_78 = arith.constant 0 : index
    %161 = vector.load %arg11[%c72_77, %c0_78] : memref<80x208xf32, #tpu.memory_space<vmem>>, vector<8x208xf32>
    %162 = vector.broadcast %157 : vector<1x208xf32> to vector<8x208xf32>
    %163 = arith.mulf %161, %162 : vector<8x208xf32>
    %164 = arith.addf %155, %160 : vector<8x208xf32>
    %165 = arith.addf %156, %163 : vector<8x208xf32>
    %166 = arith.maximumf %164, %165 : vector<8x208xf32>
    %167 = vector.extract_strided_slice %15 {offsets = [2, 0], sizes = [1, 208], strides = [1, 1]} : vector<4x208xf32> to vector<1x208xf32>
    %168 = vector.broadcast %167 : vector<1x208xf32> to vector<8x208xf32>
    %169 = arith.addf %166, %168 : vector<8x208xf32>
    %cst_79 = arith.constant 0.000000e+00 : f32
    %170 = vector.broadcast %cst_79 : f32 to vector<8x208xf32>
    %171 = arith.maximumf %169, %170 : vector<8x208xf32>
    %172 = arith.truncf %171 : vector<8x208xf32> to vector<8x208xbf16>
    %c2 = arith.constant 2 : index
    %c0_80 = arith.constant 0 : index
    %c0_81 = arith.constant 0 : index
    %173 = vector.load %arg6[%c2, %c0_80, %c0_81] : memref<4x208x256xbf16, #tpu.memory_space<vmem>>, vector<1x208x256xbf16>
    %174 = vector.shape_cast %173 : vector<1x208x256xbf16> to vector<208x256xbf16>
    %cst_82 = arith.constant dense<0.000000e+00> : vector<8x256xf32>
    %175 = tpu.matmul %172, %174, %cst_82 {dimension_numbers = #tpu.dot_dimension_numbers<[1], [0], [0], [1], [0, 0, 1, 1], [], []>} : vector<8x208xbf16>, vector<208x256xbf16>, vector<8x256xf32> -> vector<8x256xf32>
    %176 = arith.addf %122, %175 : vector<8x256xf32>
    %177 = vector.extract_strided_slice %14 {offsets = [15, 0], sizes = [1, 208], strides = [1, 1]} : vector<20x208xf32> to vector<1x208xf32>
    %c0_83 = arith.constant 0 : index
    %c0_84 = arith.constant 0 : index
    %178 = vector.load %arg11[%c0_83, %c0_84] : memref<80x208xf32, #tpu.memory_space<vmem>>, vector<8x208xf32>
    %179 = vector.broadcast %177 : vector<1x208xf32> to vector<8x208xf32>
    %180 = arith.mulf %178, %179 : vector<8x208xf32>
    %c40_85 = arith.constant 40 : index
    %c0_86 = arith.constant 0 : index
    %181 = vector.load %arg11[%c40_85, %c0_86] : memref<80x208xf32, #tpu.memory_space<vmem>>, vector<8x208xf32>
    %182 = vector.broadcast %177 : vector<1x208xf32> to vector<8x208xf32>
    %183 = arith.mulf %181, %182 : vector<8x208xf32>
    %184 = vector.extract_strided_slice %14 {offsets = [16, 0], sizes = [1, 208], strides = [1, 1]} : vector<20x208xf32> to vector<1x208xf32>
    %c8_87 = arith.constant 8 : index
    %c0_88 = arith.constant 0 : index
    %185 = vector.load %arg11[%c8_87, %c0_88] : memref<80x208xf32, #tpu.memory_space<vmem>>, vector<8x208xf32>
    %186 = vector.broadcast %184 : vector<1x208xf32> to vector<8x208xf32>
    %187 = arith.mulf %185, %186 : vector<8x208xf32>
    %c48_89 = arith.constant 48 : index
    %c0_90 = arith.constant 0 : index
    %188 = vector.load %arg11[%c48_89, %c0_90] : memref<80x208xf32, #tpu.memory_space<vmem>>, vector<8x208xf32>
    %189 = vector.broadcast %184 : vector<1x208xf32> to vector<8x208xf32>
    %190 = arith.mulf %188, %189 : vector<8x208xf32>
    %191 = arith.addf %180, %187 : vector<8x208xf32>
    %192 = arith.addf %183, %190 : vector<8x208xf32>
    %193 = vector.extract_strided_slice %14 {offsets = [17, 0], sizes = [1, 208], strides = [1, 1]} : vector<20x208xf32> to vector<1x208xf32>
    %c16_91 = arith.constant 16 : index
    %c0_92 = arith.constant 0 : index
    %194 = vector.load %arg11[%c16_91, %c0_92] : memref<80x208xf32, #tpu.memory_space<vmem>>, vector<8x208xf32>
    %195 = vector.broadcast %193 : vector<1x208xf32> to vector<8x208xf32>
    %196 = arith.mulf %194, %195 : vector<8x208xf32>
    %c56_93 = arith.constant 56 : index
    %c0_94 = arith.constant 0 : index
    %197 = vector.load %arg11[%c56_93, %c0_94] : memref<80x208xf32, #tpu.memory_space<vmem>>, vector<8x208xf32>
    %198 = vector.broadcast %193 : vector<1x208xf32> to vector<8x208xf32>
    %199 = arith.mulf %197, %198 : vector<8x208xf32>
    %200 = arith.addf %191, %196 : vector<8x208xf32>
    %201 = arith.addf %192, %199 : vector<8x208xf32>
    %202 = vector.extract_strided_slice %14 {offsets = [18, 0], sizes = [1, 208], strides = [1, 1]} : vector<20x208xf32> to vector<1x208xf32>
    %c24_95 = arith.constant 24 : index
    %c0_96 = arith.constant 0 : index
    %203 = vector.load %arg11[%c24_95, %c0_96] : memref<80x208xf32, #tpu.memory_space<vmem>>, vector<8x208xf32>
    %204 = vector.broadcast %202 : vector<1x208xf32> to vector<8x208xf32>
    %205 = arith.mulf %203, %204 : vector<8x208xf32>
    %c64_97 = arith.constant 64 : index
    %c0_98 = arith.constant 0 : index
    %206 = vector.load %arg11[%c64_97, %c0_98] : memref<80x208xf32, #tpu.memory_space<vmem>>, vector<8x208xf32>
    %207 = vector.broadcast %202 : vector<1x208xf32> to vector<8x208xf32>
    %208 = arith.mulf %206, %207 : vector<8x208xf32>
    %209 = arith.addf %200, %205 : vector<8x208xf32>
    %210 = arith.addf %201, %208 : vector<8x208xf32>
    %211 = vector.extract_strided_slice %14 {offsets = [19, 0], sizes = [1, 208], strides = [1, 1]} : vector<20x208xf32> to vector<1x208xf32>
    %c32_99 = arith.constant 32 : index
    %c0_100 = arith.constant 0 : index
    %212 = vector.load %arg11[%c32_99, %c0_100] : memref<80x208xf32, #tpu.memory_space<vmem>>, vector<8x208xf32>
    %213 = vector.broadcast %211 : vector<1x208xf32> to vector<8x208xf32>
    %214 = arith.mulf %212, %213 : vector<8x208xf32>
    %c72_101 = arith.constant 72 : index
    %c0_102 = arith.constant 0 : index
    %215 = vector.load %arg11[%c72_101, %c0_102] : memref<80x208xf32, #tpu.memory_space<vmem>>, vector<8x208xf32>
    %216 = vector.broadcast %211 : vector<1x208xf32> to vector<8x208xf32>
    %217 = arith.mulf %215, %216 : vector<8x208xf32>
    %218 = arith.addf %209, %214 : vector<8x208xf32>
    %219 = arith.addf %210, %217 : vector<8x208xf32>
    %220 = arith.maximumf %218, %219 : vector<8x208xf32>
    %221 = vector.extract_strided_slice %15 {offsets = [3, 0], sizes = [1, 208], strides = [1, 1]} : vector<4x208xf32> to vector<1x208xf32>
    %222 = vector.broadcast %221 : vector<1x208xf32> to vector<8x208xf32>
    %223 = arith.addf %220, %222 : vector<8x208xf32>
    %cst_103 = arith.constant 0.000000e+00 : f32
    %224 = vector.broadcast %cst_103 : f32 to vector<8x208xf32>
    %225 = arith.maximumf %223, %224 : vector<8x208xf32>
    %226 = arith.truncf %225 : vector<8x208xf32> to vector<8x208xbf16>
    %c3 = arith.constant 3 : index
    %c0_104 = arith.constant 0 : index
    %c0_105 = arith.constant 0 : index
    %227 = vector.load %arg6[%c3, %c0_104, %c0_105] : memref<4x208x256xbf16, #tpu.memory_space<vmem>>, vector<1x208x256xbf16>
    %228 = vector.shape_cast %227 : vector<1x208x256xbf16> to vector<208x256xbf16>
    %cst_106 = arith.constant dense<0.000000e+00> : vector<8x256xf32>
    %229 = tpu.matmul %226, %228, %cst_106 {dimension_numbers = #tpu.dot_dimension_numbers<[1], [0], [0], [1], [0, 0, 1, 1], [], []>} : vector<8x208xbf16>, vector<208x256xbf16>, vector<8x256xf32> -> vector<8x256xf32>
    %230 = arith.addf %176, %229 : vector<8x256xf32>
    %c0_107 = arith.constant 0 : index
    %c0_108 = arith.constant 0 : index
    %231 = vector.load %arg7[%c0_107, %c0_108] : memref<1x256xf32, #tpu.memory_space<vmem>>, vector<1x256xf32>
    %232 = vector.broadcast %231 : vector<1x256xf32> to vector<8x256xf32>
    %233 = arith.addf %230, %232 : vector<8x256xf32>
    %cst_109 = arith.constant 0.000000e+00 : f32
    %234 = vector.broadcast %cst_109 : f32 to vector<8x256xf32>
    %235 = arith.maximumf %233, %234 : vector<8x256xf32>
    %236 = arith.truncf %235 : vector<8x256xf32> to vector<8x256xbf16>
    %c0_110 = arith.constant 0 : index
    %c0_111 = arith.constant 0 : index
    %237 = vector.load %arg8[%c0_110, %c0_111] : memref<256x128xbf16, #tpu.memory_space<vmem>>, vector<256x128xbf16>
    %cst_112 = arith.constant dense<0.000000e+00> : vector<8x128xf32>
    %238 = tpu.matmul %236, %237, %cst_112 {dimension_numbers = #tpu.dot_dimension_numbers<[1], [0], [0], [1], [0, 0, 1, 1], [], []>} : vector<8x256xbf16>, vector<256x128xbf16>, vector<8x128xf32> -> vector<8x128xf32>
    %c0_113 = arith.constant 0 : index
    %c0_114 = arith.constant 0 : index
    %239 = vector.load %arg9[%c0_113, %c0_114] : memref<1x128xf32, #tpu.memory_space<vmem>>, vector<1x128xf32>
    %240 = vector.broadcast %239 : vector<1x128xf32> to vector<8x128xf32>
    %241 = arith.addf %238, %240 : vector<8x128xf32>
    %c0_115 = arith.constant 0 : index
    %c0_116 = arith.constant 0 : index
    %242 = vector.load %arg10[%c0_115, %c0_116] : memref<8x128xf32, #tpu.memory_space<vmem>>, vector<8x128xf32>
    tpu.vector_store %arg10[%c0_115, %c0_116], %241 {strides = array<i32>} : memref<8x128xf32, #tpu.memory_space<vmem>>, vector<8x128xf32>,
    return
  }
  func.func @transform_0(%arg0: i32) -> (i32, i32, i32, i32) {
    %c0_i32 = arith.constant 0 : i32
    %c0_i32_0 = arith.constant 0 : i32
    %c0_i32_1 = arith.constant 0 : i32
    %c0_i32_2 = arith.constant 0 : i32
    return %c0_i32, %arg0, %c0_i32_0, %c0_i32_1 : i32, i32, i32, i32
  }
  func.func @transform_1(%arg0: i32) -> (i32, i32) {
    %c0_i32 = arith.constant 0 : i32
    %c0_i32_0 = arith.constant 0 : i32
    %c0_i32_1 = arith.constant 0 : i32
    return %c0_i32, %c0_i32_0 : i32, i32
  }
  func.func @transform_2(%arg0: i32) -> (i32, i32) {
    %c0_i32 = arith.constant 0 : i32
    %c0_i32_0 = arith.constant 0 : i32
    %c0_i32_1 = arith.constant 0 : i32
    return %c0_i32, %c0_i32_0 : i32, i32
  }
  func.func @transform_3(%arg0: i32) -> (i32, i32) {
    %c0_i32 = arith.constant 0 : i32
    %c0_i32_0 = arith.constant 0 : i32
    %c0_i32_1 = arith.constant 0 : i32
    return %c0_i32, %c0_i32_0 : i32, i32
  }
  func.func @transform_4(%arg0: i32) -> (i32, i32) {
    %c0_i32 = arith.constant 0 : i32
    %c0_i32_0 = arith.constant 0 : i32
    %c0_i32_1 = arith.constant 0 : i32
    return %c0_i32, %c0_i32_0 : i32, i32
  }
  func.func @transform_5(%arg0: i32) -> (i32, i32, i32) {
    %c0_i32 = arith.constant 0 : i32
    %c0_i32_0 = arith.constant 0 : i32
    %c0_i32_1 = arith.constant 0 : i32
    %c0_i32_2 = arith.constant 0 : i32
    return %c0_i32, %c0_i32_0, %c0_i32_1 : i32, i32, i32
  }
  func.func @transform_6(%arg0: i32) -> (i32, i32) {
    %c0_i32 = arith.constant 0 : i32
    %c0_i32_0 = arith.constant 0 : i32
    %c0_i32_1 = arith.constant 0 : i32
    return %c0_i32, %c0_i32_0 : i32, i32
  }
  func.func @transform_7(%arg0: i32) -> (i32, i32) {
    %c0_i32 = arith.constant 0 : i32
    %c0_i32_0 = arith.constant 0 : i32
    %c0_i32_1 = arith.constant 0 : i32
    return %c0_i32, %c0_i32_0 : i32, i32
  }
  func.func @transform_8(%arg0: i32) -> (i32, i32) {
    %c0_i32 = arith.constant 0 : i32
    %c0_i32_0 = arith.constant 0 : i32
    %c0_i32_1 = arith.constant 0 : i32
    return %c0_i32, %c0_i32_0 : i32, i32
  }
  func.func @transform_9(%arg0: i32) -> (i32, i32) {
    %c0_i32 = arith.constant 0 : i32
    %c0_i32_0 = arith.constant 0 : i32
    return %arg0, %c0_i32 : i32, i32
  }
}

</mosaic_0001>

<bundles_post_ra>
// kernel: squeeze.3
= control target key start
LH: loop header
LB: loop body
LE: loop exit
PB: predicated region body
PF: predicated region fallthrough
CT: control target
= control target key end

     0   :  { %vm95_vm0 = vcmask 1047557   ;;  %vm78_vm1 = vcmask 1047559   ;;  %s109_s6 = smov 3  ;;  %vm113_vm2 = vcmask 1043458   ;;  %s3287_s11 = smov 124   ;;  %vm117_vm3 = vcmask 1047556   ;;  %s6513_s0 = inlined_call_operand.vmem [shape: f32[832,5], index: 0, kind: input, shape index: {}]   ;;  %s6514_s1 = inlined_call_operand.vmem [shape: f32[208,4,5], index: 1, kind: output, shape index: {}]  }
   0x1   :  { %v3331_v0 = vld.sshfl [vmem:[%s6513_s0] sm:$0xff pattern:$0xb8943210]   ;;  %v3343_v3 = vld.sshfl [vmem:[%s6513_s0 + $0xa] sm:$0xff pattern:$0x88f69270]  }
   0x2   :  { %v2462_v1 = vld.sshfl [vmem:[%s6513_s0 + $0x14] sm:$0xff pattern:$0x6666f4d0]   ;;  %63 = vrot.lane.b32.xlu0 %v3331_v0, %s3287_s11  ;;  %v2463_v2 = vld.sshfl [vmem:[%s6513_s0 + $0x1c] sm:$0xff pattern:$0xf0dddddd]  }
   0x3   :  { %v3345_v4 = vsel %vm95_vm0, %v2463_v2, %v2462_v1  ;;  %v2457_v5 = vld [vmem:[%s6513_s0 + $0x14] sm:$0x80]   ;;  %v2468_v6 = vld [vmem:[%s6513_s0 + $0x20] ss:$17 sm:%s109_s6]   ;;  %s111_s20 = smov 12  ;;  %s192_s25 = smov 3 }
   0x4   :  { %97 = vrot.lane.b32.xlu1 %v3345_v4, %s3287_s11  ;;  %v79_v7 = vsel %vm78_vm1, %v2457_v5, %v3343_v3  ;;  %v112_v8 = vld [vmem:[%s6513_s0] ss:$17 sm:%s111_s20]   ;;  %s194_s26 = smov 12  ;;  %v2476_v12 = vld [vmem:[%s6513_s0 + $0x30] ss:$2 sm:$0x7]  }
   0x5   :  { %v3362_v9 = vld.sshfl [vmem:[%s6513_s0 + $0x24] sm:$0xff pattern:$0x86400000]   ;;  %v114_v10 = vsel %vm113_vm2, %v112_v8, %v2468_v6  ;;  %v2485_v13 = vld [vmem:[%s6513_s0 + $0x14] sm:$0x80]   ;;  %s3288_s6 = smov 120  }
   0x6   :  { %80 = vrot.lane.b32.xlu0 %v79_v7, %s3287_s11  ;;  %v118_v11 = vsel %vm117_vm3, %v3362_v9, %v114_v10  ;;  %v2496_v14 = vld [vmem:[%s6513_s0 + $0x20] ss:$17 sm:%s192_s25]   ;;  %v162_v16 = vsel %vm78_vm1, %v2485_v13, %v3343_v3  ;;  %s275_s7 = smov 3  ;;  %s277_s8 = smov 12  ;;  %v2653_v22 = vld [vmem:[%s6513_s0 + $0x14] sm:$0x80]  }
   0x7   :  { %v195_v15 = vld [vmem:[%s6513_s0] ss:$17 sm:%s194_s26]   ;;  %v2504_v19 = vld [vmem:[%s6513_s0 + $0x30] ss:$2 sm:$0x7]   ;;  %s690_s17 = smov 3  ;;  %v3403_v24 = vsel %vm78_vm1, %v2653_v22, %v3343_v3 }
   0x8   :  { %119 = vrot.lane.b32.xlu1 %v118_v11, %s3287_s11  ;;  %v197_v17 = vsel %vm113_vm2, %v195_v15, %v2496_v14  ;;  %v2524_v20 = vld [vmem:[%s6513_s0 + $0x20] ss:$17 sm:%s275_s7]   ;;  %s692_s18 = smov 12  ;;  %v2513_v23 = vld [vmem:[%s6513_s0 + $0x14] sm:$0x80]   ;;  %s773_s27 = smov 3 }
   0x9   :  { %v201_v18 = vsel %vm117_vm3, %v3362_v9, %v197_v17  ;;  %v278_v21 = vld [vmem:[%s6513_s0] ss:$17 sm:%s277_s8]   ;;  %v2681_v27 = vld [vmem:[%s6513_s0 + $0x14] sm:$0x80]   ;;  %s775_s28 = smov 12  ;;  %v245_v31 = vsel %vm78_vm1, %v2513_v23, %v3343_v3  ;;  %s858_s7 = smov 12 }
   0xa   :  { %136 = vrot.lane.b32.xlu0 %v2476_v12, %s3287_s11  ;;  %v2664_v25 = vld [vmem:[%s6513_s0 + $0x20] ss:$17 sm:%s690_s17]   ;;  %v3417_v29 = vsel %vm78_vm1, %v2681_v27, %v3343_v3  ;;  %v2709_v34 = vld [vmem:[%s6513_s0 + $0x14] sm:$0x80]   ;;  %s3289_s8 = smov 116   ;;  %v280_v35 = vsel %vm113_vm2, %v278_v21, %v2524_v20  ;;  %s939_s15 = smov 3 }
   0xb   :  { %v693_v26 = vld [vmem:[%s6513_s0] ss:$17 sm:%s692_s18]   ;;  %v3440_v37 = vsel %vm78_vm1, %v2709_v34, %v3343_v3  ;;  %v2737_v41 = vld [vmem:[%s6513_s0 + $0x14] sm:$0x80]   ;;  %s941_s16 = smov 12  ;;  %s358_s17 = smov 3  ;;  %v284_v45 = vsel %vm117_vm3, %v3362_v9, %v280_v35 }
   0xc   :  { %146 = vrot.lane.b32.xlu1 %v3331_v0, %s3288_s6  ;;  %v695_v28 = vsel %vm113_vm2, %v693_v26, %v2664_v25  ;;  %v2692_v30 = vld [vmem:[%s6513_s0 + $0x20] ss:$17 sm:%s773_s27]   ;;  %s360_s18 = smov 12  ;;  %v3459_v43 = vsel %vm78_vm1, %v2737_v41, %v3343_v3  ;;  %v2765_v48 = vld [vmem:[%s6513_s0 + $0x14] sm:$0x80]   ;;  %s1022_s25 = smov 3 }
   0xd   :  { %v3426_v32 = vsel %vm117_vm3, %v3362_v9, %v695_v28  ;;  %v776_v33 = vld [vmem:[%s6513_s0] ss:$17 sm:%s775_s28]   ;;  %v2532_v49 = vld [vmem:[%s6513_s0 + $0x30] ss:$2 sm:$0x7]   ;;  %v3484_v51 = vsel %vm78_vm1, %v2765_v48, %v3343_v3  ;;  %s1024_s30 = smov 12 }
   0xe   :  { %163 = vrot.lane.b32.xlu0 %v162_v16, %s3288_s6  ;;  %v778_v36 = vsel %vm113_vm2, %v776_v33, %v2692_v30  ;;  %v859_v40 = vld [vmem:[%s6513_s0] ss:$17 sm:%s858_s7]   ;;  %v2793_v57 = vld [vmem:[%s6513_s0 + $0x14] sm:$0x80]   ;;  %s1105_s11 = smov 3  ;;  %s1188_s21 = smov 3 }
   0xf   :  { %v3447_v39 = vsel %vm117_vm3, %v3362_v9, %v778_v36  ;;  %v2748_v44 = vld [vmem:[%s6513_s0 + $0x20] ss:$17 sm:%s939_s15]   ;;  %v2541_v58 = vld [vmem:[%s6513_s0 + $0x14] sm:$0x80]   ;;  %v3512_v60 = vsel %vm78_vm1, %v2793_v57, %v3343_v3  ;;  %s1190_s23 = smov 12  ;;  %s1271_s28 = smov 3 }
  0x10   :  { %180 = vrot.lane.b32.xlu1 %v3345_v4, %s3288_s6  ;;  %v942_v47 = vld [vmem:[%s6513_s0] ss:$17 sm:%s941_s16]   ;;  %s1107_s16 = smov 12  ;;  %v2821_v1 = vld [vmem:[%s6513_s0 + $0x14] sm:$0x80]   ;;  %v328_v7 = vsel %vm78_vm1, %v2541_v58, %v3343_v3  ;;  %s3290_s29 = smov 112  }
  0x11   :  { %v944_v50 = vsel %vm113_vm2, %v942_v47, %v2748_v44  ;;  %v2776_v52 = vld [vmem:[%s6513_s0 + $0x20] ss:$17 sm:%s1022_s25]   ;;  %v3531_v5 = vsel %vm78_vm1, %v2821_v1, %v3343_v3  ;;  %v2849_v11 = vld [vmem:[%s6513_s0 + $0x14] sm:$0x80]   ;;  %s1273_s3 = smov 12  ;;  %s443_s7 = smov 12 }
  0x12   :  { %202 = vrot.lane.b32.xlu0 %v201_v18, %s3288_s6  ;;  %v2552_v53 = vld [vmem:[%s6513_s0 + $0x20] ss:$17 sm:%s358_s17]   ;;  %v3497_v55 = vsel %vm117_vm3, %v3362_v9, %v944_v50  ;;  %v3553_v14 = vsel %vm78_vm1, %v2849_v11, %v3343_v3  ;;  %v2560_v21 = vld [vmem:[%s6513_s0 + $0x30] ss:$2 sm:$0x7]   ;;  %s3291_s17 = smov 108  }
  0x13   :  { %v361_v54 = vld [vmem:[%s6513_s0] ss:$17 sm:%s360_s18]   ;;  %v2569_v22 = vld [vmem:[%s6513_s0 + $0x14] sm:$0x80]   ;;  %s524_s18 = smov 3  ;;  %s526_s19 = smov 12 }
  0x14   :  { %219 = vrot.lane.b32.xlu1 %v2504_v19, %s3288_s6  ;;  %s856_s6 = smov 3  ;;  %v1025_v56 = vld [vmem:[%s6513_s0] ss:$17 sm:%s1024_s30]   ;;  %v363_v12 = vsel %vm113_vm2, %v361_v54, %v2552_v53  ;;  %v411_v26 = vsel %vm78_vm1, %v2569_v22, %v3343_v3  ;;  %v2588_v30 = vld [vmem:[%s6513_s0 + $0x30] ss:$2 sm:$0x7]  }
  0x15   :  { %v2720_v38 = vld [vmem:[%s6513_s0 + $0x20] ss:$17 sm:%s856_s6]   ;;  %v1027_v59 = vsel %vm113_vm2, %v1025_v56, %v2776_v52  ;;  %v367_v19 = vsel %vm117_vm3, %v3362_v9, %v363_v12  ;;  %s441_s6 = smov 3  ;;  %s3292_s27 = smov 104   ;;  %v2625_v41 = vld [vmem:[%s6513_s0 + $0x14] sm:$0x80]  }
  0x16   :  { %229 = vrot.lane.b32.xlu0 %v3331_v0, %s3289_s8  ;;  %v861_v42 = vsel %vm113_vm2, %v859_v40, %v2720_v38  ;;  %v2804_v61 = vld [vmem:[%s6513_s0 + $0x20] ss:$17 sm:%s1105_s11]   ;;  %v3519_v62 = vsel %vm117_vm3, %v3362_v9, %v1027_v59  ;;  %v2616_v40 = vld [vmem:[%s6513_s0 + $0x30] ss:$2 sm:$0x7]   ;;  %s3293_s10 = smov 100  }
  0x17   :  { %v3468_v46 = vsel %vm117_vm3, %v3362_v9, %v861_v42  ;;  %v1108_v63 = vld [vmem:[%s6513_s0] ss:$17 sm:%s1107_s16]   ;;  %v2644_v47 = vld [vmem:[%s6513_s0 + $0x30] ss:$2 sm:$0x7]   ;;  %s3294_s13 = smov 96  }
  0x18   :  { %246 = vrot.lane.b32.xlu1 %v245_v31, %s3289_s8  ;;  %v1110_v2 = vsel %vm113_vm2, %v1108_v63, %v2804_v61  ;;  %v2832_v6 = vld [vmem:[%s6513_s0 + $0x20] ss:$17 sm:%s1188_s21]   ;;  %v2597_v31 = vld [vmem:[%s6513_s0 + $0x14] sm:$0x80]   ;;  %s3295_s16 = smov 92   ;;  %s3298_s24 = smov 80  }
  0x19   :  { %v3540_v8 = vsel %vm117_vm3, %v3362_v9, %v1110_v2  ;;  %v1191_v10 = vld [vmem:[%s6513_s0] ss:$17 sm:%s1190_s23]   ;;  %v494_v35 = vsel %vm78_vm1, %v2597_v31, %v3343_v3  ;;  %v577_v3 = vsel %vm78_vm1, %v2625_v41, %v3343_v3  ;;  %vm3_vm4 = vcmask 31744   ;;  %s3299_s22 = smov 76   ;;  %s3301_s26 = smov 68  }
  0x1a   :  { %263 = vrot.lane.b32.xlu0 %v3345_v4, %s3289_s8  ;;  %v1193_v13 = vsel %vm113_vm2, %v1191_v10, %v2832_v6  ;;  %v2860_v15 = vld [vmem:[%s6513_s0 + $0x20] ss:$17 sm:%s1271_s28]   ;;  %s607_s28 = smov 3  ;;  %v2812_v52 = vld [vmem:[%s6513_s0 + $0x30] ss:$2 sm:$0x7]  }
  0x1b   :  { %v3560_v16 = vsel %vm117_vm3, %v3362_v9, %v1193_v13  ;;  %v1274_v17 = vld [vmem:[%s6513_s0] ss:$17 sm:%s1273_s3]   ;;  %v2840_v58 = vld [vmem:[%s6513_s0 + $0x30] ss:$2 sm:$0x7]   ;;  %s1340_s11 = smov 48 }
  0x1c   :  { %285 = vrot.lane.b32.xlu1 %v284_v45, %s3289_s8  ;;  %v1276_v18 = vsel %vm113_vm2, %v1274_v17, %v2860_v15  ;;  %v2580_v23 = vld [vmem:[%s6513_s0 + $0x20] ss:$17 sm:%s441_s6]   ;;  %v3946_v63 = vld.sshfl [vmem:[%s6513_s0 + $0x14] sm:$0xff pattern:$0x44444f0d]   ;;  %vm1342_vm5 = vcmask 1045508  }
  0x1d   :  { %v3570_v20 = vsel %vm117_vm3, %v3362_v9, %v1276_v18  ;;  %v444_v25 = vld [vmem:[%s6513_s0] ss:$17 sm:%s443_s7]   ;;  %v2883_v1 = vld [vmem:[%s6513_s0 + $0x65] ss:$-15 sm:%s1340_s11]   ;;  %s1345_s3 = smov 192  ;;  %vm1324_vm6 = vcmask 1047558  }
  0x1e   :  { %302 = vrot.lane.b32.xlu0 %v2532_v49, %s3289_s8  ;;  %v446_v27 = vsel %vm113_vm2, %v444_v25, %v2580_v23  ;;  %v2608_v33 = vld [vmem:[%s6513_s0 + $0x20] ss:$17 sm:%s524_s18]   ;;  %s3297_s8 = smov 84   ;;  %s1322_s18 = smov 192  ;;  %v1343_v10 = vsel %vm1342_vm5, %v2883_v1, %v3946_v63 }
  0x1f   :  { %v450_v28 = vsel %vm117_vm3, %v3362_v9, %v446_v27  ;;  %v527_v34 = vld [vmem:[%s6513_s0] ss:$17 sm:%s526_s19]   ;;  %s3296_s19 = smov 88   ;;  %v2884_v11 = vld [vmem:[%s6513_s0 + $0x85] ss:$-15 sm:%s1345_s3]   ;;  %s1410_s30 = smov 48 }
  0x20   :  { %312 = vrot.lane.b32.xlu1 %v3331_v0, %s3290_s29  ;;  %v529_v36 = vsel %vm113_vm2, %v527_v34, %v2608_v33  ;;  %v2636_v42 = vld [vmem:[%s6513_s0 + $0x20] ss:$17 sm:%s607_s28]   ;;  %s1392_s15 = smov 192  ;;  %s1485_s14 = smov 192 }
  0x21   :  { %v533_v38 = vsel %vm117_vm3, %v3362_v9, %v529_v36  ;;  %v2877_v6 = vld [vmem:[%s6513_s0 + $0x51] ss:$-9 sm:%s1322_s18]   ;;  %s3303_s18 = smov 60   ;;  %s3304_s3 = smov 56  }
  0x22   :  { %329 = vrot.lane.b32.xlu0 %v328_v7, %s3290_s29  ;;  %v3996_v7 = vld.sshfl [vmem:[%s6513_s0] sm:$0xff pattern:$0x8b492301]   ;;  %s1550_s4 = smov 48  ;;  %s1555_s23 = smov 192 }
  0x23   :  { %v2907_v17 = vld [vmem:[%s6513_s0 + $0x65] ss:$-15 sm:%s1410_s30]   ;;  %s1602_s28 = smov 192  ;;  %s1690_s7 = smov 48 }
  0x24   :  { %346 = vrot.lane.b32.xlu1 %v3345_v4, %s3290_s29  ;;  %s1742_s2 = smov 192  ;;  %s1765_s12 = smov 192 }
  0x25   :  { %s1830_s5 = smov 48  ;;  %s3309_s20 = smov 36  }
  0x26   :  { %368 = vrot.lane.b32.xlu0 %v367_v19, %s3290_s29  ;;  %v2901_v19 = vld [vmem:[%s6513_s0 + $0x51] ss:$-9 sm:%s1392_s15]   ;;  %s1672_s15 = smov 192  ;;  %s1900_s21 = smov 48 }
  0x27   :  { %s3310_s6 = smov 32   ;;  %s2022_s30 = smov 192 }
  0x28   :  { %385 = vrot.lane.b32.xlu1 %v2560_v21, %s3290_s29  ;;  %s609_s29 = smov 12  ;;  %v1413_v21 = vsel %vm1342_vm5, %v2907_v17, %v3946_v63  ;;  %v3051_v17 = vld [vmem:[%s6513_s0 + $0x65] ss:$-15 sm:%s1830_s5]   ;;  %s3312_s5 = smov 24  }
  0x29   :  { %v610_v44 = vld [vmem:[%s6513_s0] ss:$17 sm:%s609_s29]   ;;  %s3302_s29 = smov 64   ;;  %s2115_s25 = smov 192 }
  0x2a   :  { %395 = vrot.lane.b32.xlu0 %v3331_v0, %s3291_s17  ;;  %v612_v45 = vsel %vm113_vm2, %v610_v44, %v2636_v42  ;;  %v2955_v42 = vld [vmem:[%s6513_s0 + $0x65] ss:$-15 sm:%s1550_s4]   ;;  %s3308_s4 = smov 40   ;;  %s2250_s9 = smov 48 }
  0x2b   :  { %v616_v9 = vsel %vm117_vm3, %v3362_v9, %v612_v45 }
  0x2c   :  { %412 = vrot.lane.b32.xlu1 %v411_v26, %s3291_s17 }
  0x2e   :  { %429 = vrot.lane.b32.xlu0 %v3345_v4, %s3291_s17 }
  0x30   :  { %451 = vrot.lane.b32.xlu1 %v450_v28, %s3291_s17 }
  0x32   :  { %468 = vrot.lane.b32.xlu0 %v2588_v30, %s3291_s17 }
  0x34   :  { %478 = vrot.lane.b32.xlu1 %v3331_v0, %s3292_s27 }
  0x36   :  { %495 = vrot.lane.b32.xlu0 %v494_v35, %s3292_s27  ;;  %v2932_v35 = vld [vmem:[%s6513_s0 + $0x85] ss:$-15 sm:%s1485_s14]   ;;  %s1532_s14 = smov 192 }
  0x38   :  { %512 = vrot.lane.b32.xlu1 %v3345_v4, %s3292_s27 }
  0x3a   :  { %534 = vrot.lane.b32.xlu0 %v533_v38, %s3292_s27 }
  0x3c   :  { %551 = vrot.lane.b32.xlu1 %v2616_v40, %s3292_s27  ;;  %s1462_s27 = smov 192 }
  0x3d   :  { %v2925_v31 = vld [vmem:[%s6513_s0 + $0x51] ss:$-9 sm:%s1462_s27]  }
  0x3e   :  { %561 = vrot.lane.b32.xlu0 %v3331_v0, %s3293_s10 }
  0x40   :  { %578 = vrot.lane.b32.xlu1 %v577_v3, %s3293_s10  ;;  %v2949_v3 = vld [vmem:[%s6513_s0 + $0x51] ss:$-9 sm:%s1532_s14]   ;;  %s1812_s14 = smov 192 }
  0x42   :  { %595 = vrot.lane.b32.xlu0 %v3345_v4, %s3293_s10 }
  0x44   :  { %617 = vrot.lane.b32.xlu1 %v616_v9, %s3293_s10  ;;  %v1553_v9 = vsel %vm1342_vm5, %v2955_v42, %v3946_v63 }
  0x46   :  { %634 = vrot.lane.b32.xlu0 %v2644_v47, %s3293_s10  ;;  %s3300_s10 = smov 72   ;;  %v2956_v47 = vld [vmem:[%s6513_s0 + $0x85] ss:$-15 sm:%s1555_s23]  }
  0x48   :  { %644 = vrot.lane.b32.xlu1 %v3331_v0, %s3294_s13 }
  0x4a   :  { %661 = vrot.lane.b32.xlu0 %v3403_v24, %s3294_s13  ;;  %v2672_v24 = vld [vmem:[%s6513_s0 + $0x30] ss:$2 sm:$0x7]  }
  0x4c   :  { %678 = vrot.lane.b32.xlu1 %v3345_v4, %s3294_s13 }
  0x4e   :  { %700 = vrot.lane.b32.xlu0 %v3426_v32, %s3294_s13  ;;  %v2728_v32 = vld [vmem:[%s6513_s0 + $0x30] ss:$2 sm:$0x7]  }
  0x50   :  { %717 = vrot.lane.b32.xlu1 %v2672_v24, %s3294_s13 }
  0x52   :  { %727 = vrot.lane.b32.xlu0 %v3331_v0, %s3295_s16 }
  0x54   :  { %744 = vrot.lane.b32.xlu1 %v3417_v29, %s3295_s16  ;;  %v2700_v29 = vld [vmem:[%s6513_s0 + $0x30] ss:$2 sm:$0x7]  }
  0x56   :  { %761 = vrot.lane.b32.xlu0 %v3345_v4, %s3295_s16 }
  0x58   :  { %783 = vrot.lane.b32.xlu1 %v3447_v39, %s3295_s16 }
  0x5a   :  { %800 = vrot.lane.b32.xlu0 %v2700_v29, %s3295_s16  ;;  %s3316_s16 = smov 8  }
  0x5c   :  { %810 = vrot.lane.b32.xlu1 %v3331_v0, %s3296_s19 }
  0x5e   :  { %827 = vrot.lane.b32.xlu0 %v3440_v37, %s3296_s19  ;;  %v2756_v37 = vld [vmem:[%s6513_s0 + $0x30] ss:$2 sm:$0x7]  }
  0x60   :  { %844 = vrot.lane.b32.xlu1 %v3345_v4, %s3296_s19 }
  0x62   :  { %866 = vrot.lane.b32.xlu0 %v3468_v46, %s3296_s19 }
  0x64   :  { %883 = vrot.lane.b32.xlu1 %v2728_v32, %s3296_s19  ;;  %s1620_s19 = smov 48  ;;  %v1558_v32 = vsel %vm1324_vm6, %v2956_v47, %v1553_v9 }
  0x66   :  { %893 = vrot.lane.b32.xlu0 %v3331_v0, %s3297_s8 }
  0x68   :  { %910 = vrot.lane.b32.xlu1 %v3459_v43, %s3297_s8  ;;  %v2784_v43 = vld [vmem:[%s6513_s0 + $0x30] ss:$2 sm:$0x7]  }
  0x6a   :  { %927 = vrot.lane.b32.xlu0 %v3345_v4, %s3297_s8 }
  0x6c   :  { %949 = vrot.lane.b32.xlu1 %v3497_v55, %s3297_s8 }
  0x6e   :  { %966 = vrot.lane.b32.xlu0 %v2756_v37, %s3297_s8  ;;  %s2040_s8 = smov 48 }
  0x70   :  { %976 = vrot.lane.b32.xlu1 %v3331_v0, %s3298_s24 }
  0x72   :  { %993 = vrot.lane.b32.xlu0 %v3484_v51, %s3298_s24 }
  0x74   :  { %v64_v39 = vpop.permute.xlu0 %63   ;;  %1010 = vrot.lane.b32.xlu1 %v3345_v4, %s3298_s24 }
  0x75   :  { %2452 = vst.msk [vmem:[%s6514_s1 + $0x1] ss:$208 sm:$0x3] %vm3_vm4, %v64_v39   ;;  %2453 = vst.msk [vmem:[%s6514_s1 + $0x1] ss:$208 sm:$0xc] %vm3_vm4, %v64_v39  }
  0x76   :  { %2454 = vst.msk [vmem:[%s6514_s1 + $0xc81] ss:$-592 sm:$0x30] %vm3_vm4, %v64_v39   ;;  %2455 = vst.msk [vmem:[%s6514_s1 - $0xe7f] ss:$624 sm:$0xc0] %vm3_vm4, %v64_v39   ;;  %1032 = vrot.lane.b32.xlu0 %v3519_v62, %s3298_s24  ;;  %v98_v46 = vpop.permute.xlu1 %97  }
  0x77   :  { %2464 = vst.msk [vmem:[%s6514_s1 + $0x381] ss:$-560 sm:$0x3] %vm3_vm4, %v98_v46   ;;  %2465 = vst.msk [vmem:[%s6514_s1 - $0x4bf] ss:$656 sm:$0xc] %vm3_vm4, %v98_v46  }
  0x78   :  { %2466 = vst.msk [vmem:[%s6514_s1 + $0x441] ss:$-144 sm:$0x30] %vm3_vm4, %v98_v46   ;;  %2467 = vst.msk [vmem:[%s6514_s1 + $0x701] ss:$-144 sm:$0xc0] %vm3_vm4, %v98_v46   ;;  %v81_v48 = vpop.permute.xlu0 %80   ;;  %1049 = vrot.lane.b32.xlu1 %v2784_v43, %s3298_s24 }
  0x79   :  { %2458 = vst.msk [vmem:[%s6514_s1 + $0x1c1] ss:$-176 sm:$0x3] %vm3_vm4, %v81_v48   ;;  %2459 = vst.msk [vmem:[%s6514_s1 + $0x4c1] ss:$-176 sm:$0xc] %vm3_vm4, %v81_v48  }
  0x7a   :  { %2460 = vst.msk [vmem:[%s6514_s1 - $0x37f] ss:$240 sm:$0x30] %vm3_vm4, %v81_v48   ;;  %2461 = vst.msk [vmem:[%s6514_s1 - $0x3bf] ss:$240 sm:$0xc0] %vm3_vm4, %v81_v48   ;;  %1059 = vrot.lane.b32.xlu0 %v3331_v0, %s3299_s22  ;;  %v120_v49 = vpop.permute.xlu1 %119  }
  0x7b   :  { %2470 = vst.msk [vmem:[%s6514_s1 + $0x81] ss:$272 sm:$0x3] %vm3_vm4, %v120_v49   ;;  %2471 = vst.msk [vmem:[%s6514_s1 + $0x1] ss:$272 sm:$0xc] %vm3_vm4, %v120_v49  }
  0x7c   :  { %2472 = vst.msk [vmem:[%s6514_s1 + $0x3bd] sm:$0x10] %vm3_vm4, %v120_v49   ;;  %2473 = vst.msk [vmem:[%s6514_s1 + $0x9c] sm:$0x20] %vm3_vm4, %v120_v49   ;;  %v137_v50 = vpop.permute.xlu0 %136   ;;  %1076 = vrot.lane.b32.xlu1 %v3512_v60, %s3299_s22  ;;  %s1415_s24 = smov 192 }
  0x7d   :  { %2474 = vst.msk [vmem:[%s6514_s1 + $0x23b] sm:$0x40] %vm3_vm4, %v120_v49   ;;  %2475 = vst.msk [vmem:[%s6514_s1 + $0x3da] sm:$0x80] %vm3_vm4, %v120_v49   ;;  %v2908_v22 = vld [vmem:[%s6513_s0 + $0x85] ss:$-15 sm:%s1415_s24]  }
  0x7e   :  { %2477 = vst.msk [vmem:[%s6514_s1 + $0xc1] sm:$0x1] %vm3_vm4, %v137_v50   ;;  %2478 = vst.msk [vmem:[%s6514_s1 + $0x260] sm:$0x2] %vm3_vm4, %v137_v50   ;;  %1093 = vrot.lane.b32.xlu0 %v3345_v4, %s3299_s22  ;;  %v147_v51 = vpop.permute.xlu1 %146   ;;  %v1418_v26 = vsel %vm1324_vm6, %v2908_v22, %v1413_v21  ;;  %s1695_s24 = smov 192  ;;  %v1833_v21 = vsel %vm1342_vm5, %v3051_v17, %v3946_v63 }
  0x7f   :  { %2479 = vst.msk [vmem:[%s6514_s1 + $0x3ff] sm:$0x4] %vm3_vm4, %v137_v50   ;;  %2480 = vst.msk [vmem:[%s6514_s1 + $0x2] ss:$208 sm:$0x3] %vm3_vm4, %v147_v51  }
  0x80   :  { %2481 = vst.msk [vmem:[%s6514_s1 + $0x2] ss:$208 sm:$0xc] %vm3_vm4, %v147_v51   ;;  %2482 = vst.msk [vmem:[%s6514_s1 + $0xc82] ss:$-592 sm:$0x30] %vm3_vm4, %v147_v51   ;;  %v164_v53 = vpop.permute.xlu0 %163   ;;  %1115 = vrot.lane.b32.xlu1 %v3540_v8, %s3299_s22 }
  0x81   :  { %2483 = vst.msk [vmem:[%s6514_s1 - $0xe7e] ss:$624 sm:$0xc0] %vm3_vm4, %v147_v51   ;;  %2486 = vst.msk [vmem:[%s6514_s1 + $0x1c2] ss:$-176 sm:$0x3] %vm3_vm4, %v164_v53  }
  0x82   :  { %2487 = vst.msk [vmem:[%s6514_s1 + $0x4c2] ss:$-176 sm:$0xc] %vm3_vm4, %v164_v53   ;;  %2488 = vst.msk [vmem:[%s6514_s1 - $0x37e] ss:$240 sm:$0x30] %vm3_vm4, %v164_v53   ;;  %1132 = vrot.lane.b32.xlu0 %v2812_v52, %s3299_s22  ;;  %v181_v54 = vpop.permute.xlu1 %180  }
  0x83   :  { %2489 = vst.msk [vmem:[%s6514_s1 - $0x3be] ss:$240 sm:$0xc0] %vm3_vm4, %v164_v53   ;;  %2492 = vst.msk [vmem:[%s6514_s1 + $0x382] ss:$-560 sm:$0x3] %vm3_vm4, %v181_v54  }
  0x84   :  { %2493 = vst.msk [vmem:[%s6514_s1 - $0x4be] ss:$656 sm:$0xc] %vm3_vm4, %v181_v54   ;;  %2494 = vst.msk [vmem:[%s6514_s1 + $0x442] ss:$-144 sm:$0x30] %vm3_vm4, %v181_v54   ;;  %v203_v55 = vpop.permute.xlu0 %202   ;;  %1142 = vrot.lane.b32.xlu1 %v3331_v0, %s3300_s10 }
  0x85   :  { %2495 = vst.msk [vmem:[%s6514_s1 + $0x702] ss:$-144 sm:$0xc0] %vm3_vm4, %v181_v54   ;;  %2498 = vst.msk [vmem:[%s6514_s1 + $0x82] ss:$272 sm:$0x3] %vm3_vm4, %v203_v55  }
  0x86   :  { %2499 = vst.msk [vmem:[%s6514_s1 + $0x2] ss:$272 sm:$0xc] %vm3_vm4, %v203_v55   ;;  %2500 = vst.msk [vmem:[%s6514_s1 + $0x3be] sm:$0x10] %vm3_vm4, %v203_v55   ;;  %1159 = vrot.lane.b32.xlu0 %v3531_v5, %s3300_s10  ;;  %v220_v56 = vpop.permute.xlu1 %219  }
  0x87   :  { %2501 = vst.msk [vmem:[%s6514_s1 + $0x9d] sm:$0x20] %vm3_vm4, %v203_v55   ;;  %2502 = vst.msk [vmem:[%s6514_s1 + $0x23c] sm:$0x40] %vm3_vm4, %v203_v55   ;;  %v2979_v39 = vld [vmem:[%s6513_s0 + $0x65] ss:$-15 sm:%s1620_s19]  }
  0x88   :  { %2503 = vst.msk [vmem:[%s6514_s1 + $0x3db] sm:$0x80] %vm3_vm4, %v203_v55   ;;  %2505 = vst.msk [vmem:[%s6514_s1 + $0xc2] sm:$0x1] %vm3_vm4, %v220_v56   ;;  %v230_v57 = vpop.permute.xlu0 %229   ;;  %1176 = vrot.lane.b32.xlu1 %v3345_v4, %s3300_s10  ;;  %v1623_v49 = vsel %vm1342_vm5, %v2979_v39, %v3946_v63  ;;  %s1760_s19 = smov 48 }
  0x89   :  { %2506 = vst.msk [vmem:[%s6514_s1 + $0x261] sm:$0x2] %vm3_vm4, %v220_v56   ;;  %2507 = vst.msk [vmem:[%s6514_s1 + $0x400] sm:$0x4] %vm3_vm4, %v220_v56   ;;  %v2973_v46 = vld [vmem:[%s6513_s0 + $0x51] ss:$-9 sm:%s1602_s28]  }
  0x8a   :  { %2508 = vst.msk [vmem:[%s6514_s1 + $0x3] ss:$208 sm:$0x3] %vm3_vm4, %v230_v57   ;;  %2509 = vst.msk [vmem:[%s6514_s1 + $0x3] ss:$208 sm:$0xc] %vm3_vm4, %v230_v57   ;;  %1198 = vrot.lane.b32.xlu0 %v3560_v16, %s3300_s10  ;;  %v247_v59 = vpop.permute.xlu1 %246  }
  0x8b   :  { %2510 = vst.msk [vmem:[%s6514_s1 + $0xc83] ss:$-592 sm:$0x30] %vm3_vm4, %v230_v57   ;;  %2511 = vst.msk [vmem:[%s6514_s1 - $0xe7d] ss:$624 sm:$0xc0] %vm3_vm4, %v230_v57  }
  0x8c   :  { %2514 = vst.msk [vmem:[%s6514_s1 + $0x1c3] ss:$-176 sm:$0x3] %vm3_vm4, %v247_v59   ;;  %2515 = vst.msk [vmem:[%s6514_s1 + $0x4c3] ss:$-176 sm:$0xc] %vm3_vm4, %v247_v59   ;;  %v264_v60 = vpop.permute.xlu0 %263   ;;  %1215 = vrot.lane.b32.xlu1 %v2840_v58, %s3300_s10 }
  0x8d   :  { %2516 = vst.msk [vmem:[%s6514_s1 - $0x37d] ss:$240 sm:$0x30] %vm3_vm4, %v247_v59   ;;  %2517 = vst.msk [vmem:[%s6514_s1 - $0x3bd] ss:$240 sm:$0xc0] %vm3_vm4, %v247_v59  }
  0x8e   :  { %2520 = vst.msk [vmem:[%s6514_s1 + $0x383] ss:$-560 sm:$0x3] %vm3_vm4, %v264_v60   ;;  %2521 = vst.msk [vmem:[%s6514_s1 - $0x4bd] ss:$656 sm:$0xc] %vm3_vm4, %v264_v60   ;;  %1225 = vrot.lane.b32.xlu0 %v3331_v0, %s3301_s26  ;;  %v286_v0 = vpop.permute.xlu1 %285  }
  0x8f   :  { %2522 = vst.msk [vmem:[%s6514_s1 + $0x443] ss:$-144 sm:$0x30] %vm3_vm4, %v264_v60   ;;  %2523 = vst.msk [vmem:[%s6514_s1 + $0x703] ss:$-144 sm:$0xc0] %vm3_vm4, %v264_v60  }
  0x90   :  { %2526 = vst.msk [vmem:[%s6514_s1 + $0x83] ss:$272 sm:$0x3] %vm3_vm4, %v286_v0   ;;  %2527 = vst.msk [vmem:[%s6514_s1 + $0x3] ss:$272 sm:$0xc] %vm3_vm4, %v286_v0   ;;  %v303_v61 = vpop.permute.xlu0 %302   ;;  %1242 = vrot.lane.b32.xlu1 %v3553_v14, %s3301_s26  ;;  %v1348_v14 = vsel %vm1324_vm6, %v2884_v11, %v1343_v10 }
  0x91   :  { %2528 = vst.msk [vmem:[%s6514_s1 + $0x3bf] sm:$0x10] %vm3_vm4, %v286_v0   ;;  %2529 = vst.msk [vmem:[%s6514_s1 + $0x9e] sm:$0x20] %vm3_vm4, %v286_v0   ;;  %s1480_s10 = smov 48  ;;  %s1835_s28 = smov 192 }
  0x92   :  { %2530 = vst.msk [vmem:[%s6514_s1 + $0x23d] sm:$0x40] %vm3_vm4, %v286_v0   ;;  %2531 = vst.msk [vmem:[%s6514_s1 + $0x3dc] sm:$0x80] %vm3_vm4, %v286_v0   ;;  %1259 = vrot.lane.b32.xlu0 %v3345_v4, %s3301_s26  ;;  %v313_v4 = vpop.permute.xlu1 %312  }
  0x93   :  { %2533 = vst.msk [vmem:[%s6514_s1 + $0xc3] sm:$0x1] %vm3_vm4, %v303_v61   ;;  %2534 = vst.msk [vmem:[%s6514_s1 + $0x262] sm:$0x2] %vm3_vm4, %v303_v61   ;;  %v2931_v28 = vld [vmem:[%s6513_s0 + $0x65] ss:$-15 sm:%s1480_s10]  }
  0x94   :  { %2535 = vst.msk [vmem:[%s6514_s1 + $0x401] sm:$0x4] %vm3_vm4, %v303_v61   ;;  %v2868_v62 = vld [vmem:[%s6513_s0 + $0x30] ss:$2 sm:$0x7]   ;;  %v330_v2 = vpop.permute.xlu0 %329   ;;  %1281 = vrot.lane.b32.xlu1 %v3570_v20, %s3301_s26  ;;  %v1483_v34 = vsel %vm1342_vm5, %v2931_v28, %v3946_v63  ;;  %s3307_s10 = smov 44  }
  0x95   :  { %2536 = vst.msk [vmem:[%s6514_s1 + $0x4] ss:$208 sm:$0x3] %vm3_vm4, %v313_v4   ;;  %2537 = vst.msk [vmem:[%s6514_s1 + $0x4] ss:$208 sm:$0xc] %vm3_vm4, %v313_v4   ;;  %v1488_v40 = vsel %vm1324_vm6, %v2932_v35, %v1483_v34 }
  0x96   :  { %2538 = vst.msk [vmem:[%s6514_s1 + $0xc84] ss:$-592 sm:$0x30] %vm3_vm4, %v313_v4   ;;  %2539 = vst.msk [vmem:[%s6514_s1 - $0xe7c] ss:$624 sm:$0xc0] %vm3_vm4, %v313_v4   ;;  %1298 = vrot.lane.b32.xlu0 %v2868_v62, %s3301_s26  ;;  %v347_v8 = vpop.permute.xlu1 %346  }
  0x97   :  { %v3972_v5 = vld.sshfl [vmem:[%s6513_s0 + $0xa] sm:$0xff pattern:$0x666f2907]   ;;  %2542 = vst.msk [vmem:[%s6514_s1 + $0x1c4] ss:$-176 sm:$0x3] %vm3_vm4, %v330_v2  }
  0x98   :  { %2543 = vst.msk [vmem:[%s6514_s1 + $0x4c4] ss:$-176 sm:$0xc] %vm3_vm4, %v330_v2   ;;  %2544 = vst.msk [vmem:[%s6514_s1 - $0x37c] ss:$240 sm:$0x30] %vm3_vm4, %v330_v2   ;;  %v1325_v12 = vsel %vm1324_vm6, %v2877_v6, %v3972_v5  ;;  %v369_v13 = vpop.permute.xlu0 %368   ;;  %1308 = vrot.lane.b32.xlu1 %v3996_v7, %s3302_s29  ;;  %v1395_v23 = vsel %vm1324_vm6, %v2901_v19, %v3972_v5  ;;  %v1465_v36 = vsel %vm1324_vm6, %v2925_v31, %v3972_v5 }
  0x99   :  { %2545 = vst.msk [vmem:[%s6514_s1 - $0x3bc] ss:$240 sm:$0xc0] %vm3_vm4, %v330_v2   ;;  %2548 = vst.msk [vmem:[%s6514_s1 + $0x384] ss:$-560 sm:$0x3] %vm3_vm4, %v347_v8   ;;  %v1535_v24 = vsel %vm1324_vm6, %v2949_v3, %v3972_v5  ;;  %v1605_v51 = vsel %vm1324_vm6, %v2973_v46, %v3972_v5 }
  0x9a   :  { %2549 = vst.msk [vmem:[%s6514_s1 - $0x4bc] ss:$656 sm:$0xc] %vm3_vm4, %v347_v8   ;;  %2550 = vst.msk [vmem:[%s6514_s1 + $0x444] ss:$-144 sm:$0x30] %vm3_vm4, %v347_v8   ;;  %1326 = vrot.lane.b32.xlu0 %v1325_v12, %s3302_s29  ;;  %v386_v15 = vpop.permute.xlu1 %385  }
  0x9b   :  { %2551 = vst.msk [vmem:[%s6514_s1 + $0x704] ss:$-144 sm:$0xc0] %vm3_vm4, %v347_v8   ;;  %2554 = vst.msk [vmem:[%s6514_s1 + $0x84] ss:$272 sm:$0x3] %vm3_vm4, %v369_v13  }
  0x9c   :  { %2555 = vst.msk [vmem:[%s6514_s1 + $0x4] ss:$272 sm:$0xc] %vm3_vm4, %v369_v13   ;;  %2556 = vst.msk [vmem:[%s6514_s1 + $0x3c0] sm:$0x10] %vm3_vm4, %v369_v13   ;;  %v396_v18 = vpop.permute.xlu0 %395   ;;  %1349 = vrot.lane.b32.xlu1 %v1348_v14, %s3302_s29  ;;  %s3305_s26 = smov 52  }
  0x9d   :  { %2557 = vst.msk [vmem:[%s6514_s1 + $0x9f] sm:$0x20] %vm3_vm4, %v369_v13   ;;  %2558 = vst.msk [vmem:[%s6514_s1 + $0x23e] sm:$0x40] %vm3_vm4, %v369_v13   ;;  %v3003_v55 = vld [vmem:[%s6513_s0 + $0x65] ss:$-15 sm:%s1690_s7]  }
  0x9e   :  { %2559 = vst.msk [vmem:[%s6514_s1 + $0x3dd] sm:$0x80] %vm3_vm4, %v369_v13   ;;  %2561 = vst.msk [vmem:[%s6514_s1 + $0xc4] sm:$0x1] %vm3_vm4, %v386_v15   ;;  %v413_v20 = vpop.permute.xlu1 %412   ;;  %v2997_v57 = vld [vmem:[%s6513_s0 + $0x51] ss:$-9 sm:%s1672_s15]   ;;  %v1693_v59 = vsel %vm1342_vm5, %v3003_v55, %v3946_v63 }
  0x9f   :  { %2562 = vst.msk [vmem:[%s6514_s1 + $0x263] sm:$0x2] %vm3_vm4, %v386_v15   ;;  %2563 = vst.msk [vmem:[%s6514_s1 + $0x402] sm:$0x4] %vm3_vm4, %v386_v15   ;;  %v3004_v60 = vld [vmem:[%s6513_s0 + $0x85] ss:$-15 sm:%s1695_s24]   ;;  %v1675_v0 = vsel %vm1324_vm6, %v2997_v57, %v3972_v5 }
  0xa0   :  { %v4063_v16 = vld.sshfl [vmem:[%s6513_s0 + $0x20] sm:$0xff pattern:$0xccca8420]   ;;  %2564 = vst.msk [vmem:[%s6514_s1 + $0x5] ss:$208 sm:$0x3] %vm3_vm4, %v396_v18   ;;  %v430_v25 = vpop.permute.xlu0 %429   ;;  %1378 = vrot.lane.b32.xlu1 %v3996_v7, %s3303_s18  ;;  %v1698_v4 = vsel %vm1324_vm6, %v3004_v60, %v1693_v59 }
  0xa1   :  { %2565 = vst.msk [vmem:[%s6514_s1 + $0x5] ss:$208 sm:$0xc] %vm3_vm4, %v396_v18   ;;  %2566 = vst.msk [vmem:[%s6514_s1 + $0xc85] ss:$-592 sm:$0x30] %vm3_vm4, %v396_v18   ;;  %1362 = vrot.lane.b32.xlu0 %v4063_v16, %s3302_s29 }
  0xa2   :  { %2567 = vst.msk [vmem:[%s6514_s1 - $0xe7b] ss:$624 sm:$0xc0] %vm3_vm4, %v396_v18   ;;  %2570 = vst.msk [vmem:[%s6514_s1 + $0x1c5] ss:$-176 sm:$0x3] %vm3_vm4, %v413_v20   ;;  %v452_v27 = vpop.permute.xlu1 %451  }
  0xa3   :  { %2571 = vst.msk [vmem:[%s6514_s1 + $0x4c5] ss:$-176 sm:$0xc] %vm3_vm4, %v413_v20   ;;  %2572 = vst.msk [vmem:[%s6514_s1 - $0x37b] ss:$240 sm:$0x30] %vm3_vm4, %v413_v20  }
  0xa4   :  { %2573 = vst.msk [vmem:[%s6514_s1 - $0x3bb] ss:$240 sm:$0xc0] %vm3_vm4, %v413_v20   ;;  %2576 = vst.msk [vmem:[%s6514_s1 + $0x385] ss:$-560 sm:$0x3] %vm3_vm4, %v430_v25   ;;  %v469_v30 = vpop.permute.xlu0 %468   ;;  %1419 = vrot.lane.b32.xlu1 %v1418_v26, %s3303_s18 }
  0xa5   :  { %2577 = vst.msk [vmem:[%s6514_s1 - $0x4bb] ss:$656 sm:$0xc] %vm3_vm4, %v430_v25   ;;  %2578 = vst.msk [vmem:[%s6514_s1 + $0x445] ss:$-144 sm:$0x30] %vm3_vm4, %v430_v25   ;;  %1396 = vrot.lane.b32.xlu0 %v1395_v23, %s3303_s18 }
  0xa6   :  { %2579 = vst.msk [vmem:[%s6514_s1 + $0x705] ss:$-144 sm:$0xc0] %vm3_vm4, %v430_v25   ;;  %2582 = vst.msk [vmem:[%s6514_s1 + $0x85] ss:$272 sm:$0x3] %vm3_vm4, %v452_v27   ;;  %v479_v33 = vpop.permute.xlu1 %478  }
  0xa7   :  { %2583 = vst.msk [vmem:[%s6514_s1 + $0x5] ss:$272 sm:$0xc] %vm3_vm4, %v452_v27   ;;  %2584 = vst.msk [vmem:[%s6514_s1 + $0x3c1] sm:$0x10] %vm3_vm4, %v452_v27   ;;  %s3306_s29 = smov 48  }
  0xa8   :  { %2585 = vst.msk [vmem:[%s6514_s1 + $0xa0] sm:$0x20] %vm3_vm4, %v452_v27   ;;  %2586 = vst.msk [vmem:[%s6514_s1 + $0x23f] sm:$0x40] %vm3_vm4, %v452_v27   ;;  %v496_v38 = vpop.permute.xlu0 %495   ;;  %1448 = vrot.lane.b32.xlu1 %v3996_v7, %s3304_s3  ;;  %s1970_s7 = smov 48  ;;  %s1952_s15 = smov 192 }
  0xa9   :  { %2587 = vst.msk [vmem:[%s6514_s1 + $0x3de] sm:$0x80] %vm3_vm4, %v452_v27   ;;  %2589 = vst.msk [vmem:[%s6514_s1 + $0xc5] sm:$0x1] %vm3_vm4, %v469_v30   ;;  %1432 = vrot.lane.b32.xlu0 %v4063_v16, %s3303_s18  ;;  %s3315_s18 = smov 12  }
  0xaa   :  { %2590 = vst.msk [vmem:[%s6514_s1 + $0x264] sm:$0x2] %vm3_vm4, %v469_v30   ;;  %2591 = vst.msk [vmem:[%s6514_s1 + $0x403] sm:$0x4] %vm3_vm4, %v469_v30   ;;  %v513_v41 = vpop.permute.xlu1 %512   ;;  %v3027_v1 = vld [vmem:[%s6513_s0 + $0x65] ss:$-15 sm:%s1760_s19]  }
  0xab   :  { %2592 = vst.msk [vmem:[%s6514_s1 + $0x6] ss:$208 sm:$0x3] %vm3_vm4, %v479_v33   ;;  %2593 = vst.msk [vmem:[%s6514_s1 + $0x6] ss:$208 sm:$0xc] %vm3_vm4, %v479_v33   ;;  %v1763_v10 = vsel %vm1342_vm5, %v3027_v1, %v3946_v63 }
  0xac   :  { %2594 = vst.msk [vmem:[%s6514_s1 + $0xc86] ss:$-592 sm:$0x30] %vm3_vm4, %v479_v33   ;;  %2595 = vst.msk [vmem:[%s6514_s1 - $0xe7a] ss:$624 sm:$0xc0] %vm3_vm4, %v479_v33   ;;  %v535_v44 = vpop.permute.xlu0 %534   ;;  %1489 = vrot.lane.b32.xlu1 %v1488_v40, %s3304_s3 }
  0xad   :  { %2598 = vst.msk [vmem:[%s6514_s1 + $0x1c6] ss:$-176 sm:$0x3] %vm3_vm4, %v496_v38   ;;  %2599 = vst.msk [vmem:[%s6514_s1 + $0x4c6] ss:$-176 sm:$0xc] %vm3_vm4, %v496_v38   ;;  %1466 = vrot.lane.b32.xlu0 %v1465_v36, %s3304_s3 }
  0xae   :  { %2600 = vst.msk [vmem:[%s6514_s1 - $0x37a] ss:$240 sm:$0x30] %vm3_vm4, %v496_v38   ;;  %2601 = vst.msk [vmem:[%s6514_s1 - $0x3ba] ss:$240 sm:$0xc0] %vm3_vm4, %v496_v38   ;;  %v552_v45 = vpop.permute.xlu1 %551  }
  0xaf   :  { %2604 = vst.msk [vmem:[%s6514_s1 + $0x386] ss:$-560 sm:$0x3] %vm3_vm4, %v513_v41   ;;  %2605 = vst.msk [vmem:[%s6514_s1 - $0x4ba] ss:$656 sm:$0xc] %vm3_vm4, %v513_v41  }
  0xb0   :  { %2606 = vst.msk [vmem:[%s6514_s1 + $0x446] ss:$-144 sm:$0x30] %vm3_vm4, %v513_v41   ;;  %2607 = vst.msk [vmem:[%s6514_s1 + $0x706] ss:$-144 sm:$0xc0] %vm3_vm4, %v513_v41   ;;  %v562_v29 = vpop.permute.xlu0 %561   ;;  %1518 = vrot.lane.b32.xlu1 %v3996_v7, %s3305_s26 }
  0xb1   :  { %2610 = vst.msk [vmem:[%s6514_s1 + $0x86] ss:$272 sm:$0x3] %vm3_vm4, %v535_v44   ;;  %2611 = vst.msk [vmem:[%s6514_s1 + $0x6] ss:$272 sm:$0xc] %vm3_vm4, %v535_v44   ;;  %1502 = vrot.lane.b32.xlu0 %v4063_v16, %s3304_s3 }
  0xb2   :  { %2612 = vst.msk [vmem:[%s6514_s1 + $0x3c2] sm:$0x10] %vm3_vm4, %v535_v44   ;;  %2613 = vst.msk [vmem:[%s6514_s1 + $0xa1] sm:$0x20] %vm3_vm4, %v535_v44   ;;  %v579_v37 = vpop.permute.xlu1 %578   ;;  %s1625_s3 = smov 192  ;;  %s2092_s19 = smov 192 }
  0xb3   :  { %2614 = vst.msk [vmem:[%s6514_s1 + $0x240] sm:$0x40] %vm3_vm4, %v535_v44   ;;  %2615 = vst.msk [vmem:[%s6514_s1 + $0x3df] sm:$0x80] %vm3_vm4, %v535_v44   ;;  %v2980_v50 = vld [vmem:[%s6513_s0 + $0x85] ss:$-15 sm:%s1625_s3]  }
  0xb4   :  { %2617 = vst.msk [vmem:[%s6514_s1 + $0xc6] sm:$0x1] %vm3_vm4, %v552_v45   ;;  %2618 = vst.msk [vmem:[%s6514_s1 + $0x265] sm:$0x2] %vm3_vm4, %v552_v45   ;;  %v596_v43 = vpop.permute.xlu0 %595   ;;  %1559 = vrot.lane.b32.xlu1 %v1558_v32, %s3305_s26  ;;  %v1628_v53 = vsel %vm1324_vm6, %v2980_v50, %v1623_v49  ;;  %s1905_s3 = smov 192 }
  0xb5   :  { %2619 = vst.msk [vmem:[%s6514_s1 + $0x404] sm:$0x4] %vm3_vm4, %v552_v45   ;;  %2620 = vst.msk [vmem:[%s6514_s1 + $0x7] ss:$208 sm:$0x3] %vm3_vm4, %v562_v29   ;;  %1536 = vrot.lane.b32.xlu0 %v1535_v24, %s3305_s26 }
  0xb6   :  { %2621 = vst.msk [vmem:[%s6514_s1 + $0x7] ss:$208 sm:$0xc] %vm3_vm4, %v562_v29   ;;  %2622 = vst.msk [vmem:[%s6514_s1 + $0xc87] ss:$-592 sm:$0x30] %vm3_vm4, %v562_v29   ;;  %v618_v48 = vpop.permute.xlu1 %617  }
  0xb7   :  { %2623 = vst.msk [vmem:[%s6514_s1 - $0xe79] ss:$624 sm:$0xc0] %vm3_vm4, %v562_v29   ;;  %2626 = vst.msk [vmem:[%s6514_s1 + $0x1c7] ss:$-176 sm:$0x3] %vm3_vm4, %v579_v37  }
  0xb8   :  { %2627 = vst.msk [vmem:[%s6514_s1 + $0x4c7] ss:$-176 sm:$0xc] %vm3_vm4, %v579_v37   ;;  %2628 = vst.msk [vmem:[%s6514_s1 - $0x379] ss:$240 sm:$0x30] %vm3_vm4, %v579_v37   ;;  %v635_v52 = vpop.permute.xlu0 %634   ;;  %1588 = vrot.lane.b32.xlu1 %v3996_v7, %s3306_s29 }
  0xb9   :  { %2629 = vst.msk [vmem:[%s6514_s1 - $0x3b9] ss:$240 sm:$0xc0] %vm3_vm4, %v579_v37   ;;  %2632 = vst.msk [vmem:[%s6514_s1 + $0x387] ss:$-560 sm:$0x3] %vm3_vm4, %v596_v43   ;;  %1572 = vrot.lane.b32.xlu0 %v4063_v16, %s3305_s26 }
  0xba   :  { %2633 = vst.msk [vmem:[%s6514_s1 - $0x4b9] ss:$656 sm:$0xc] %vm3_vm4, %v596_v43   ;;  %2634 = vst.msk [vmem:[%s6514_s1 + $0x447] ss:$-144 sm:$0x30] %vm3_vm4, %v596_v43   ;;  %v645_v54 = vpop.permute.xlu1 %644  }
  0xbb   :  { %2635 = vst.msk [vmem:[%s6514_s1 + $0x707] ss:$-144 sm:$0xc0] %vm3_vm4, %v596_v43   ;;  %2638 = vst.msk [vmem:[%s6514_s1 + $0x87] ss:$272 sm:$0x3] %vm3_vm4, %v618_v48  }
  0xbc   :  { %2639 = vst.msk [vmem:[%s6514_s1 + $0x7] ss:$272 sm:$0xc] %vm3_vm4, %v618_v48   ;;  %2640 = vst.msk [vmem:[%s6514_s1 + $0x3c3] sm:$0x10] %vm3_vm4, %v618_v48   ;;  %v662_v56 = vpop.permute.xlu0 %661   ;;  %1629 = vrot.lane.b32.xlu1 %v1628_v53, %s3306_s29  ;;  %s2180_s26 = smov 48 }
  0xbd   :  { %2641 = vst.msk [vmem:[%s6514_s1 + $0xa2] sm:$0x20] %vm3_vm4, %v618_v48   ;;  %2642 = vst.msk [vmem:[%s6514_s1 + $0x241] sm:$0x40] %vm3_vm4, %v618_v48   ;;  %1606 = vrot.lane.b32.xlu0 %v1605_v51, %s3306_s29 }
  0xbe   :  { %2643 = vst.msk [vmem:[%s6514_s1 + $0x3e0] sm:$0x80] %vm3_vm4, %v618_v48   ;;  %2645 = vst.msk [vmem:[%s6514_s1 + $0xc7] sm:$0x1] %vm3_vm4, %v635_v52   ;;  %v679_v58 = vpop.permute.xlu1 %678   ;;  %v3021_v6 = vld [vmem:[%s6513_s0 + $0x51] ss:$-9 sm:%s1742_s2]  }
  0xbf   :  { %2646 = vst.msk [vmem:[%s6514_s1 + $0x266] sm:$0x2] %vm3_vm4, %v635_v52   ;;  %2647 = vst.msk [vmem:[%s6514_s1 + $0x405] sm:$0x4] %vm3_vm4, %v635_v52   ;;  %v3028_v11 = vld [vmem:[%s6513_s0 + $0x85] ss:$-15 sm:%s1765_s12]   ;;  %v1745_v12 = vsel %vm1324_vm6, %v3021_v6, %v3972_v5 }
  0xc0   :  { %2648 = vst.msk [vmem:[%s6514_s1 + $0x8] ss:$208 sm:$0x3] %vm3_vm4, %v645_v54   ;;  %2649 = vst.msk [vmem:[%s6514_s1 + $0x8] ss:$208 sm:$0xc] %vm3_vm4, %v645_v54   ;;  %v701_v61 = vpop.permute.xlu0 %700   ;;  %1658 = vrot.lane.b32.xlu1 %v3996_v7, %s3307_s10  ;;  %v1768_v14 = vsel %vm1324_vm6, %v3028_v11, %v1763_v10 }
  0xc1   :  { %2650 = vst.msk [vmem:[%s6514_s1 + $0xc88] ss:$-592 sm:$0x30] %vm3_vm4, %v645_v54   ;;  %2651 = vst.msk [vmem:[%s6514_s1 - $0xe78] ss:$624 sm:$0xc0] %vm3_vm4, %v645_v54   ;;  %1642 = vrot.lane.b32.xlu0 %v4063_v16, %s3306_s29 }
  0xc2   :  { %2654 = vst.msk [vmem:[%s6514_s1 + $0x1c8] ss:$-176 sm:$0x3] %vm3_vm4, %v662_v56   ;;  %2655 = vst.msk [vmem:[%s6514_s1 + $0x4c8] ss:$-176 sm:$0xc] %vm3_vm4, %v662_v56   ;;  %v718_v62 = vpop.permute.xlu1 %717  }
  0xc3   :  { %2656 = vst.msk [vmem:[%s6514_s1 - $0x378] ss:$240 sm:$0x30] %vm3_vm4, %v662_v56   ;;  %2657 = vst.msk [vmem:[%s6514_s1 - $0x3b8] ss:$240 sm:$0xc0] %vm3_vm4, %v662_v56  }
  0xc4   :  { %2660 = vst.msk [vmem:[%s6514_s1 + $0x388] ss:$-560 sm:$0x3] %vm3_vm4, %v679_v58   ;;  %2661 = vst.msk [vmem:[%s6514_s1 - $0x4b8] ss:$656 sm:$0xc] %vm3_vm4, %v679_v58   ;;  %v728_v2 = vpop.permute.xlu0 %727   ;;  %1699 = vrot.lane.b32.xlu1 %v1698_v4, %s3307_s10 }
  0xc5   :  { %2662 = vst.msk [vmem:[%s6514_s1 + $0x448] ss:$-144 sm:$0x30] %vm3_vm4, %v679_v58   ;;  %2663 = vst.msk [vmem:[%s6514_s1 + $0x708] ss:$-144 sm:$0xc0] %vm3_vm4, %v679_v58   ;;  %1676 = vrot.lane.b32.xlu0 %v1675_v0, %s3307_s10 }
  0xc6   :  { %2666 = vst.msk [vmem:[%s6514_s1 + $0x88] ss:$272 sm:$0x3] %vm3_vm4, %v701_v61   ;;  %2667 = vst.msk [vmem:[%s6514_s1 + $0x8] ss:$272 sm:$0xc] %vm3_vm4, %v701_v61   ;;  %v745_v8 = vpop.permute.xlu1 %744  }
  0xc7   :  { %2668 = vst.msk [vmem:[%s6514_s1 + $0x3c4] sm:$0x10] %vm3_vm4, %v701_v61   ;;  %2669 = vst.msk [vmem:[%s6514_s1 + $0xa3] sm:$0x20] %vm3_vm4, %v701_v61   ;;  %v3045_v19 = vld [vmem:[%s6513_s0 + $0x51] ss:$-9 sm:%s1812_s14]  }
  0xc8   :  { %2670 = vst.msk [vmem:[%s6514_s1 + $0x242] sm:$0x40] %vm3_vm4, %v701_v61   ;;  %2671 = vst.msk [vmem:[%s6514_s1 + $0x3e1] sm:$0x80] %vm3_vm4, %v701_v61   ;;  %v762_v13 = vpop.permute.xlu0 %761   ;;  %1728 = vrot.lane.b32.xlu1 %v3996_v7, %s3308_s4  ;;  %v1815_v23 = vsel %vm1324_vm6, %v3045_v19, %v3972_v5  ;;  %s2045_s12 = smov 192  ;;  %s3314_s29 = smov 16  }
  0xc9   :  { %2673 = vst.msk [vmem:[%s6514_s1 + $0xc8] sm:$0x1] %vm3_vm4, %v718_v62   ;;  %2674 = vst.msk [vmem:[%s6514_s1 + $0x267] sm:$0x2] %vm3_vm4, %v718_v62   ;;  %1712 = vrot.lane.b32.xlu0 %v4063_v16, %s3307_s10  ;;  %s3311_s10 = smov 28   ;;  %s2325_s14 = smov 192 }
  0xca   :  { %2675 = vst.msk [vmem:[%s6514_s1 + $0x406] sm:$0x4] %vm3_vm4, %v718_v62   ;;  %2676 = vst.msk [vmem:[%s6514_s1 + $0x9] ss:$208 sm:$0x3] %vm3_vm4, %v728_v2   ;;  %v784_v15 = vpop.permute.xlu1 %783  }
  0xcb   :  { %2677 = vst.msk [vmem:[%s6514_s1 + $0x9] ss:$208 sm:$0xc] %vm3_vm4, %v728_v2   ;;  %2678 = vst.msk [vmem:[%s6514_s1 + $0xc89] ss:$-592 sm:$0x30] %vm3_vm4, %v728_v2  }
  0xcc   :  { %2679 = vst.msk [vmem:[%s6514_s1 - $0xe77] ss:$624 sm:$0xc0] %vm3_vm4, %v728_v2   ;;  %2682 = vst.msk [vmem:[%s6514_s1 + $0x1c9] ss:$-176 sm:$0x3] %vm3_vm4, %v745_v8   ;;  %v801_v18 = vpop.permute.xlu0 %800   ;;  %1769 = vrot.lane.b32.xlu1 %v1768_v14, %s3308_s4 }
  0xcd   :  { %2683 = vst.msk [vmem:[%s6514_s1 + $0x4c9] ss:$-176 sm:$0xc] %vm3_vm4, %v745_v8   ;;  %2684 = vst.msk [vmem:[%s6514_s1 - $0x377] ss:$240 sm:$0x30] %vm3_vm4, %v745_v8   ;;  %1746 = vrot.lane.b32.xlu0 %v1745_v12, %s3308_s4 }
  0xce   :  { %2685 = vst.msk [vmem:[%s6514_s1 - $0x3b7] ss:$240 sm:$0xc0] %vm3_vm4, %v745_v8   ;;  %2688 = vst.msk [vmem:[%s6514_s1 + $0x389] ss:$-560 sm:$0x3] %vm3_vm4, %v762_v13   ;;  %v811_v20 = vpop.permute.xlu1 %810  }
  0xcf   :  { %2689 = vst.msk [vmem:[%s6514_s1 - $0x4b7] ss:$656 sm:$0xc] %vm3_vm4, %v762_v13   ;;  %2690 = vst.msk [vmem:[%s6514_s1 + $0x449] ss:$-144 sm:$0x30] %vm3_vm4, %v762_v13  }
  0xd0   :  { %2691 = vst.msk [vmem:[%s6514_s1 + $0x709] ss:$-144 sm:$0xc0] %vm3_vm4, %v762_v13   ;;  %2694 = vst.msk [vmem:[%s6514_s1 + $0x89] ss:$272 sm:$0x3] %vm3_vm4, %v784_v15   ;;  %v828_v25 = vpop.permute.xlu0 %827   ;;  %1798 = vrot.lane.b32.xlu1 %v3996_v7, %s3309_s20 }
  0xd1   :  { %2695 = vst.msk [vmem:[%s6514_s1 + $0x9] ss:$272 sm:$0xc] %vm3_vm4, %v784_v15   ;;  %2696 = vst.msk [vmem:[%s6514_s1 + $0x3c5] sm:$0x10] %vm3_vm4, %v784_v15   ;;  %1782 = vrot.lane.b32.xlu0 %v4063_v16, %s3308_s4 }
  0xd2   :  { %2697 = vst.msk [vmem:[%s6514_s1 + $0xa4] sm:$0x20] %vm3_vm4, %v784_v15   ;;  %2698 = vst.msk [vmem:[%s6514_s1 + $0x243] sm:$0x40] %vm3_vm4, %v784_v15   ;;  %v3052_v22 = vld [vmem:[%s6513_s0 + $0x85] ss:$-15 sm:%s1835_s28]   ;;  %v845_v27 = vpop.permute.xlu1 %844  }
  0xd3   :  { %2699 = vst.msk [vmem:[%s6514_s1 + $0x3e2] sm:$0x80] %vm3_vm4, %v784_v15   ;;  %2701 = vst.msk [vmem:[%s6514_s1 + $0xc9] sm:$0x1] %vm3_vm4, %v801_v18   ;;  %v1838_v26 = vsel %vm1324_vm6, %v3052_v22, %v1833_v21  ;;  %s1882_s28 = smov 192 }
  0xd4   :  { %2702 = vst.msk [vmem:[%s6514_s1 + $0x268] sm:$0x2] %vm3_vm4, %v801_v18   ;;  %2703 = vst.msk [vmem:[%s6514_s1 + $0x407] sm:$0x4] %vm3_vm4, %v801_v18   ;;  %v3075_v28 = vld [vmem:[%s6513_s0 + $0x65] ss:$-15 sm:%s1900_s21]   ;;  %v867_v30 = vpop.permute.xlu0 %866  }
  0xd5   :  { %2704 = vst.msk [vmem:[%s6514_s1 + $0xa] ss:$208 sm:$0x3] %vm3_vm4, %v811_v20   ;;  %2705 = vst.msk [vmem:[%s6514_s1 + $0xa] ss:$208 sm:$0xc] %vm3_vm4, %v811_v20   ;;  %1816 = vrot.lane.b32.xlu0 %v1815_v23, %s3309_s20  ;;  %1839 = vrot.lane.b32.xlu1 %v1838_v26, %s3309_s20  ;;  %v1903_v34 = vsel %vm1342_vm5, %v3075_v28, %v3946_v63 }
  0xd6   :  { %2706 = vst.msk [vmem:[%s6514_s1 + $0xc8a] ss:$-592 sm:$0x30] %vm3_vm4, %v811_v20   ;;  %2707 = vst.msk [vmem:[%s6514_s1 - $0xe76] ss:$624 sm:$0xc0] %vm3_vm4, %v811_v20   ;;  %v884_v33 = vpop.permute.xlu1 %883  }
  0xd7   :  { %2710 = vst.msk [vmem:[%s6514_s1 + $0x1ca] ss:$-176 sm:$0x3] %vm3_vm4, %v828_v25   ;;  %2711 = vst.msk [vmem:[%s6514_s1 + $0x4ca] ss:$-176 sm:$0xc] %vm3_vm4, %v828_v25  }
  0xd8   :  { %2712 = vst.msk [vmem:[%s6514_s1 - $0x376] ss:$240 sm:$0x30] %vm3_vm4, %v828_v25   ;;  %2713 = vst.msk [vmem:[%s6514_s1 - $0x3b6] ss:$240 sm:$0xc0] %vm3_vm4, %v828_v25   ;;  %v894_v38 = vpop.permute.xlu0 %893  }
  0xd9   :  { %2716 = vst.msk [vmem:[%s6514_s1 + $0x38a] ss:$-560 sm:$0x3] %vm3_vm4, %v845_v27   ;;  %2717 = vst.msk [vmem:[%s6514_s1 - $0x4b6] ss:$656 sm:$0xc] %vm3_vm4, %v845_v27   ;;  %1852 = vrot.lane.b32.xlu0 %v4063_v16, %s3309_s20  ;;  %1868 = vrot.lane.b32.xlu1 %v3996_v7, %s3310_s6 }
  0xda   :  { %2718 = vst.msk [vmem:[%s6514_s1 + $0x44a] ss:$-144 sm:$0x30] %vm3_vm4, %v845_v27   ;;  %2719 = vst.msk [vmem:[%s6514_s1 + $0x70a] ss:$-144 sm:$0xc0] %vm3_vm4, %v845_v27   ;;  %v911_v41 = vpop.permute.xlu1 %910  }
  0xdb   :  { %v3069_v31 = vld [vmem:[%s6513_s0 + $0x51] ss:$-9 sm:%s1882_s28]   ;;  %2722 = vst.msk [vmem:[%s6514_s1 + $0x8a] ss:$272 sm:$0x3] %vm3_vm4, %v867_v30   ;;  %s1975_s20 = smov 192 }
  0xdc   :  { %2723 = vst.msk [vmem:[%s6514_s1 + $0xa] ss:$272 sm:$0xc] %vm3_vm4, %v867_v30   ;;  %2724 = vst.msk [vmem:[%s6514_s1 + $0x3c6] sm:$0x10] %vm3_vm4, %v867_v30   ;;  %v1885_v36 = vsel %vm1324_vm6, %v3069_v31, %v3972_v5  ;;  %v928_v44 = vpop.permute.xlu0 %927   ;;  %s3313_s21 = smov 20  }
  0xdd   :  { %2725 = vst.msk [vmem:[%s6514_s1 + $0xa5] sm:$0x20] %vm3_vm4, %v867_v30   ;;  %2726 = vst.msk [vmem:[%s6514_s1 + $0x244] sm:$0x40] %vm3_vm4, %v867_v30   ;;  %v3076_v35 = vld [vmem:[%s6513_s0 + $0x85] ss:$-15 sm:%s1905_s3]  }
  0xde   :  { %2727 = vst.msk [vmem:[%s6514_s1 + $0x3e3] sm:$0x80] %vm3_vm4, %v867_v30   ;;  %2729 = vst.msk [vmem:[%s6514_s1 + $0xca] sm:$0x1] %vm3_vm4, %v884_v33   ;;  %v1908_v40 = vsel %vm1324_vm6, %v3076_v35, %v1903_v34  ;;  %1886 = vrot.lane.b32.xlu0 %v1885_v36, %s3310_s6  ;;  %v950_v45 = vpop.permute.xlu1 %949   ;;  %s2162_s28 = smov 192 }
  0xdf   :  { %2730 = vst.msk [vmem:[%s6514_s1 + $0x269] sm:$0x2] %vm3_vm4, %v884_v33   ;;  %2731 = vst.msk [vmem:[%s6514_s1 + $0x408] sm:$0x4] %vm3_vm4, %v884_v33   ;;  %v3099_v42 = vld [vmem:[%s6513_s0 + $0x65] ss:$-15 sm:%s1970_s7]  }
  0xe0   :  { %2732 = vst.msk [vmem:[%s6514_s1 + $0xb] ss:$208 sm:$0x3] %vm3_vm4, %v894_v38   ;;  %2733 = vst.msk [vmem:[%s6514_s1 + $0xb] ss:$208 sm:$0xc] %vm3_vm4, %v894_v38   ;;  %1909 = vrot.lane.b32.xlu1 %v1908_v40, %s3310_s6  ;;  %v1973_v9 = vsel %vm1342_vm5, %v3099_v42, %v3946_v63  ;;  %v967_v29 = vpop.permute.xlu0 %966  }
  0xe1   :  { %2734 = vst.msk [vmem:[%s6514_s1 + $0xc8b] ss:$-592 sm:$0x30] %vm3_vm4, %v894_v38   ;;  %2735 = vst.msk [vmem:[%s6514_s1 - $0xe75] ss:$624 sm:$0xc0] %vm3_vm4, %v894_v38  }
  0xe2   :  { %2738 = vst.msk [vmem:[%s6514_s1 + $0x1cb] ss:$-176 sm:$0x3] %vm3_vm4, %v911_v41   ;;  %2739 = vst.msk [vmem:[%s6514_s1 + $0x4cb] ss:$-176 sm:$0xc] %vm3_vm4, %v911_v41   ;;  %1922 = vrot.lane.b32.xlu0 %v4063_v16, %s3310_s6  ;;  %v977_v37 = vpop.permute.xlu1 %976  }
  0xe3   :  { %2740 = vst.msk [vmem:[%s6514_s1 - $0x375] ss:$240 sm:$0x30] %vm3_vm4, %v911_v41   ;;  %2741 = vst.msk [vmem:[%s6514_s1 - $0x3b5] ss:$240 sm:$0xc0] %vm3_vm4, %v911_v41  }
  0xe4   :  { %v3093_v3 = vld [vmem:[%s6513_s0 + $0x51] ss:$-9 sm:%s1952_s15]   ;;  %2744 = vst.msk [vmem:[%s6514_s1 + $0x38b] ss:$-560 sm:$0x3] %vm3_vm4, %v928_v44   ;;  %1938 = vrot.lane.b32.xlu1 %v3996_v7, %s3311_s10  ;;  %v994_v43 = vpop.permute.xlu0 %993   ;;  %s2110_s7 = smov 48 }
  0xe5   :  { %2745 = vst.msk [vmem:[%s6514_s1 - $0x4b5] ss:$656 sm:$0xc] %vm3_vm4, %v928_v44   ;;  %2746 = vst.msk [vmem:[%s6514_s1 + $0x44b] ss:$-144 sm:$0x30] %vm3_vm4, %v928_v44   ;;  %v1955_v24 = vsel %vm1324_vm6, %v3093_v3, %v3972_v5 }
  0xe6   :  { %2747 = vst.msk [vmem:[%s6514_s1 + $0x70b] ss:$-144 sm:$0xc0] %vm3_vm4, %v928_v44   ;;  %v3100_v47 = vld [vmem:[%s6513_s0 + $0x85] ss:$-15 sm:%s1975_s20]   ;;  %1956 = vrot.lane.b32.xlu0 %v1955_v24, %s3311_s10  ;;  %v1011_v48 = vpop.permute.xlu1 %1010   ;;  %s2185_s15 = smov 192 }
  0xe7   :  { %2750 = vst.msk [vmem:[%s6514_s1 + $0x8b] ss:$272 sm:$0x3] %vm3_vm4, %v950_v45   ;;  %2751 = vst.msk [vmem:[%s6514_s1 + $0xb] ss:$272 sm:$0xc] %vm3_vm4, %v950_v45   ;;  %v1978_v32 = vsel %vm1324_vm6, %v3100_v47, %v1973_v9 }
  0xe8   :  { %2752 = vst.msk [vmem:[%s6514_s1 + $0x3c7] sm:$0x10] %vm3_vm4, %v950_v45   ;;  %2753 = vst.msk [vmem:[%s6514_s1 + $0xa6] sm:$0x20] %vm3_vm4, %v950_v45   ;;  %v3123_v39 = vld [vmem:[%s6513_s0 + $0x65] ss:$-15 sm:%s2040_s8]   ;;  %v1033_v52 = vpop.permute.xlu0 %1032  }
  0xe9   :  { %2754 = vst.msk [vmem:[%s6514_s1 + $0x245] sm:$0x40] %vm3_vm4, %v950_v45   ;;  %2755 = vst.msk [vmem:[%s6514_s1 + $0x3e4] sm:$0x80] %vm3_vm4, %v950_v45   ;;  %1979 = vrot.lane.b32.xlu1 %v1978_v32, %s3311_s10  ;;  %v2043_v49 = vsel %vm1342_vm5, %v3123_v39, %v3946_v63  ;;  %s2255_s20 = smov 192  ;;  %s2320_s8 = smov 48 }
  0xea   :  { %2757 = vst.msk [vmem:[%s6514_s1 + $0xcb] sm:$0x1] %vm3_vm4, %v967_v29   ;;  %2758 = vst.msk [vmem:[%s6514_s1 + $0x26a] sm:$0x2] %vm3_vm4, %v967_v29   ;;  %v3117_v46 = vld [vmem:[%s6513_s0 + $0x51] ss:$-9 sm:%s2022_s30]   ;;  %v1050_v54 = vpop.permute.xlu1 %1049  }
  0xeb   :  { %2759 = vst.msk [vmem:[%s6514_s1 + $0x409] sm:$0x4] %vm3_vm4, %v967_v29   ;;  %2760 = vst.msk [vmem:[%s6514_s1 + $0xc] ss:$208 sm:$0x3] %vm3_vm4, %v977_v37   ;;  %1992 = vrot.lane.b32.xlu0 %v4063_v16, %s3311_s10  ;;  %v2025_v51 = vsel %vm1324_vm6, %v3117_v46, %v3972_v5  ;;  %s2302_s30 = smov 192 }
  0xec   :  { %2761 = vst.msk [vmem:[%s6514_s1 + $0xc] ss:$208 sm:$0xc] %vm3_vm4, %v977_v37   ;;  %2762 = vst.msk [vmem:[%s6514_s1 + $0xc8c] ss:$-592 sm:$0x30] %vm3_vm4, %v977_v37   ;;  %v1060_v56 = vpop.permute.xlu0 %1059  }
  0xed   :  { %2763 = vst.msk [vmem:[%s6514_s1 - $0xe74] ss:$624 sm:$0xc0] %vm3_vm4, %v977_v37   ;;  %2766 = vst.msk [vmem:[%s6514_s1 + $0x1cc] ss:$-176 sm:$0x3] %vm3_vm4, %v994_v43   ;;  %2008 = vrot.lane.b32.xlu1 %v3996_v7, %s3312_s5 }
  0xee   :  { %2767 = vst.msk [vmem:[%s6514_s1 + $0x4cc] ss:$-176 sm:$0xc] %vm3_vm4, %v994_v43   ;;  %2768 = vst.msk [vmem:[%s6514_s1 - $0x374] ss:$240 sm:$0x30] %vm3_vm4, %v994_v43   ;;  %v1077_v58 = vpop.permute.xlu1 %1076  }
  0xef   :  { %2769 = vst.msk [vmem:[%s6514_s1 - $0x3b4] ss:$240 sm:$0xc0] %vm3_vm4, %v994_v43   ;;  %v3124_v50 = vld [vmem:[%s6513_s0 + $0x85] ss:$-15 sm:%s2045_s12]   ;;  %2026 = vrot.lane.b32.xlu0 %v2025_v51, %s3312_s5 }
  0xf0   :  { %2772 = vst.msk [vmem:[%s6514_s1 + $0x38c] ss:$-560 sm:$0x3] %vm3_vm4, %v1011_v48   ;;  %2773 = vst.msk [vmem:[%s6514_s1 - $0x4b4] ss:$656 sm:$0xc] %vm3_vm4, %v1011_v48   ;;  %v2048_v53 = vsel %vm1324_vm6, %v3124_v50, %v2043_v49  ;;  %v1094_v61 = vpop.permute.xlu0 %1093  }
  0xf1   :  { %2774 = vst.msk [vmem:[%s6514_s1 + $0x44c] ss:$-144 sm:$0x30] %vm3_vm4, %v1011_v48   ;;  %2775 = vst.msk [vmem:[%s6514_s1 + $0x70c] ss:$-144 sm:$0xc0] %vm3_vm4, %v1011_v48   ;;  %2049 = vrot.lane.b32.xlu1 %v2048_v53, %s3312_s5 }
  0xf2   :  { %2778 = vst.msk [vmem:[%s6514_s1 + $0x8c] ss:$272 sm:$0x3] %vm3_vm4, %v1033_v52   ;;  %2779 = vst.msk [vmem:[%s6514_s1 + $0xc] ss:$272 sm:$0xc] %vm3_vm4, %v1033_v52   ;;  %v1116_v62 = vpop.permute.xlu1 %1115  }
  0xf3   :  { %2780 = vst.msk [vmem:[%s6514_s1 + $0x3c8] sm:$0x10] %vm3_vm4, %v1033_v52   ;;  %2781 = vst.msk [vmem:[%s6514_s1 + $0xa7] sm:$0x20] %vm3_vm4, %v1033_v52   ;;  %v3147_v55 = vld [vmem:[%s6513_s0 + $0x65] ss:$-15 sm:%s2110_s7]  }
  0xf4   :  { %2782 = vst.msk [vmem:[%s6514_s1 + $0x246] sm:$0x40] %vm3_vm4, %v1033_v52   ;;  %2783 = vst.msk [vmem:[%s6514_s1 + $0x3e5] sm:$0x80] %vm3_vm4, %v1033_v52   ;;  %v3141_v57 = vld [vmem:[%s6513_s0 + $0x51] ss:$-9 sm:%s2092_s19]   ;;  %v2113_v59 = vsel %vm1342_vm5, %v3147_v55, %v3946_v63  ;;  %v1133_v2 = vpop.permute.xlu0 %1132  }
  0xf5   :  { %2785 = vst.msk [vmem:[%s6514_s1 + $0xcc] sm:$0x1] %vm3_vm4, %v1050_v54   ;;  %2786 = vst.msk [vmem:[%s6514_s1 + $0x26b] sm:$0x2] %vm3_vm4, %v1050_v54   ;;  %2062 = vrot.lane.b32.xlu0 %v4063_v16, %s3312_s5  ;;  %v2095_v0 = vsel %vm1324_vm6, %v3141_v57, %v3972_v5  ;;  %2078 = vrot.lane.b32.xlu1 %v3996_v7, %s3313_s21 }
  0xf6   :  { %2787 = vst.msk [vmem:[%s6514_s1 + $0x40a] sm:$0x4] %vm3_vm4, %v1050_v54   ;;  %2788 = vst.msk [vmem:[%s6514_s1 + $0xd] ss:$208 sm:$0x3] %vm3_vm4, %v1060_v56   ;;  %v1143_v8 = vpop.permute.xlu1 %1142  }
  0xf7   :  { %2789 = vst.msk [vmem:[%s6514_s1 + $0xd] ss:$208 sm:$0xc] %vm3_vm4, %v1060_v56   ;;  %2790 = vst.msk [vmem:[%s6514_s1 + $0xc8d] ss:$-592 sm:$0x30] %vm3_vm4, %v1060_v56  }
  0xf8   :  { %2791 = vst.msk [vmem:[%s6514_s1 - $0xe73] ss:$624 sm:$0xc0] %vm3_vm4, %v1060_v56   ;;  %v3148_v60 = vld [vmem:[%s6513_s0 + $0x85] ss:$-15 sm:%s2115_s25]   ;;  %v1160_v13 = vpop.permute.xlu0 %1159  }
  0xf9   :  { %2794 = vst.msk [vmem:[%s6514_s1 + $0x1cd] ss:$-176 sm:$0x3] %vm3_vm4, %v1077_v58   ;;  %2795 = vst.msk [vmem:[%s6514_s1 + $0x4cd] ss:$-176 sm:$0xc] %vm3_vm4, %v1077_v58   ;;  %v2118_v4 = vsel %vm1324_vm6, %v3148_v60, %v2113_v59  ;;  %2096 = vrot.lane.b32.xlu0 %v2095_v0, %s3313_s21 }
  0xfa   :  { %2796 = vst.msk [vmem:[%s6514_s1 - $0x373] ss:$240 sm:$0x30] %vm3_vm4, %v1077_v58   ;;  %2797 = vst.msk [vmem:[%s6514_s1 - $0x3b3] ss:$240 sm:$0xc0] %vm3_vm4, %v1077_v58   ;;  %2119 = vrot.lane.b32.xlu1 %v2118_v4, %s3313_s21  ;;  %v1177_v15 = vpop.permute.xlu1 %1176  }
  0xfb   :  { %2800 = vst.msk [vmem:[%s6514_s1 + $0x38d] ss:$-560 sm:$0x3] %vm3_vm4, %v1094_v61   ;;  %2801 = vst.msk [vmem:[%s6514_s1 - $0x4b3] ss:$656 sm:$0xc] %vm3_vm4, %v1094_v61  }
  0xfc   :  { %2802 = vst.msk [vmem:[%s6514_s1 + $0x44d] ss:$-144 sm:$0x30] %vm3_vm4, %v1094_v61   ;;  %2803 = vst.msk [vmem:[%s6514_s1 + $0x70d] ss:$-144 sm:$0xc0] %vm3_vm4, %v1094_v61   ;;  %v1199_v18 = vpop.permute.xlu0 %1198  }
  0xfd   :  { %2806 = vst.msk [vmem:[%s6514_s1 + $0x8d] ss:$272 sm:$0x3] %vm3_vm4, %v1116_v62   ;;  %2807 = vst.msk [vmem:[%s6514_s1 + $0xd] ss:$272 sm:$0xc] %vm3_vm4, %v1116_v62   ;;  %2132 = vrot.lane.b32.xlu0 %v4063_v16, %s3313_s21 }
  0xfe   :  { %2808 = vst.msk [vmem:[%s6514_s1 + $0x3c9] sm:$0x10] %vm3_vm4, %v1116_v62   ;;  %2809 = vst.msk [vmem:[%s6514_s1 + $0xa8] sm:$0x20] %vm3_vm4, %v1116_v62   ;;  %v3171_v1 = vld [vmem:[%s6513_s0 + $0x65] ss:$-15 sm:%s2180_s26]   ;;  %v1216_v20 = vpop.permute.xlu1 %1215  }
  0xff   :  { %2810 = vst.msk [vmem:[%s6514_s1 + $0x247] sm:$0x40] %vm3_vm4, %v1116_v62   ;;  %2811 = vst.msk [vmem:[%s6514_s1 + $0x3e6] sm:$0x80] %vm3_vm4, %v1116_v62   ;;  %v3165_v6 = vld [vmem:[%s6513_s0 + $0x51] ss:$-9 sm:%s2162_s28]   ;;  %v2183_v10 = vsel %vm1342_vm5, %v3171_v1, %v3946_v63 }
 0x100   :  { %2813 = vst.msk [vmem:[%s6514_s1 + $0xcd] sm:$0x1] %vm3_vm4, %v1133_v2   ;;  %2814 = vst.msk [vmem:[%s6514_s1 + $0x26c] sm:$0x2] %vm3_vm4, %v1133_v2   ;;  %v3172_v11 = vld [vmem:[%s6513_s0 + $0x85] ss:$-15 sm:%s2185_s15]   ;;  %v2165_v12 = vsel %vm1324_vm6, %v3165_v6, %v3972_v5  ;;  %v1226_v22 = vpop.permute.xlu0 %1225  }
 0x101   :  { %2815 = vst.msk [vmem:[%s6514_s1 + $0x40b] sm:$0x4] %vm3_vm4, %v1133_v2   ;;  %2816 = vst.msk [vmem:[%s6514_s1 + $0xe] ss:$208 sm:$0x3] %vm3_vm4, %v1143_v8   ;;  %2148 = vrot.lane.b32.xlu1 %v3996_v7, %s3314_s29  ;;  %v2188_v14 = vsel %vm1324_vm6, %v3172_v11, %v2183_v10  ;;  %s2232_s15 = smov 192  ;;  %2166 = vrot.lane.b32.xlu0 %v2165_v12, %s3314_s29 }
 0x102   :  { %2817 = vst.msk [vmem:[%s6514_s1 + $0xe] ss:$208 sm:$0xc] %vm3_vm4, %v1143_v8   ;;  %2818 = vst.msk [vmem:[%s6514_s1 + $0xc8e] ss:$-592 sm:$0x30] %vm3_vm4, %v1143_v8   ;;  %v1243_v23 = vpop.permute.xlu1 %1242  }
 0x103   :  { %2819 = vst.msk [vmem:[%s6514_s1 - $0xe72] ss:$624 sm:$0xc0] %vm3_vm4, %v1143_v8   ;;  %2822 = vst.msk [vmem:[%s6514_s1 + $0x1ce] ss:$-176 sm:$0x3] %vm3_vm4, %v1160_v13  }
 0x104   :  { %2823 = vst.msk [vmem:[%s6514_s1 + $0x4ce] ss:$-176 sm:$0xc] %vm3_vm4, %v1160_v13   ;;  %2824 = vst.msk [vmem:[%s6514_s1 - $0x372] ss:$240 sm:$0x30] %vm3_vm4, %v1160_v13   ;;  %v1260_v27 = vpop.permute.xlu0 %1259  }
 0x105   :  { %2825 = vst.msk [vmem:[%s6514_s1 - $0x3b2] ss:$240 sm:$0xc0] %vm3_vm4, %v1160_v13   ;;  %2828 = vst.msk [vmem:[%s6514_s1 + $0x38e] ss:$-560 sm:$0x3] %vm3_vm4, %v1177_v15   ;;  %2189 = vrot.lane.b32.xlu1 %v2188_v14, %s3314_s29  ;;  %2202 = vrot.lane.b32.xlu0 %v4063_v16, %s3314_s29 }
 0x106   :  { %2829 = vst.msk [vmem:[%s6514_s1 - $0x4b2] ss:$656 sm:$0xc] %vm3_vm4, %v1177_v15   ;;  %2830 = vst.msk [vmem:[%s6514_s1 + $0x44e] ss:$-144 sm:$0x30] %vm3_vm4, %v1177_v15  }
 0x107   :  { %2831 = vst.msk [vmem:[%s6514_s1 + $0x70e] ss:$-144 sm:$0xc0] %vm3_vm4, %v1177_v15   ;;  %v3195_v17 = vld [vmem:[%s6513_s0 + $0x65] ss:$-15 sm:%s2250_s9]  }
 0x108   :  { %v3189_v19 = vld [vmem:[%s6513_s0 + $0x51] ss:$-9 sm:%s2232_s15]   ;;  %2834 = vst.msk [vmem:[%s6514_s1 + $0x8e] ss:$272 sm:$0x3] %vm3_vm4, %v1199_v18   ;;  %v2253_v63 = vsel %vm1342_vm5, %v3195_v17, %v3946_v63  ;;  %s5216_s15 = smov 48  ;;  %v1299_v36 = vpop.permute.xlu0 %1298  }
 0x109   :  { %2835 = vst.msk [vmem:[%s6514_s1 + $0xe] ss:$272 sm:$0xc] %vm3_vm4, %v1199_v18   ;;  %2836 = vst.msk [vmem:[%s6514_s1 + $0x3ca] sm:$0x10] %vm3_vm4, %v1199_v18   ;;  %v2235_v5 = vsel %vm1324_vm6, %v3189_v19, %v3972_v5  ;;  %2218 = vrot.lane.b32.xlu1 %v3996_v7, %s3315_s18 }
 0x10a   :  { %2837 = vst.msk [vmem:[%s6514_s1 + $0xa9] sm:$0x20] %vm3_vm4, %v1199_v18   ;;  %2838 = vst.msk [vmem:[%s6514_s1 + $0x248] sm:$0x40] %vm3_vm4, %v1199_v18   ;;  %v3196_v21 = vld [vmem:[%s6513_s0 + $0x85] ss:$-15 sm:%s2255_s20]  }
 0x10b   :  { %2839 = vst.msk [vmem:[%s6514_s1 + $0x3e7] sm:$0x80] %vm3_vm4, %v1199_v18   ;;  %2841 = vst.msk [vmem:[%s6514_s1 + $0xce] sm:$0x1] %vm3_vm4, %v1216_v20   ;;  %v2258_v7 = vsel %vm1324_vm6, %v3196_v21, %v2253_v63  ;;  %2236 = vrot.lane.b32.xlu0 %v2235_v5, %s3315_s18  ;;  %v2_v38 = vld [vmem:[%s6513_s0] sm:$0x1f]  }
 0x10c   :  { %2842 = vst.msk [vmem:[%s6514_s1 + $0x26d] sm:$0x2] %vm3_vm4, %v1216_v20   ;;  %2843 = vst.msk [vmem:[%s6514_s1 + $0x40c] sm:$0x4] %vm3_vm4, %v1216_v20   ;;  %v3219_v26 = vld [vmem:[%s6513_s0 + $0x65] ss:$-15 sm:%s2320_s8]   ;;  %v1327_v32 = vpop.permute.xlu0 %1326  }
 0x10d   :  { %2844 = vst.msk [vmem:[%s6514_s1 + $0xf] ss:$208 sm:$0x3] %vm3_vm4, %v1226_v22   ;;  %2845 = vst.msk [vmem:[%s6514_s1 + $0xf] ss:$208 sm:$0xc] %vm3_vm4, %v1226_v22   ;;  %2259 = vrot.lane.b32.xlu1 %v2258_v7, %s3315_s18 }
 0x10e   :  { %2846 = vst.msk [vmem:[%s6514_s1 + $0xc8f] ss:$-592 sm:$0x30] %vm3_vm4, %v1226_v22   ;;  %2847 = vst.msk [vmem:[%s6514_s1 - $0xe71] ss:$624 sm:$0xc0] %vm3_vm4, %v1226_v22  }
 0x10f   :  { %2850 = vst.msk [vmem:[%s6514_s1 + $0x1cf] ss:$-176 sm:$0x3] %vm3_vm4, %v1243_v23   ;;  %2851 = vst.msk [vmem:[%s6514_s1 + $0x4cf] ss:$-176 sm:$0xc] %vm3_vm4, %v1243_v23   ;;  %2272 = vrot.lane.b32.xlu0 %v4063_v16, %s3315_s18  ;;  %v1282_v16 = vpop.permute.xlu1 %1281  }
 0x110   :  { %2852 = vst.msk [vmem:[%s6514_s1 - $0x371] ss:$240 sm:$0x30] %vm3_vm4, %v1243_v23   ;;  %2853 = vst.msk [vmem:[%s6514_s1 - $0x3b1] ss:$240 sm:$0xc0] %vm3_vm4, %v1243_v23  }
 0x111   :  { %v5148_v25 = vld.sshfl [vmem:[%s6513_s0 + $0x14] sm:$0xff pattern:$0x44444f0d]   ;;  %v5156_v28 = vld.sshfl [vmem:[%s6513_s0 + $0xa] sm:$0xff pattern:$0x666f2907]  }
 0x112   :  { %v3213_v30 = vld [vmem:[%s6513_s0 + $0x51] ss:$-9 sm:%s2302_s30]   ;;  %2856 = vst.msk [vmem:[%s6514_s1 + $0x38f] ss:$-560 sm:$0x3] %vm3_vm4, %v1260_v27   ;;  %v2323_v33 = vsel %vm1342_vm5, %v3219_v26, %v5148_v25  ;;  %s3317_s30 = smov 4  }
 0x113   :  { %2857 = vst.msk [vmem:[%s6514_s1 - $0x4b1] ss:$656 sm:$0xc] %vm3_vm4, %v1260_v27   ;;  %2858 = vst.msk [vmem:[%s6514_s1 + $0x44f] ss:$-144 sm:$0x30] %vm3_vm4, %v1260_v27   ;;  %v2305_v35 = vsel %vm1324_vm6, %v3213_v30, %v5156_v28  ;;  %v1309_v9 = vpop.permute.xlu1 %1308   ;;  %v1363_v49 = vpop.permute.xlu0 %1362  }
 0x114   :  { %2859 = vst.msk [vmem:[%s6514_s1 + $0x70f] ss:$-144 sm:$0xc0] %vm3_vm4, %v1260_v27   ;;  %v5180_v31 = vld.sshfl [vmem:[%s6513_s0] sm:$0xff pattern:$0x8b492301]   ;;  %2306 = vrot.lane.b32.xlu0 %v2305_v35, %s3316_s16 }
 0x115   :  { %v3220_v34 = vld [vmem:[%s6513_s0 + $0x85] ss:$-15 sm:%s2325_s14]   ;;  %2862 = vst.msk [vmem:[%s6514_s1 + $0x8f] ss:$272 sm:$0x3] %vm3_vm4, %v1282_v16   ;;  %s5214_s14 = smov 192  ;;  %2288 = vrot.lane.b32.xlu1 %v5180_v31, %s3316_s16 }
 0x116   :  { %2863 = vst.msk [vmem:[%s6514_s1 + $0xf] ss:$272 sm:$0xc] %vm3_vm4, %v1282_v16   ;;  %2864 = vst.msk [vmem:[%s6514_s1 + $0x3cb] sm:$0x10] %vm3_vm4, %v1282_v16   ;;  %v2328_v42 = vsel %vm1324_vm6, %v3220_v34, %v2323_v33 }
 0x117   :  { %2865 = vst.msk [vmem:[%s6514_s1 + $0xaa] sm:$0x20] %vm3_vm4, %v1282_v16   ;;  %2866 = vst.msk [vmem:[%s6514_s1 + $0x249] sm:$0x40] %vm3_vm4, %v1282_v16   ;;  %v2428_v40 = vld [vmem:[%s6513_s0 + $0x8] sm:$0x1f]   ;;  %v1350_v39 = vpop.permute.xlu1 %1349   ;;  %v1397_v52 = vpop.permute.xlu0 %1396  }
 0x118   :  { %2867 = vst.msk [vmem:[%s6514_s1 + $0x3e8] sm:$0x80] %vm3_vm4, %v1282_v16   ;;  %v2432_v41 = vld [vmem:[%s6513_s0 + $0x10] sm:$0x1f]   ;;  %2869 = vst.msk [vmem:[%s6514_s1 + $0xcf] sm:$0x1] %vm3_vm4, %v1299_v36  }
 0x119   :  { %2870 = vst.msk [vmem:[%s6514_s1 + $0x26e] sm:$0x2] %vm3_vm4, %v1299_v36   ;;  %2871 = vst.msk [vmem:[%s6514_s1 + $0x40d] sm:$0x4] %vm3_vm4, %v1299_v36   ;;  %v2436_v44 = vld [vmem:[%s6513_s0 + $0x18] sm:$0x1f]   ;;  %2329 = vrot.lane.b32.xlu1 %v2328_v42, %s3316_s16 }
 0x11a   :  { %4 = vst.msk [vmem:[%s6514_s1] ss:$208 sm:$0x3] %vm3_vm4, %v2_v38   ;;  %5 = vst.msk [vmem:[%s6514_s1] ss:$208 sm:$0xc] %vm3_vm4, %v2_v38  }
 0x11b   :  { %2427 = vst.msk [vmem:[%s6514_s1 + $0x33c] sm:$0x10] %vm3_vm4, %v2_v38   ;;  %2429 = vst.msk [vmem:[%s6514_s1 + $0x20] ss:$208 sm:$0x3] %vm3_vm4, %v2428_v40   ;;  %v1379_v51 = vpop.permute.xlu1 %1378   ;;  %v1433_v54 = vpop.permute.xlu0 %1432  }
 0x11c   :  { %2430 = vst.msk [vmem:[%s6514_s1 + $0x20] ss:$208 sm:$0xc] %vm3_vm4, %v2428_v40   ;;  %2431 = vst.msk [vmem:[%s6514_s1 + $0x35c] sm:$0x10] %vm3_vm4, %v2428_v40  }
 0x11d   :  { %2433 = vst.msk [vmem:[%s6514_s1 + $0x40] ss:$208 sm:$0x3] %vm3_vm4, %v2432_v41   ;;  %2434 = vst.msk [vmem:[%s6514_s1 + $0x40] ss:$208 sm:$0xc] %vm3_vm4, %v2432_v41   ;;  %2358 = vrot.lane.b32.xlu1 %v5180_v31, %s3317_s30 }
 0x11e   :  { %2435 = vst.msk [vmem:[%s6514_s1 + $0x37c] sm:$0x10] %vm3_vm4, %v2432_v41   ;;  %v2440_v3 = vld [vmem:[%s6513_s0 + $0x20] sm:$0x1f]   ;;  %v2444_v45 = vld [vmem:[%s6513_s0 + $0x28] sm:$0x1f]  }
 0x11f   :  { %2437 = vst.msk [vmem:[%s6514_s1 + $0x60] ss:$208 sm:$0x3] %vm3_vm4, %v2436_v44   ;;  %2438 = vst.msk [vmem:[%s6514_s1 + $0x60] ss:$208 sm:$0xc] %vm3_vm4, %v2436_v44   ;;  %v1420_v53 = vpop.permute.xlu1 %1419   ;;  %v1467_v56 = vpop.permute.xlu0 %1466  }
 0x120   :  { %2439 = vst.msk [vmem:[%s6514_s1 + $0x39c] sm:$0x10] %vm3_vm4, %v2436_v44   ;;  %2441 = vst.msk [vmem:[%s6514_s1 + $0x80] ss:$208 sm:$0x3] %vm3_vm4, %v2440_v3  }
 0x121   :  { %2442 = vst.msk [vmem:[%s6514_s1 + $0x80] ss:$208 sm:$0xc] %vm3_vm4, %v2440_v3   ;;  %2443 = vst.msk [vmem:[%s6514_s1 + $0x3bc] sm:$0x10] %vm3_vm4, %v2440_v3  }
 0x122   :  { %2445 = vst.msk [vmem:[%s6514_s1 + $0xa0] ss:$208 sm:$0x3] %vm3_vm4, %v2444_v45   ;;  %2446 = vst.msk [vmem:[%s6514_s1 + $0xa0] ss:$208 sm:$0xc] %vm3_vm4, %v2444_v45  }
 0x123   :  { %2447 = vst.msk [vmem:[%s6514_s1 + $0x3dc] sm:$0x10] %vm3_vm4, %v2444_v45   ;;  %v2448_v47 = vld [vmem:[%s6513_s0 + $0x30] sm:$0x1f]   ;;  %v3243_v29 = vld [vmem:[%s6513_s0 + $0x65] ss:$-15 sm:%s5216_s15]   ;;  %v1449_v55 = vpop.permute.xlu1 %1448   ;;  %v1503_v58 = vpop.permute.xlu0 %1502  }
 0x124   :  { %2872 = vst.msk [vmem:[%s6514_s1 + $0xe0] ss:$-208 sm:$0x3] %vm3_vm4, %v1309_v9   ;;  %2873 = vst.msk [vmem:[%s6514_s1 + $0x420] ss:$-208 sm:$0xc] %vm3_vm4, %v1309_v9   ;;  %v2393_v43 = vsel %vm1342_vm5, %v3243_v29, %v5148_v25 }
 0x125   :  { %2874 = vst.msk [vmem:[%s6514_s1 - $0x840] ss:$592 sm:$0x30] %vm3_vm4, %v1309_v9   ;;  %2875 = vst.msk [vmem:[%s6514_s1 + $0x1140] ss:$-624 sm:$0xc0] %vm3_vm4, %v1309_v9  }
 0x126   :  { %v3225_v24 = vld.sshfl [vmem:[%s6513_s0 + $0x20] sm:$0xff pattern:$0xccca8420]   ;;  %s2395_s15 = smov 192  ;;  %2451 = vst.msk [vmem:[%s6514_s1 + $0x3fc] sm:$0x10] %vm3_vm4, %v2448_v47  }
 0x127   :  { %2449 = vst.msk [vmem:[%s6514_s1 + $0xc0] ss:$208 sm:$0x3] %vm3_vm4, %v2448_v47   ;;  %2450 = vst.msk [vmem:[%s6514_s1 + $0xc0] ss:$208 sm:$0xc] %vm3_vm4, %v2448_v47   ;;  %2342 = vrot.lane.b32.xlu0 %v3225_v24, %s3316_s16  ;;  %v1490_v57 = vpop.permute.xlu1 %1489   ;;  %v1537_v60 = vpop.permute.xlu0 %1536  }
 0x128   :  { %v3237_v37 = vld [vmem:[%s6513_s0 + $0x51] ss:$-9 sm:%s5214_s14]   ;;  %2878 = vst.msk [vmem:[%s6514_s1 + $0x120] ss:$176 sm:$0x3] %vm3_vm4, %v1327_v32  }
 0x129   :  { %2879 = vst.msk [vmem:[%s6514_s1 + $0x160] ss:$176 sm:$0xc] %vm3_vm4, %v1327_v32   ;;  %2880 = vst.msk [vmem:[%s6514_s1 + $0x500] ss:$-240 sm:$0x30] %vm3_vm4, %v1327_v32   ;;  %v2375_v48 = vsel %vm1324_vm6, %v3237_v37, %v5156_v28 }
 0x12a   :  { %2881 = vst.msk [vmem:[%s6514_s1 + $0x880] ss:$-240 sm:$0xc0] %vm3_vm4, %v1327_v32   ;;  %v3244_v46 = vld [vmem:[%s6513_s0 + $0x85] ss:$-15 sm:%s2395_s15]  }
 0x12b   :  { %2885 = vst.msk [vmem:[%s6514_s1 + $0x160] ss:$560 sm:$0x3] %vm3_vm4, %v1350_v39   ;;  %2886 = vst.msk [vmem:[%s6514_s1 + $0x820] ss:$-656 sm:$0xc] %vm3_vm4, %v1350_v39   ;;  %v2398_v50 = vsel %vm1324_vm6, %v3244_v46, %v2393_v43  ;;  %2376 = vrot.lane.b32.xlu0 %v2375_v48, %s3317_s30  ;;  %v1519_v59 = vpop.permute.xlu1 %1518   ;;  %v1573_v61 = vpop.permute.xlu0 %1572  }
 0x12c   :  { %2887 = vst.msk [vmem:[%s6514_s1 - $0xc0] ss:$144 sm:$0x30] %vm3_vm4, %v1350_v39   ;;  %2888 = vst.msk [vmem:[%s6514_s1 - $0x40] ss:$144 sm:$0xc0] %vm3_vm4, %v1350_v39   ;;  %2399 = vrot.lane.b32.xlu1 %v2398_v50, %s3317_s30 }
 0x12d   :  { %2890 = vst.msk [vmem:[%s6514_s1 + $0x90] sm:$0x1] %vm3_vm4, %v1363_v49   ;;  %2891 = vst.msk [vmem:[%s6514_s1 + $0x22f] sm:$0x2] %vm3_vm4, %v1363_v49  }
 0x12e   :  { %2892 = vst.msk [vmem:[%s6514_s1 + $0x3ce] sm:$0x4] %vm3_vm4, %v1363_v49   ;;  %2893 = vst.msk [vmem:[%s6514_s1 + $0xad] sm:$0x8] %vm3_vm4, %v1363_v49  }
 0x12f   :  { %2894 = vst.msk [vmem:[%s6514_s1 + $0x24c] sm:$0x10] %vm3_vm4, %v1363_v49   ;;  %2895 = vst.msk [vmem:[%s6514_s1 + $0x3eb] sm:$0x20] %vm3_vm4, %v1363_v49   ;;  %2412 = vrot.lane.b32.xlu0 %v3225_v24, %s3317_s30  ;;  %v1560_v0 = vpop.permute.xlu1 %1559   ;;  %v1607_v62 = vpop.permute.xlu0 %1606  }
 0x130   :  { %2896 = vst.msk [vmem:[%s6514_s1 + $0xe1] ss:$-208 sm:$0x3] %vm3_vm4, %v1379_v51   ;;  %2897 = vst.msk [vmem:[%s6514_s1 + $0x421] ss:$-208 sm:$0xc] %vm3_vm4, %v1379_v51  }
 0x131   :  { %2898 = vst.msk [vmem:[%s6514_s1 - $0x83f] ss:$592 sm:$0x30] %vm3_vm4, %v1379_v51   ;;  %2899 = vst.msk [vmem:[%s6514_s1 + $0x1141] ss:$-624 sm:$0xc0] %vm3_vm4, %v1379_v51  }
 0x132   :  { %2902 = vst.msk [vmem:[%s6514_s1 + $0x121] ss:$176 sm:$0x3] %vm3_vm4, %v1397_v52   ;;  %2903 = vst.msk [vmem:[%s6514_s1 + $0x161] ss:$176 sm:$0xc] %vm3_vm4, %v1397_v52  }
 0x133   :  { %2904 = vst.msk [vmem:[%s6514_s1 + $0x501] ss:$-240 sm:$0x30] %vm3_vm4, %v1397_v52   ;;  %2905 = vst.msk [vmem:[%s6514_s1 + $0x881] ss:$-240 sm:$0xc0] %vm3_vm4, %v1397_v52   ;;  %v1589_v4 = vpop.permute.xlu1 %1588   ;;  %v1643_v2 = vpop.permute.xlu0 %1642  }
 0x134   :  { %2909 = vst.msk [vmem:[%s6514_s1 + $0x161] ss:$560 sm:$0x3] %vm3_vm4, %v1420_v53   ;;  %2910 = vst.msk [vmem:[%s6514_s1 + $0x821] ss:$-656 sm:$0xc] %vm3_vm4, %v1420_v53  }
 0x135   :  { %2911 = vst.msk [vmem:[%s6514_s1 - $0xbf] ss:$144 sm:$0x30] %vm3_vm4, %v1420_v53   ;;  %2912 = vst.msk [vmem:[%s6514_s1 - $0x3f] ss:$144 sm:$0xc0] %vm3_vm4, %v1420_v53  }
 0x136   :  { %2914 = vst.msk [vmem:[%s6514_s1 + $0x91] sm:$0x1] %vm3_vm4, %v1433_v54   ;;  %2915 = vst.msk [vmem:[%s6514_s1 + $0x230] sm:$0x2] %vm3_vm4, %v1433_v54  }
 0x137   :  { %2916 = vst.msk [vmem:[%s6514_s1 + $0x3cf] sm:$0x4] %vm3_vm4, %v1433_v54   ;;  %2917 = vst.msk [vmem:[%s6514_s1 + $0xae] sm:$0x8] %vm3_vm4, %v1433_v54   ;;  %v1630_v1 = vpop.permute.xlu1 %1629   ;;  %v1677_v8 = vpop.permute.xlu0 %1676  }
 0x138   :  { %2918 = vst.msk [vmem:[%s6514_s1 + $0x24d] sm:$0x10] %vm3_vm4, %v1433_v54   ;;  %2919 = vst.msk [vmem:[%s6514_s1 + $0x3ec] sm:$0x20] %vm3_vm4, %v1433_v54  }
 0x139   :  { %2920 = vst.msk [vmem:[%s6514_s1 + $0xe2] ss:$-208 sm:$0x3] %vm3_vm4, %v1449_v55   ;;  %2921 = vst.msk [vmem:[%s6514_s1 + $0x422] ss:$-208 sm:$0xc] %vm3_vm4, %v1449_v55  }
 0x13a   :  { %2922 = vst.msk [vmem:[%s6514_s1 - $0x83e] ss:$592 sm:$0x30] %vm3_vm4, %v1449_v55   ;;  %2923 = vst.msk [vmem:[%s6514_s1 + $0x1142] ss:$-624 sm:$0xc0] %vm3_vm4, %v1449_v55  }
 0x13b   :  { %2926 = vst.msk [vmem:[%s6514_s1 + $0x122] ss:$176 sm:$0x3] %vm3_vm4, %v1467_v56   ;;  %2927 = vst.msk [vmem:[%s6514_s1 + $0x162] ss:$176 sm:$0xc] %vm3_vm4, %v1467_v56   ;;  %v1659_v6 = vpop.permute.xlu1 %1658   ;;  %v1713_v11 = vpop.permute.xlu0 %1712  }
 0x13c   :  { %2928 = vst.msk [vmem:[%s6514_s1 + $0x502] ss:$-240 sm:$0x30] %vm3_vm4, %v1467_v56   ;;  %2929 = vst.msk [vmem:[%s6514_s1 + $0x882] ss:$-240 sm:$0xc0] %vm3_vm4, %v1467_v56  }
 0x13d   :  { %2933 = vst.msk [vmem:[%s6514_s1 + $0x162] ss:$560 sm:$0x3] %vm3_vm4, %v1490_v57   ;;  %2934 = vst.msk [vmem:[%s6514_s1 + $0x822] ss:$-656 sm:$0xc] %vm3_vm4, %v1490_v57  }
 0x13e   :  { %2935 = vst.msk [vmem:[%s6514_s1 - $0xbe] ss:$144 sm:$0x30] %vm3_vm4, %v1490_v57   ;;  %2936 = vst.msk [vmem:[%s6514_s1 - $0x3e] ss:$144 sm:$0xc0] %vm3_vm4, %v1490_v57  }
 0x13f   :  { %2938 = vst.msk [vmem:[%s6514_s1 + $0x92] sm:$0x1] %vm3_vm4, %v1503_v58   ;;  %2939 = vst.msk [vmem:[%s6514_s1 + $0x231] sm:$0x2] %vm3_vm4, %v1503_v58   ;;  %v1700_v10 = vpop.permute.xlu1 %1699   ;;  %v1747_v13 = vpop.permute.xlu0 %1746  }
 0x140   :  { %2940 = vst.msk [vmem:[%s6514_s1 + $0x3d0] sm:$0x4] %vm3_vm4, %v1503_v58   ;;  %2941 = vst.msk [vmem:[%s6514_s1 + $0xaf] sm:$0x8] %vm3_vm4, %v1503_v58  }
 0x141   :  { %2942 = vst.msk [vmem:[%s6514_s1 + $0x24e] sm:$0x10] %vm3_vm4, %v1503_v58   ;;  %2943 = vst.msk [vmem:[%s6514_s1 + $0x3ed] sm:$0x20] %vm3_vm4, %v1503_v58  }
 0x142   :  { %2944 = vst.msk [vmem:[%s6514_s1 + $0xe3] ss:$-208 sm:$0x3] %vm3_vm4, %v1519_v59   ;;  %2945 = vst.msk [vmem:[%s6514_s1 + $0x423] ss:$-208 sm:$0xc] %vm3_vm4, %v1519_v59  }
 0x143   :  { %2946 = vst.msk [vmem:[%s6514_s1 - $0x83d] ss:$592 sm:$0x30] %vm3_vm4, %v1519_v59   ;;  %2947 = vst.msk [vmem:[%s6514_s1 + $0x1143] ss:$-624 sm:$0xc0] %vm3_vm4, %v1519_v59   ;;  %v1729_v12 = vpop.permute.xlu1 %1728   ;;  %v1783_v15 = vpop.permute.xlu0 %1782  }
 0x144   :  { %2950 = vst.msk [vmem:[%s6514_s1 + $0x123] ss:$176 sm:$0x3] %vm3_vm4, %v1537_v60   ;;  %2951 = vst.msk [vmem:[%s6514_s1 + $0x163] ss:$176 sm:$0xc] %vm3_vm4, %v1537_v60  }
 0x145   :  { %2952 = vst.msk [vmem:[%s6514_s1 + $0x503] ss:$-240 sm:$0x30] %vm3_vm4, %v1537_v60   ;;  %2953 = vst.msk [vmem:[%s6514_s1 + $0x883] ss:$-240 sm:$0xc0] %vm3_vm4, %v1537_v60  }
 0x146   :  { %2957 = vst.msk [vmem:[%s6514_s1 + $0x163] ss:$560 sm:$0x3] %vm3_vm4, %v1560_v0   ;;  %2958 = vst.msk [vmem:[%s6514_s1 + $0x823] ss:$-656 sm:$0xc] %vm3_vm4, %v1560_v0  }
 0x147   :  { %2959 = vst.msk [vmem:[%s6514_s1 - $0xbd] ss:$144 sm:$0x30] %vm3_vm4, %v1560_v0   ;;  %2960 = vst.msk [vmem:[%s6514_s1 - $0x3d] ss:$144 sm:$0xc0] %vm3_vm4, %v1560_v0   ;;  %v1770_v14 = vpop.permute.xlu1 %1769   ;;  %v1817_v18 = vpop.permute.xlu0 %1816  }
 0x148   :  { %2962 = vst.msk [vmem:[%s6514_s1 + $0x93] sm:$0x1] %vm3_vm4, %v1573_v61   ;;  %2963 = vst.msk [vmem:[%s6514_s1 + $0x232] sm:$0x2] %vm3_vm4, %v1573_v61  }
 0x149   :  { %2964 = vst.msk [vmem:[%s6514_s1 + $0x3d1] sm:$0x4] %vm3_vm4, %v1573_v61   ;;  %2965 = vst.msk [vmem:[%s6514_s1 + $0xb0] sm:$0x8] %vm3_vm4, %v1573_v61  }
 0x14a   :  { %2966 = vst.msk [vmem:[%s6514_s1 + $0x24f] sm:$0x10] %vm3_vm4, %v1573_v61   ;;  %2967 = vst.msk [vmem:[%s6514_s1 + $0x3ee] sm:$0x20] %vm3_vm4, %v1573_v61  }
 0x14b   :  { %2968 = vst.msk [vmem:[%s6514_s1 + $0xe4] ss:$-208 sm:$0x3] %vm3_vm4, %v1589_v4   ;;  %2969 = vst.msk [vmem:[%s6514_s1 + $0x424] ss:$-208 sm:$0xc] %vm3_vm4, %v1589_v4   ;;  %v1799_v17 = vpop.permute.xlu1 %1798   ;;  %v1853_v20 = vpop.permute.xlu0 %1852  }
 0x14c   :  { %2970 = vst.msk [vmem:[%s6514_s1 - $0x83c] ss:$592 sm:$0x30] %vm3_vm4, %v1589_v4   ;;  %2971 = vst.msk [vmem:[%s6514_s1 + $0x1144] ss:$-624 sm:$0xc0] %vm3_vm4, %v1589_v4  }
 0x14d   :  { %2974 = vst.msk [vmem:[%s6514_s1 + $0x124] ss:$176 sm:$0x3] %vm3_vm4, %v1607_v62   ;;  %2975 = vst.msk [vmem:[%s6514_s1 + $0x164] ss:$176 sm:$0xc] %vm3_vm4, %v1607_v62  }
 0x14e   :  { %2976 = vst.msk [vmem:[%s6514_s1 + $0x504] ss:$-240 sm:$0x30] %vm3_vm4, %v1607_v62   ;;  %2977 = vst.msk [vmem:[%s6514_s1 + $0x884] ss:$-240 sm:$0xc0] %vm3_vm4, %v1607_v62  }
 0x14f   :  { %2981 = vst.msk [vmem:[%s6514_s1 + $0x164] ss:$560 sm:$0x3] %vm3_vm4, %v1630_v1   ;;  %2982 = vst.msk [vmem:[%s6514_s1 + $0x824] ss:$-656 sm:$0xc] %vm3_vm4, %v1630_v1   ;;  %v1840_v19 = vpop.permute.xlu1 %1839  }
 0x150   :  { %2983 = vst.msk [vmem:[%s6514_s1 - $0xbc] ss:$144 sm:$0x30] %vm3_vm4, %v1630_v1   ;;  %2984 = vst.msk [vmem:[%s6514_s1 - $0x3c] ss:$144 sm:$0xc0] %vm3_vm4, %v1630_v1   ;;  %v1887_v21 = vpop.permute.xlu0 %1886  }
 0x151   :  { %2986 = vst.msk [vmem:[%s6514_s1 + $0x94] sm:$0x1] %vm3_vm4, %v1643_v2   ;;  %2987 = vst.msk [vmem:[%s6514_s1 + $0x233] sm:$0x2] %vm3_vm4, %v1643_v2  }
 0x152   :  { %2988 = vst.msk [vmem:[%s6514_s1 + $0x3d2] sm:$0x4] %vm3_vm4, %v1643_v2   ;;  %2989 = vst.msk [vmem:[%s6514_s1 + $0xb1] sm:$0x8] %vm3_vm4, %v1643_v2  }
 0x153   :  { %2990 = vst.msk [vmem:[%s6514_s1 + $0x250] sm:$0x10] %vm3_vm4, %v1643_v2   ;;  %2991 = vst.msk [vmem:[%s6514_s1 + $0x3ef] sm:$0x20] %vm3_vm4, %v1643_v2   ;;  %v1869_v63 = vpop.permute.xlu1 %1868  }
 0x154   :  { %2992 = vst.msk [vmem:[%s6514_s1 + $0xe5] ss:$-208 sm:$0x3] %vm3_vm4, %v1659_v6   ;;  %2993 = vst.msk [vmem:[%s6514_s1 + $0x425] ss:$-208 sm:$0xc] %vm3_vm4, %v1659_v6   ;;  %v1923_v22 = vpop.permute.xlu0 %1922  }
 0x155   :  { %2994 = vst.msk [vmem:[%s6514_s1 - $0x83b] ss:$592 sm:$0x30] %vm3_vm4, %v1659_v6   ;;  %2995 = vst.msk [vmem:[%s6514_s1 + $0x1145] ss:$-624 sm:$0xc0] %vm3_vm4, %v1659_v6  }
 0x156   :  { %2998 = vst.msk [vmem:[%s6514_s1 + $0x125] ss:$176 sm:$0x3] %vm3_vm4, %v1677_v8   ;;  %2999 = vst.msk [vmem:[%s6514_s1 + $0x165] ss:$176 sm:$0xc] %vm3_vm4, %v1677_v8  }
 0x157   :  { %3000 = vst.msk [vmem:[%s6514_s1 + $0x505] ss:$-240 sm:$0x30] %vm3_vm4, %v1677_v8   ;;  %3001 = vst.msk [vmem:[%s6514_s1 + $0x885] ss:$-240 sm:$0xc0] %vm3_vm4, %v1677_v8   ;;  %v1910_v5 = vpop.permute.xlu1 %1909  }
 0x158   :  { %3005 = vst.msk [vmem:[%s6514_s1 + $0x165] ss:$560 sm:$0x3] %vm3_vm4, %v1700_v10   ;;  %3006 = vst.msk [vmem:[%s6514_s1 + $0x825] ss:$-656 sm:$0xc] %vm3_vm4, %v1700_v10   ;;  %v1957_v23 = vpop.permute.xlu0 %1956  }
 0x159   :  { %3007 = vst.msk [vmem:[%s6514_s1 - $0xbb] ss:$144 sm:$0x30] %vm3_vm4, %v1700_v10   ;;  %3008 = vst.msk [vmem:[%s6514_s1 - $0x3b] ss:$144 sm:$0xc0] %vm3_vm4, %v1700_v10  }
 0x15a   :  { %3010 = vst.msk [vmem:[%s6514_s1 + $0x95] sm:$0x1] %vm3_vm4, %v1713_v11   ;;  %3011 = vst.msk [vmem:[%s6514_s1 + $0x234] sm:$0x2] %vm3_vm4, %v1713_v11  }
 0x15b   :  { %3012 = vst.msk [vmem:[%s6514_s1 + $0x3d3] sm:$0x4] %vm3_vm4, %v1713_v11   ;;  %3013 = vst.msk [vmem:[%s6514_s1 + $0xb2] sm:$0x8] %vm3_vm4, %v1713_v11   ;;  %v1939_v7 = vpop.permute.xlu1 %1938  }
 0x15c   :  { %3014 = vst.msk [vmem:[%s6514_s1 + $0x251] sm:$0x10] %vm3_vm4, %v1713_v11   ;;  %3015 = vst.msk [vmem:[%s6514_s1 + $0x3f0] sm:$0x20] %vm3_vm4, %v1713_v11  }
 0x15d   :  { %3016 = vst.msk [vmem:[%s6514_s1 + $0xe6] ss:$-208 sm:$0x3] %vm3_vm4, %v1729_v12   ;;  %3017 = vst.msk [vmem:[%s6514_s1 + $0x426] ss:$-208 sm:$0xc] %vm3_vm4, %v1729_v12   ;;  %v1993_v26 = vpop.permute.xlu0 %1992  }
 0x15e   :  { %3018 = vst.msk [vmem:[%s6514_s1 - $0x83a] ss:$592 sm:$0x30] %vm3_vm4, %v1729_v12   ;;  %3019 = vst.msk [vmem:[%s6514_s1 + $0x1146] ss:$-624 sm:$0xc0] %vm3_vm4, %v1729_v12  }
 0x15f   :  { %3022 = vst.msk [vmem:[%s6514_s1 + $0x126] ss:$176 sm:$0x3] %vm3_vm4, %v1747_v13   ;;  %3023 = vst.msk [vmem:[%s6514_s1 + $0x166] ss:$176 sm:$0xc] %vm3_vm4, %v1747_v13   ;;  %v1980_v25 = vpop.permute.xlu1 %1979  }
 0x160   :  { %3024 = vst.msk [vmem:[%s6514_s1 + $0x506] ss:$-240 sm:$0x30] %vm3_vm4, %v1747_v13   ;;  %3025 = vst.msk [vmem:[%s6514_s1 + $0x886] ss:$-240 sm:$0xc0] %vm3_vm4, %v1747_v13  }
 0x161   :  { %3029 = vst.msk [vmem:[%s6514_s1 + $0x166] ss:$560 sm:$0x3] %vm3_vm4, %v1770_v14   ;;  %3030 = vst.msk [vmem:[%s6514_s1 + $0x826] ss:$-656 sm:$0xc] %vm3_vm4, %v1770_v14   ;;  %v2027_v28 = vpop.permute.xlu0 %2026  }
 0x162   :  { %3031 = vst.msk [vmem:[%s6514_s1 - $0xba] ss:$144 sm:$0x30] %vm3_vm4, %v1770_v14   ;;  %3032 = vst.msk [vmem:[%s6514_s1 - $0x3a] ss:$144 sm:$0xc0] %vm3_vm4, %v1770_v14  }
 0x163   :  { %3034 = vst.msk [vmem:[%s6514_s1 + $0x96] sm:$0x1] %vm3_vm4, %v1783_v15   ;;  %3035 = vst.msk [vmem:[%s6514_s1 + $0x235] sm:$0x2] %vm3_vm4, %v1783_v15   ;;  %v2009_v27 = vpop.permute.xlu1 %2008  }
 0x164   :  { %3036 = vst.msk [vmem:[%s6514_s1 + $0x3d4] sm:$0x4] %vm3_vm4, %v1783_v15   ;;  %3037 = vst.msk [vmem:[%s6514_s1 + $0xb3] sm:$0x8] %vm3_vm4, %v1783_v15  }
 0x165   :  { %3038 = vst.msk [vmem:[%s6514_s1 + $0x252] sm:$0x10] %vm3_vm4, %v1783_v15   ;;  %3039 = vst.msk [vmem:[%s6514_s1 + $0x3f1] sm:$0x20] %vm3_vm4, %v1783_v15  }
 0x166   :  { %3040 = vst.msk [vmem:[%s6514_s1 + $0xe7] ss:$-208 sm:$0x3] %vm3_vm4, %v1799_v17   ;;  %3041 = vst.msk [vmem:[%s6514_s1 + $0x427] ss:$-208 sm:$0xc] %vm3_vm4, %v1799_v17  }
 0x167   :  { %3042 = vst.msk [vmem:[%s6514_s1 - $0x839] ss:$592 sm:$0x30] %vm3_vm4, %v1799_v17   ;;  %3043 = vst.msk [vmem:[%s6514_s1 + $0x1147] ss:$-624 sm:$0xc0] %vm3_vm4, %v1799_v17   ;;  %v2050_v30 = vpop.permute.xlu1 %2049   ;;  %v2063_v31 = vpop.permute.xlu0 %2062  }
 0x168   :  { %3046 = vst.msk [vmem:[%s6514_s1 + $0x127] ss:$176 sm:$0x3] %vm3_vm4, %v1817_v18   ;;  %3047 = vst.msk [vmem:[%s6514_s1 + $0x167] ss:$176 sm:$0xc] %vm3_vm4, %v1817_v18  }
 0x169   :  { %3048 = vst.msk [vmem:[%s6514_s1 + $0x507] ss:$-240 sm:$0x30] %vm3_vm4, %v1817_v18   ;;  %3049 = vst.msk [vmem:[%s6514_s1 + $0x887] ss:$-240 sm:$0xc0] %vm3_vm4, %v1817_v18  }
 0x16a   :  { %3053 = vst.msk [vmem:[%s6514_s1 + $0x167] ss:$560 sm:$0x3] %vm3_vm4, %v1840_v19   ;;  %3054 = vst.msk [vmem:[%s6514_s1 + $0x827] ss:$-656 sm:$0xc] %vm3_vm4, %v1840_v19  }
 0x16b   :  { %3055 = vst.msk [vmem:[%s6514_s1 - $0xb9] ss:$144 sm:$0x30] %vm3_vm4, %v1840_v19   ;;  %3056 = vst.msk [vmem:[%s6514_s1 - $0x39] ss:$144 sm:$0xc0] %vm3_vm4, %v1840_v19   ;;  %v2079_v16 = vpop.permute.xlu1 %2078   ;;  %v2097_v33 = vpop.permute.xlu0 %2096  }
 0x16c   :  { %3058 = vst.msk [vmem:[%s6514_s1 + $0x97] sm:$0x1] %vm3_vm4, %v1853_v20   ;;  %3059 = vst.msk [vmem:[%s6514_s1 + $0x236] sm:$0x2] %vm3_vm4, %v1853_v20  }
 0x16d   :  { %3060 = vst.msk [vmem:[%s6514_s1 + $0x3d5] sm:$0x4] %vm3_vm4, %v1853_v20   ;;  %3061 = vst.msk [vmem:[%s6514_s1 + $0xb4] sm:$0x8] %vm3_vm4, %v1853_v20  }
 0x16e   :  { %3062 = vst.msk [vmem:[%s6514_s1 + $0x253] sm:$0x10] %vm3_vm4, %v1853_v20   ;;  %3063 = vst.msk [vmem:[%s6514_s1 + $0x3f2] sm:$0x20] %vm3_vm4, %v1853_v20  }
 0x16f   :  { %3064 = vst.msk [vmem:[%s6514_s1 + $0xe8] ss:$-208 sm:$0x3] %vm3_vm4, %v1869_v63   ;;  %3065 = vst.msk [vmem:[%s6514_s1 + $0x428] ss:$-208 sm:$0xc] %vm3_vm4, %v1869_v63   ;;  %v2120_v34 = vpop.permute.xlu1 %2119   ;;  %v2133_v35 = vpop.permute.xlu0 %2132  }
 0x170   :  { %3066 = vst.msk [vmem:[%s6514_s1 - $0x838] ss:$592 sm:$0x30] %vm3_vm4, %v1869_v63   ;;  %3067 = vst.msk [vmem:[%s6514_s1 + $0x1148] ss:$-624 sm:$0xc0] %vm3_vm4, %v1869_v63  }
 0x171   :  { %3070 = vst.msk [vmem:[%s6514_s1 + $0x128] ss:$176 sm:$0x3] %vm3_vm4, %v1887_v21   ;;  %3071 = vst.msk [vmem:[%s6514_s1 + $0x168] ss:$176 sm:$0xc] %vm3_vm4, %v1887_v21  }
 0x172   :  { %3072 = vst.msk [vmem:[%s6514_s1 + $0x508] ss:$-240 sm:$0x30] %vm3_vm4, %v1887_v21   ;;  %3073 = vst.msk [vmem:[%s6514_s1 + $0x888] ss:$-240 sm:$0xc0] %vm3_vm4, %v1887_v21  }
 0x173   :  { %3077 = vst.msk [vmem:[%s6514_s1 + $0x168] ss:$560 sm:$0x3] %vm3_vm4, %v1910_v5   ;;  %3078 = vst.msk [vmem:[%s6514_s1 + $0x828] ss:$-656 sm:$0xc] %vm3_vm4, %v1910_v5   ;;  %v2149_v36 = vpop.permute.xlu1 %2148   ;;  %v2167_v38 = vpop.permute.xlu0 %2166  }
 0x174   :  { %3079 = vst.msk [vmem:[%s6514_s1 - $0xb8] ss:$144 sm:$0x30] %vm3_vm4, %v1910_v5   ;;  %3080 = vst.msk [vmem:[%s6514_s1 - $0x38] ss:$144 sm:$0xc0] %vm3_vm4, %v1910_v5  }
 0x175   :  { %3082 = vst.msk [vmem:[%s6514_s1 + $0x98] sm:$0x1] %vm3_vm4, %v1923_v22   ;;  %3083 = vst.msk [vmem:[%s6514_s1 + $0x237] sm:$0x2] %vm3_vm4, %v1923_v22  }
 0x176   :  { %3084 = vst.msk [vmem:[%s6514_s1 + $0x3d6] sm:$0x4] %vm3_vm4, %v1923_v22   ;;  %3085 = vst.msk [vmem:[%s6514_s1 + $0xb5] sm:$0x8] %vm3_vm4, %v1923_v22  }
 0x177   :  { %3086 = vst.msk [vmem:[%s6514_s1 + $0x254] sm:$0x10] %vm3_vm4, %v1923_v22   ;;  %3087 = vst.msk [vmem:[%s6514_s1 + $0x3f3] sm:$0x20] %vm3_vm4, %v1923_v22   ;;  %v2190_v40 = vpop.permute.xlu1 %2189   ;;  %v2203_v41 = vpop.permute.xlu0 %2202  }
 0x178   :  { %3088 = vst.msk [vmem:[%s6514_s1 + $0xe9] ss:$-208 sm:$0x3] %vm3_vm4, %v1939_v7   ;;  %3089 = vst.msk [vmem:[%s6514_s1 + $0x429] ss:$-208 sm:$0xc] %vm3_vm4, %v1939_v7  }
 0x179   :  { %3090 = vst.msk [vmem:[%s6514_s1 - $0x837] ss:$592 sm:$0x30] %vm3_vm4, %v1939_v7   ;;  %3091 = vst.msk [vmem:[%s6514_s1 + $0x1149] ss:$-624 sm:$0xc0] %vm3_vm4, %v1939_v7  }
 0x17a   :  { %3094 = vst.msk [vmem:[%s6514_s1 + $0x129] ss:$176 sm:$0x3] %vm3_vm4, %v1957_v23   ;;  %3095 = vst.msk [vmem:[%s6514_s1 + $0x169] ss:$176 sm:$0xc] %vm3_vm4, %v1957_v23  }
 0x17b   :  { %3096 = vst.msk [vmem:[%s6514_s1 + $0x509] ss:$-240 sm:$0x30] %vm3_vm4, %v1957_v23   ;;  %3097 = vst.msk [vmem:[%s6514_s1 + $0x889] ss:$-240 sm:$0xc0] %vm3_vm4, %v1957_v23   ;;  %v2219_v42 = vpop.permute.xlu1 %2218  }
 0x17c   :  { %3101 = vst.msk [vmem:[%s6514_s1 + $0x169] ss:$560 sm:$0x3] %vm3_vm4, %v1980_v25   ;;  %3102 = vst.msk [vmem:[%s6514_s1 + $0x829] ss:$-656 sm:$0xc] %vm3_vm4, %v1980_v25  }
 0x17d   :  { %3103 = vst.msk [vmem:[%s6514_s1 - $0xb7] ss:$144 sm:$0x30] %vm3_vm4, %v1980_v25   ;;  %3104 = vst.msk [vmem:[%s6514_s1 - $0x37] ss:$144 sm:$0xc0] %vm3_vm4, %v1980_v25   ;;  %v2237_v44 = vpop.permute.xlu0 %2236  }
 0x17e   :  { %3106 = vst.msk [vmem:[%s6514_s1 + $0x99] sm:$0x1] %vm3_vm4, %v1993_v26   ;;  %3107 = vst.msk [vmem:[%s6514_s1 + $0x238] sm:$0x2] %vm3_vm4, %v1993_v26  }
 0x17f   :  { %3108 = vst.msk [vmem:[%s6514_s1 + $0x3d7] sm:$0x4] %vm3_vm4, %v1993_v26   ;;  %3109 = vst.msk [vmem:[%s6514_s1 + $0xb6] sm:$0x8] %vm3_vm4, %v1993_v26   ;;  %v2260_v3 = vpop.permute.xlu1 %2259  }
 0x180   :  { %3110 = vst.msk [vmem:[%s6514_s1 + $0x255] sm:$0x10] %vm3_vm4, %v1993_v26   ;;  %3111 = vst.msk [vmem:[%s6514_s1 + $0x3f4] sm:$0x20] %vm3_vm4, %v1993_v26  }
 0x181   :  { %3112 = vst.msk [vmem:[%s6514_s1 + $0xea] ss:$-208 sm:$0x3] %vm3_vm4, %v2009_v27   ;;  %3113 = vst.msk [vmem:[%s6514_s1 + $0x42a] ss:$-208 sm:$0xc] %vm3_vm4, %v2009_v27   ;;  %v2273_v45 = vpop.permute.xlu0 %2272  }
 0x182   :  { %3114 = vst.msk [vmem:[%s6514_s1 - $0x836] ss:$592 sm:$0x30] %vm3_vm4, %v2009_v27   ;;  %3115 = vst.msk [vmem:[%s6514_s1 + $0x114a] ss:$-624 sm:$0xc0] %vm3_vm4, %v2009_v27  }
 0x183   :  { %3118 = vst.msk [vmem:[%s6514_s1 + $0x12a] ss:$176 sm:$0x3] %vm3_vm4, %v2027_v28   ;;  %3119 = vst.msk [vmem:[%s6514_s1 + $0x16a] ss:$176 sm:$0xc] %vm3_vm4, %v2027_v28  }
 0x184   :  { %3120 = vst.msk [vmem:[%s6514_s1 + $0x50a] ss:$-240 sm:$0x30] %vm3_vm4, %v2027_v28   ;;  %3121 = vst.msk [vmem:[%s6514_s1 + $0x88a] ss:$-240 sm:$0xc0] %vm3_vm4, %v2027_v28  }
 0x185   :  { %3125 = vst.msk [vmem:[%s6514_s1 + $0x16a] ss:$560 sm:$0x3] %vm3_vm4, %v2050_v30   ;;  %3126 = vst.msk [vmem:[%s6514_s1 + $0x82a] ss:$-656 sm:$0xc] %vm3_vm4, %v2050_v30  }
 0x186   :  { %3127 = vst.msk [vmem:[%s6514_s1 - $0xb6] ss:$144 sm:$0x30] %vm3_vm4, %v2050_v30   ;;  %3128 = vst.msk [vmem:[%s6514_s1 - $0x36] ss:$144 sm:$0xc0] %vm3_vm4, %v2050_v30   ;;  %v2307_v47 = vpop.permute.xlu0 %2306  }
 0x187   :  { %3130 = vst.msk [vmem:[%s6514_s1 + $0x9a] sm:$0x1] %vm3_vm4, %v2063_v31   ;;  %3131 = vst.msk [vmem:[%s6514_s1 + $0x239] sm:$0x2] %vm3_vm4, %v2063_v31   ;;  %v2289_v9 = vpop.permute.xlu1 %2288  }
 0x188   :  { %3132 = vst.msk [vmem:[%s6514_s1 + $0x3d8] sm:$0x4] %vm3_vm4, %v2063_v31   ;;  %3133 = vst.msk [vmem:[%s6514_s1 + $0xb7] sm:$0x8] %vm3_vm4, %v2063_v31  }
 0x189   :  { %3134 = vst.msk [vmem:[%s6514_s1 + $0x256] sm:$0x10] %vm3_vm4, %v2063_v31   ;;  %3135 = vst.msk [vmem:[%s6514_s1 + $0x3f5] sm:$0x20] %vm3_vm4, %v2063_v31  }
 0x18a   :  { %3136 = vst.msk [vmem:[%s6514_s1 + $0xeb] ss:$-208 sm:$0x3] %vm3_vm4, %v2079_v16   ;;  %3137 = vst.msk [vmem:[%s6514_s1 + $0x42b] ss:$-208 sm:$0xc] %vm3_vm4, %v2079_v16  }
 0x18b   :  { %3138 = vst.msk [vmem:[%s6514_s1 - $0x835] ss:$592 sm:$0x30] %vm3_vm4, %v2079_v16   ;;  %3139 = vst.msk [vmem:[%s6514_s1 + $0x114b] ss:$-624 sm:$0xc0] %vm3_vm4, %v2079_v16   ;;  %v2330_v24 = vpop.permute.xlu1 %2329  }
 0x18c   :  { %3142 = vst.msk [vmem:[%s6514_s1 + $0x12b] ss:$176 sm:$0x3] %vm3_vm4, %v2097_v33   ;;  %3143 = vst.msk [vmem:[%s6514_s1 + $0x16b] ss:$176 sm:$0xc] %vm3_vm4, %v2097_v33  }
 0x18d   :  { %3144 = vst.msk [vmem:[%s6514_s1 + $0x50b] ss:$-240 sm:$0x30] %vm3_vm4, %v2097_v33   ;;  %3145 = vst.msk [vmem:[%s6514_s1 + $0x88b] ss:$-240 sm:$0xc0] %vm3_vm4, %v2097_v33  }
 0x18e   :  { %3149 = vst.msk [vmem:[%s6514_s1 + $0x16b] ss:$560 sm:$0x3] %vm3_vm4, %v2120_v34   ;;  %3150 = vst.msk [vmem:[%s6514_s1 + $0x82b] ss:$-656 sm:$0xc] %vm3_vm4, %v2120_v34  }
 0x18f   :  { %3151 = vst.msk [vmem:[%s6514_s1 - $0xb5] ss:$144 sm:$0x30] %vm3_vm4, %v2120_v34   ;;  %3152 = vst.msk [vmem:[%s6514_s1 - $0x35] ss:$144 sm:$0xc0] %vm3_vm4, %v2120_v34   ;;  %v2359_v32 = vpop.permute.xlu1 %2358  }
 0x190   :  { %3154 = vst.msk [vmem:[%s6514_s1 + $0x9b] sm:$0x1] %vm3_vm4, %v2133_v35   ;;  %3155 = vst.msk [vmem:[%s6514_s1 + $0x23a] sm:$0x2] %vm3_vm4, %v2133_v35  }
 0x191   :  { %3156 = vst.msk [vmem:[%s6514_s1 + $0x3d9] sm:$0x4] %vm3_vm4, %v2133_v35   ;;  %3157 = vst.msk [vmem:[%s6514_s1 + $0xb8] sm:$0x8] %vm3_vm4, %v2133_v35  }
 0x192   :  { %3158 = vst.msk [vmem:[%s6514_s1 + $0x257] sm:$0x10] %vm3_vm4, %v2133_v35   ;;  %3159 = vst.msk [vmem:[%s6514_s1 + $0x3f6] sm:$0x20] %vm3_vm4, %v2133_v35  }
 0x193   :  { %3160 = vst.msk [vmem:[%s6514_s1 + $0xec] ss:$-208 sm:$0x3] %vm3_vm4, %v2149_v36   ;;  %3161 = vst.msk [vmem:[%s6514_s1 + $0x42c] ss:$-208 sm:$0xc] %vm3_vm4, %v2149_v36  }
 0x194   :  { %3162 = vst.msk [vmem:[%s6514_s1 - $0x834] ss:$592 sm:$0x30] %vm3_vm4, %v2149_v36   ;;  %3163 = vst.msk [vmem:[%s6514_s1 + $0x114c] ss:$-624 sm:$0xc0] %vm3_vm4, %v2149_v36  }
 0x195   :  { %3166 = vst.msk [vmem:[%s6514_s1 + $0x12c] ss:$176 sm:$0x3] %vm3_vm4, %v2167_v38   ;;  %3167 = vst.msk [vmem:[%s6514_s1 + $0x16c] ss:$176 sm:$0xc] %vm3_vm4, %v2167_v38  }
 0x196   :  { %3168 = vst.msk [vmem:[%s6514_s1 + $0x50c] ss:$-240 sm:$0x30] %vm3_vm4, %v2167_v38   ;;  %3169 = vst.msk [vmem:[%s6514_s1 + $0x88c] ss:$-240 sm:$0xc0] %vm3_vm4, %v2167_v38  }
 0x197   :  { %3173 = vst.msk [vmem:[%s6514_s1 + $0x16c] ss:$560 sm:$0x3] %vm3_vm4, %v2190_v40   ;;  %3174 = vst.msk [vmem:[%s6514_s1 + $0x82c] ss:$-656 sm:$0xc] %vm3_vm4, %v2190_v40  }
 0x198   :  { %3175 = vst.msk [vmem:[%s6514_s1 - $0xb4] ss:$144 sm:$0x30] %vm3_vm4, %v2190_v40   ;;  %3176 = vst.msk [vmem:[%s6514_s1 - $0x34] ss:$144 sm:$0xc0] %vm3_vm4, %v2190_v40  }
 0x199   :  { %3178 = vst.msk [vmem:[%s6514_s1 + $0x9c] sm:$0x1] %vm3_vm4, %v2203_v41   ;;  %3179 = vst.msk [vmem:[%s6514_s1 + $0x23b] sm:$0x2] %vm3_vm4, %v2203_v41   ;;  %v2343_v29 = vpop.permute.xlu0 %2342  }
 0x19a   :  { %3180 = vst.msk [vmem:[%s6514_s1 + $0x3da] sm:$0x4] %vm3_vm4, %v2203_v41   ;;  %3181 = vst.msk [vmem:[%s6514_s1 + $0xb9] sm:$0x8] %vm3_vm4, %v2203_v41  }
 0x19b   :  { %3182 = vst.msk [vmem:[%s6514_s1 + $0x258] sm:$0x10] %vm3_vm4, %v2203_v41   ;;  %3183 = vst.msk [vmem:[%s6514_s1 + $0x3f7] sm:$0x20] %vm3_vm4, %v2203_v41  }
 0x19c   :  { %3184 = vst.msk [vmem:[%s6514_s1 + $0xed] ss:$-208 sm:$0x3] %vm3_vm4, %v2219_v42   ;;  %3185 = vst.msk [vmem:[%s6514_s1 + $0x42d] ss:$-208 sm:$0xc] %vm3_vm4, %v2219_v42  }
 0x19d   :  { %3186 = vst.msk [vmem:[%s6514_s1 - $0x833] ss:$592 sm:$0x30] %vm3_vm4, %v2219_v42   ;;  %3187 = vst.msk [vmem:[%s6514_s1 + $0x114d] ss:$-624 sm:$0xc0] %vm3_vm4, %v2219_v42   ;;  %v2377_v37 = vpop.permute.xlu0 %2376  }
 0x19e   :  { %3190 = vst.msk [vmem:[%s6514_s1 + $0x12d] ss:$176 sm:$0x3] %vm3_vm4, %v2237_v44   ;;  %3191 = vst.msk [vmem:[%s6514_s1 + $0x16d] ss:$176 sm:$0xc] %vm3_vm4, %v2237_v44   ;;  %v2400_v39 = vpop.permute.xlu1 %2399  }
 0x19f   :  { %3192 = vst.msk [vmem:[%s6514_s1 + $0x50d] ss:$-240 sm:$0x30] %vm3_vm4, %v2237_v44   ;;  %3193 = vst.msk [vmem:[%s6514_s1 + $0x88d] ss:$-240 sm:$0xc0] %vm3_vm4, %v2237_v44  }
 0x1a0   :  { %3197 = vst.msk [vmem:[%s6514_s1 + $0x16d] ss:$560 sm:$0x3] %vm3_vm4, %v2260_v3   ;;  %3198 = vst.msk [vmem:[%s6514_s1 + $0x82d] ss:$-656 sm:$0xc] %vm3_vm4, %v2260_v3  }
 0x1a1   :  { %3199 = vst.msk [vmem:[%s6514_s1 - $0xb3] ss:$144 sm:$0x30] %vm3_vm4, %v2260_v3   ;;  %3200 = vst.msk [vmem:[%s6514_s1 - $0x33] ss:$144 sm:$0xc0] %vm3_vm4, %v2260_v3   ;;  %v2413_v43 = vpop.permute.xlu0 %2412  }
 0x1a2   :  { %3202 = vst.msk [vmem:[%s6514_s1 + $0x9d] sm:$0x1] %vm3_vm4, %v2273_v45   ;;  %3203 = vst.msk [vmem:[%s6514_s1 + $0x23c] sm:$0x2] %vm3_vm4, %v2273_v45  }
 0x1a3   :  { %3204 = vst.msk [vmem:[%s6514_s1 + $0x3db] sm:$0x4] %vm3_vm4, %v2273_v45   ;;  %3205 = vst.msk [vmem:[%s6514_s1 + $0xba] sm:$0x8] %vm3_vm4, %v2273_v45  }
 0x1a4   :  { %3206 = vst.msk [vmem:[%s6514_s1 + $0x259] sm:$0x10] %vm3_vm4, %v2273_v45   ;;  %3207 = vst.msk [vmem:[%s6514_s1 + $0x3f8] sm:$0x20] %vm3_vm4, %v2273_v45  }
 0x1a5   :  { %3208 = vst.msk [vmem:[%s6514_s1 + $0xee] ss:$-208 sm:$0x3] %vm3_vm4, %v2289_v9   ;;  %3209 = vst.msk [vmem:[%s6514_s1 + $0x42e] ss:$-208 sm:$0xc] %vm3_vm4, %v2289_v9  }
 0x1a6   :  { %3210 = vst.msk [vmem:[%s6514_s1 - $0x832] ss:$592 sm:$0x30] %vm3_vm4, %v2289_v9   ;;  %3211 = vst.msk [vmem:[%s6514_s1 + $0x114e] ss:$-624 sm:$0xc0] %vm3_vm4, %v2289_v9  }
 0x1a7   :  { %3214 = vst.msk [vmem:[%s6514_s1 + $0x12e] ss:$176 sm:$0x3] %vm3_vm4, %v2307_v47   ;;  %3215 = vst.msk [vmem:[%s6514_s1 + $0x16e] ss:$176 sm:$0xc] %vm3_vm4, %v2307_v47  }
 0x1a8   :  { %3216 = vst.msk [vmem:[%s6514_s1 + $0x50e] ss:$-240 sm:$0x30] %vm3_vm4, %v2307_v47   ;;  %3217 = vst.msk [vmem:[%s6514_s1 + $0x88e] ss:$-240 sm:$0xc0] %vm3_vm4, %v2307_v47  }
 0x1a9   :  { %3221 = vst.msk [vmem:[%s6514_s1 + $0x16e] ss:$560 sm:$0x3] %vm3_vm4, %v2330_v24   ;;  %3222 = vst.msk [vmem:[%s6514_s1 + $0x82e] ss:$-656 sm:$0xc] %vm3_vm4, %v2330_v24  }
 0x1aa   :  { %3223 = vst.msk [vmem:[%s6514_s1 - $0xb2] ss:$144 sm:$0x30] %vm3_vm4, %v2330_v24   ;;  %3224 = vst.msk [vmem:[%s6514_s1 - $0x32] ss:$144 sm:$0xc0] %vm3_vm4, %v2330_v24  }
 0x1ab   :  { %3226 = vst.msk [vmem:[%s6514_s1 + $0x9e] sm:$0x1] %vm3_vm4, %v2343_v29   ;;  %3227 = vst.msk [vmem:[%s6514_s1 + $0x23d] sm:$0x2] %vm3_vm4, %v2343_v29  }
 0x1ac   :  { %3228 = vst.msk [vmem:[%s6514_s1 + $0x3dc] sm:$0x4] %vm3_vm4, %v2343_v29   ;;  %3229 = vst.msk [vmem:[%s6514_s1 + $0xbb] sm:$0x8] %vm3_vm4, %v2343_v29  }
 0x1ad   :  { %3230 = vst.msk [vmem:[%s6514_s1 + $0x25a] sm:$0x10] %vm3_vm4, %v2343_v29   ;;  %3231 = vst.msk [vmem:[%s6514_s1 + $0x3f9] sm:$0x20] %vm3_vm4, %v2343_v29  }
 0x1ae   :  { %3232 = vst.msk [vmem:[%s6514_s1 + $0xef] ss:$-208 sm:$0x3] %vm3_vm4, %v2359_v32   ;;  %3233 = vst.msk [vmem:[%s6514_s1 + $0x42f] ss:$-208 sm:$0xc] %vm3_vm4, %v2359_v32  }
 0x1af   :  { %3234 = vst.msk [vmem:[%s6514_s1 - $0x831] ss:$592 sm:$0x30] %vm3_vm4, %v2359_v32   ;;  %3235 = vst.msk [vmem:[%s6514_s1 + $0x114f] ss:$-624 sm:$0xc0] %vm3_vm4, %v2359_v32  }
 0x1b0   :  { %3238 = vst.msk [vmem:[%s6514_s1 + $0x12f] ss:$176 sm:$0x3] %vm3_vm4, %v2377_v37   ;;  %3239 = vst.msk [vmem:[%s6514_s1 + $0x16f] ss:$176 sm:$0xc] %vm3_vm4, %v2377_v37  }
 0x1b1   :  { %3240 = vst.msk [vmem:[%s6514_s1 + $0x50f] ss:$-240 sm:$0x30] %vm3_vm4, %v2377_v37   ;;  %3241 = vst.msk [vmem:[%s6514_s1 + $0x88f] ss:$-240 sm:$0xc0] %vm3_vm4, %v2377_v37  }
 0x1b2   :  { %3245 = vst.msk [vmem:[%s6514_s1 + $0x16f] ss:$560 sm:$0x3] %vm3_vm4, %v2400_v39   ;;  %3246 = vst.msk [vmem:[%s6514_s1 + $0x82f] ss:$-656 sm:$0xc] %vm3_vm4, %v2400_v39  }
 0x1b3   :  { %3247 = vst.msk [vmem:[%s6514_s1 - $0xb1] ss:$144 sm:$0x30] %vm3_vm4, %v2400_v39   ;;  %3248 = vst.msk [vmem:[%s6514_s1 - $0x31] ss:$144 sm:$0xc0] %vm3_vm4, %v2400_v39  }
 0x1b4   :  { %3250 = vst.msk [vmem:[%s6514_s1 + $0x9f] sm:$0x1] %vm3_vm4, %v2413_v43   ;;  %3251 = vst.msk [vmem:[%s6514_s1 + $0x23e] sm:$0x2] %vm3_vm4, %v2413_v43  }
 0x1b5   :  { %3252 = vst.msk [vmem:[%s6514_s1 + $0x3dd] sm:$0x4] %vm3_vm4, %v2413_v43   ;;  %3253 = vst.msk [vmem:[%s6514_s1 + $0xbc] sm:$0x8] %vm3_vm4, %v2413_v43  }
 0x1b6   :  { %3254 = vst.msk [vmem:[%s6514_s1 + $0x25b] sm:$0x10] %vm3_vm4, %v2413_v43   ;;  %3255 = vst.msk [vmem:[%s6514_s1 + $0x3fa] sm:$0x20] %vm3_vm4, %v2413_v43  }

// kernel: cnn1dtep_forward.1
= control target key start
LH: loop header
LB: loop body
LE: loop exit
PB: predicated region body
PF: predicated region fallthrough
CT: control target
= control target key end

     0   :  { %14 = vsyncpa [#allocation5], 0  ;;  %s4880_s0 = inlined_call_operand.vmem [shape: bf16[2,4,80,260], index: 0, kind: input, shape index: {}]   ;;  %s4881_s1 = inlined_call_operand.vmem [shape: bf16[260,208], index: 1, kind: input, shape index: {}]   ;;  %s4882_s2 = inlined_call_operand.vmem [shape: f32[1,208], index: 2, kind: input, shape index: {}]   ;;  %s4883_s3 = inlined_call_operand.vmem [shape: f32[20,208], index: 3, kind: input, shape index: {}]   ;;  %s4884_s4 = inlined_call_operand.vmem [shape: f32[4,208], index: 4, kind: input, shape index: {}]   ;;  %s4885_s5 = inlined_call_operand.vmem [shape: bf16[4,208,256], index: 5, kind: input, shape index: {}]   ;;  %s4886_s6 = inlined_call_operand.vmem [shape: f32[1,256], index: 6, kind: input, shape index: {}]   ;;  %s4887_s7 = inlined_call_operand.vmem [shape: bf16[256,128], index: 7, kind: input, shape index: {}]   ;;  %s4888_s8 = inlined_call_operand.vmem [shape: f32[1,128], index: 8, kind: input, shape index: {}]   ;;  %s4889_s9 = inlined_call_operand.hbm [shape: f32[32,128], index: 9, kind: output, shape index: {}]  }
   0x1   :  { %16 = vsyncpa [#allocation5 + $0x1], 0  ;;  %s3643_s30 = smov 0   ;;  %s3645_s10 = smov 0  }
   0x2   :  { %s3647_s11 = smov 0   ;;  %s3649_s12 = smov 0  }
   0x3 LB: > { %s2810_s13 = sadd.s32 4294967295, %s3589_s12   ;;  %s2811_s14 = sadd.s32 4294967294, %s3589_s12   ;;  %s3589_s12 = sphi %s3649_s12, %s4994_s12   ;;  %s3585_s11 = sphi %s3647_s11, %s4993_s11   ;;  %s3581_s10 = sphi %s3645_s10, %s4992_s10   ;;  %s3577_s30 = sphi %s3643_s30, %s4991_s30  }
   0x4   : > { %s3666_s15 = sadd.s32 1, %s3589_s12   ;;  %s29_s16 = sadd.s32 1, %s3585_s11 }
   0x5   : > { %s26_s17 = ssub.s32 %s3589_s12, %s3666_s15  ;;  %p36_p0 = scmp.ne.s32.totalorder %s3585_s11, %s3581_s10 }
   0x6   : > { %p27_p1 = scmp.eq.s32.totalorder %s26_s17, 0  ;;  %p37_p2 = scmp.eq.s32.totalorder %s3589_s12, 0 }
   0x7   : > { %p234_p3 = scmp.eq.s32.totalorder %s2810_s13, 3  ;;  %p239_p4 = scmp.ne.s32.totalorder %s3581_s10, %s3577_s30 }
   0x8   : > { %s3679_s18 = scalar_select %p27_p1, %s3585_s11, %s29_s16  }
   0x9   : > { %p38_p5 = por %p37_p2, %p36_p0  ;;  %p3681_p6 = por %p234_p3, %p36_p0 }
   0xa   : > { %p240_p7 = scmp.eq.s32.totalorder %s2811_s14, 3  ;;  %p2813_p9 = scmp.ge.s32.totalorder %s3589_s12, 4 }
   0xc   : > { %p3685_p8 = por %p240_p7, %p239_p4  ;;  %280 = sbr.rel (%p2813_p9) target bundleno = 47 (0x2f), region = 48 }
  0x13   : > { %283 = sbr.rel (!%p38_p5) target bundleno = 47 (0x2f), region = 52  ;;  %s285_s21 = sand.u32 (%p38_p5), 1, %s3585_s11  }
  0x14   : > { %s3223_s22 = smul.u32 (%p38_p5), 120, %s3589_s12 }
  0x15   : > { %s3222_s23 = smul.u32 (%p38_p5), 240, %s285_s21 }
  0x16   : > { %s3695_s26 = scalar_lea.vmem (%p38_p5), %s4880_s0, %s3223_s22 }
  0x17   : > { %v305_v0 = vld [vmem:[%s3695_s26] sm:$0xff] (%p38_p5)  ;;  %v307_v1 = vld [vmem:[%s3695_s26 + $0xc] sm:$0xff] (%p38_p5)  ;;  %v309_v2 = vld [vmem:[%s3695_s26 + $0x18] sm:$0xff] (%p38_p5)  ;;  %s3700_s27 = scalar_lea.vmem (%p38_p5), [#allocation3], %s3222_s23 }
  0x18   : > { %306 = vst [vmem:[%s3700_s27] sm:$0xff] (%p38_p5), %v305_v0  ;;  %308 = vst [vmem:[%s3700_s27 + $0xc] sm:$0xff] (%p38_p5), %v307_v1  ;;  %v311_v3 = vld [vmem:[%s3695_s26 + $0x24] sm:$0xff] (%p38_p5)  ;;  %v313_v4 = vld [vmem:[%s3695_s26 + $0x30] sm:$0xff] (%p38_p5) }
  0x19   : > { %310 = vst [vmem:[%s3700_s27 + $0x18] sm:$0xff] (%p38_p5), %v309_v2  ;;  %v315_v5 = vld [vmem:[%s3695_s26 + $0x3c] sm:$0xff] (%p38_p5)  ;;  %312 = vst [vmem:[%s3700_s27 + $0x24] sm:$0xff] (%p38_p5), %v311_v3  ;;  %v317_v6 = vld [vmem:[%s3695_s26 + $0x48] sm:$0xff] (%p38_p5) }
  0x1a   : > { %314 = vst [vmem:[%s3700_s27 + $0x30] sm:$0xff] %v313_v4  ;;  %316 = vst [vmem:[%s3700_s27 + $0x3c] sm:$0xff] %v315_v5  ;;  %v319_v7 = vld [vmem:[%s3695_s26 + $0x54] sm:$0xff]  ;;  %v321_v8 = vld [vmem:[%s3695_s26 + $0x60] sm:$0xff] }
  0x1b   : > { %318 = vst [vmem:[%s3700_s27 + $0x48] sm:$0xff] %v317_v6  ;;  %320 = vst [vmem:[%s3700_s27 + $0x54] sm:$0xff] %v319_v7  ;;  %v323_v9 = vld [vmem:[%s3695_s26 + $0x6c] sm:$0xff]  ;;  %v325_v10 = vld [vmem:[%s3695_s26 + $0x1e0] sm:$0xff] }
  0x1c   : > { %322 = vst [vmem:[%s3700_s27 + $0x60] sm:$0xff] %v321_v8  ;;  %v327_v11 = vld [vmem:[%s3695_s26 + $0x1ec] sm:$0xff]  ;;  %324 = vst [vmem:[%s3700_s27 + $0x6c] sm:$0xff] %v323_v9  ;;  %v329_v12 = vld [vmem:[%s3695_s26 + $0x1f8] sm:$0xff] }
  0x1d   : > { %326 = vst [vmem:[%s3700_s27 + $0x78] sm:$0xff] %v325_v10  ;;  %328 = vst [vmem:[%s3700_s27 + $0x84] sm:$0xff] %v327_v11  ;;  %v331_v13 = vld [vmem:[%s3695_s26 + $0x204] sm:$0xff]  ;;  %v333_v14 = vld [vmem:[%s3695_s26 + $0x210] sm:$0xff] }
  0x1e   : > { %330 = vst [vmem:[%s3700_s27 + $0x90] sm:$0xff] %v329_v12  ;;  %332 = vst [vmem:[%s3700_s27 + $0x9c] sm:$0xff] %v331_v13  ;;  %v335_v15 = vld [vmem:[%s3695_s26 + $0x21c] sm:$0xff]  ;;  %v337_v16 = vld [vmem:[%s3695_s26 + $0x228] sm:$0xff] }
  0x1f   : > { %334 = vst [vmem:[%s3700_s27 + $0xa8] sm:$0xff] %v333_v14  ;;  %v339_v17 = vld [vmem:[%s3695_s26 + $0x234] sm:$0xff]  ;;  %336 = vst [vmem:[%s3700_s27 + $0xb4] sm:$0xff] %v335_v15  ;;  %v341_v18 = vld [vmem:[%s3695_s26 + $0x240] sm:$0xff] }
  0x20   : > { %338 = vst [vmem:[%s3700_s27 + $0xc0] sm:$0xff] %v337_v16  ;;  %340 = vst [vmem:[%s3700_s27 + $0xcc] sm:$0xff] %v339_v17  ;;  %v343_v19 = vld [vmem:[%s3695_s26 + $0x24c] sm:$0xff]  ;;  %v2815_v20 = vld [vmem:[%s3695_s26 + $0x8] sm:$0xf] }
  0x21   : > { %342 = vst [vmem:[%s3700_s27 + $0xd8] sm:$0xff] %v341_v18  ;;  %344 = vst [vmem:[%s3700_s27 + $0xe4] sm:$0xff] %v343_v19  ;;  %v2817_v21 = vld [vmem:[%s3695_s26 + $0x14] sm:$0xf]  ;;  %v2819_v22 = vld [vmem:[%s3695_s26 + $0x20] sm:$0xf] }
  0x22   : > { %2816 = vst [vmem:[%s3700_s27 + $0x8] sm:$0xf] %v2815_v20  ;;  %v2821_v23 = vld [vmem:[%s3695_s26 + $0x2c] sm:$0xf]  ;;  %2818 = vst [vmem:[%s3700_s27 + $0x14] sm:$0xf] %v2817_v21 }
  0x23   : > { %2820 = vst [vmem:[%s3700_s27 + $0x20] sm:$0xf] %v2819_v22  ;;  %2822 = vst [vmem:[%s3700_s27 + $0x2c] sm:$0xf] %v2821_v23  ;;  %v2823_v24 = vld [vmem:[%s3695_s26 + $0x38] sm:$0xf] }
  0x24   : > { %v2825_v25 = vld [vmem:[%s3695_s26 + $0x44] sm:$0xf]  ;;  %v2827_v26 = vld [vmem:[%s3695_s26 + $0x50] sm:$0xf]  ;;  %2824 = vst [vmem:[%s3700_s27 + $0x38] sm:$0xf] %v2823_v24 }
  0x25   : > { %2826 = vst [vmem:[%s3700_s27 + $0x44] sm:$0xf] %v2825_v25  ;;  %2828 = vst [vmem:[%s3700_s27 + $0x50] sm:$0xf] %v2827_v26  ;;  %v2829_v27 = vld [vmem:[%s3695_s26 + $0x5c] sm:$0xf] }
  0x26   : > { %v2831_v28 = vld [vmem:[%s3695_s26 + $0x68] sm:$0xf]  ;;  %v2833_v29 = vld [vmem:[%s3695_s26 + $0x74] sm:$0xf]  ;;  %2830 = vst [vmem:[%s3700_s27 + $0x5c] sm:$0xf] %v2829_v27 }
  0x27   : > { %2832 = vst [vmem:[%s3700_s27 + $0x68] sm:$0xf] %v2831_v28  ;;  %2834 = vst [vmem:[%s3700_s27 + $0x74] sm:$0xf] %v2833_v29  ;;  %v2835_v30 = vld [vmem:[%s3695_s26 + $0x1e8] sm:$0xf] }
  0x28   : > { %v2837_v31 = vld [vmem:[%s3695_s26 + $0x1f4] sm:$0xf]  ;;  %v2839_v32 = vld [vmem:[%s3695_s26 + $0x200] sm:$0xf]  ;;  %2836 = vst [vmem:[%s3700_s27 + $0x80] sm:$0xf] %v2835_v30 }
  0x29   : > { %2838 = vst [vmem:[%s3700_s27 + $0x8c] sm:$0xf] %v2837_v31  ;;  %2840 = vst [vmem:[%s3700_s27 + $0x98] sm:$0xf] %v2839_v32  ;;  %v2841_v33 = vld [vmem:[%s3695_s26 + $0x20c] sm:$0xf] }
  0x2a   : > { %v2843_v34 = vld [vmem:[%s3695_s26 + $0x218] sm:$0xf]  ;;  %v2845_v35 = vld [vmem:[%s3695_s26 + $0x224] sm:$0xf]  ;;  %2842 = vst [vmem:[%s3700_s27 + $0xa4] sm:$0xf] %v2841_v33 }
  0x2b   : > { %2844 = vst [vmem:[%s3700_s27 + $0xb0] sm:$0xf] %v2843_v34  ;;  %2846 = vst [vmem:[%s3700_s27 + $0xbc] sm:$0xf] %v2845_v35  ;;  %v2847_v36 = vld [vmem:[%s3695_s26 + $0x230] sm:$0xf] }
  0x2c   : > { %v2849_v37 = vld [vmem:[%s3695_s26 + $0x23c] sm:$0xf]  ;;  %v2851_v38 = vld [vmem:[%s3695_s26 + $0x248] sm:$0xf]  ;;  %2848 = vst [vmem:[%s3700_s27 + $0xc8] sm:$0xf] %v2847_v36 }
  0x2d   : > { %2850 = vst [vmem:[%s3700_s27 + $0xd4] sm:$0xf] %v2849_v37  ;;  %2852 = vst [vmem:[%s3700_s27 + $0xe0] sm:$0xf] %v2851_v38  ;;  %v2853_v39 = vld [vmem:[%s3695_s26 + $0x254] sm:$0xf] }
  0x2e   : > { %2854 = vst [vmem:[%s3700_s27 + $0xec] sm:$0xf] %v2853_v39 }
  0x2f PF: > { %p2855_p10 = scmp.ge.s32.totalorder %s3589_s12, 1  ;;  %p396_p11 = scmp.lt.s32.totalorder %s3589_s12, 5 }
  0x31   : > { %p397_p12 = pnand %p2855_p10, %p396_p11 }
  0x33   : > { %400 = sbr.rel (%p397_p12) target bundleno = 951 (0x3b7), region = 78 }
  0x3a   : > { %v3265_v40 = vld [vmem:[%s4881_s1 + $0x4] ss:$8 sps:$4 sm:$0xff]   ;;  %vm749_vm0 = vcmask 1041408   ;;  %v3268_v42 = vld [vmem:[%s4881_s1] ss:$8 sps:$4 sm:$0xff]   ;;  %v3591_v43 = vmov 0  }
  0x3b   : > { %v471_v41 = vld [vmem:[%s4881_s1 + $0x100] sm:$0x33]  ;;  %871 = vmatprep.mubr.bf16.mxu1 %v3591_v43  ;;  %s3792_s22 = sand.u32 1, %s3581_s10   ;;  %756 = vmatprep.subr.bf16.mxu0 %v3265_v40  ;;  %v3270_v46 = vld [vmem:[%s4881_s1 + $0x14] ss:$8 sps:$4 sm:$0xff]   ;;  %vm733_vm1 = vcmask 31744  }
  0x3c   : > { %v3794_v44 = vcombine.high %v471_v41, %v471_v41  ;;  %v2904_v45 = vcombine.low %v471_v41, %v471_v41  ;;  %s3224_s25 = smul.u32 240, %s3792_s22  ;;  %757 = vmatpush1.bf16.msra.mxu0 %v3268_v42  ;;  %v3273_v47 = vld [vmem:[%s4881_s1 + $0x10] ss:$8 sps:$4 sm:$0xff]   ;;  %v3274_v49 = vld [vmem:[%s4881_s1 + $0x24] ss:$8 sps:$4 sm:$0xff]   ;;  %vm1271_vm2 = vcmask 654336  }
  0x3d   : > { %758 = vmatprep.subr.bf16.mxu0 %v3270_v46  ;;  %v3276_v51 = vld [vmem:[%s4881_s1 + $0x20] ss:$8 sps:$4 sm:$0xff]   ;;  %v3277_v52 = vld [vmem:[%s4881_s1 + $0x34] ss:$8 sps:$4 sm:$0xff]   ;;  %v3279_v53 = vld [vmem:[%s4881_s1 + $0x30] ss:$8 sps:$4 sm:$0xff]  }
  0x3e   : > { %2906 = vmatprep.subr.msk.bf16.mxu1 %vm749_vm0, %v3794_v44  ;;  %v3806_v48 = vsel %vm749_vm0, %v2904_v45, 0  ;;  %s3812_s14 = scalar_lea.vmem [#allocation3], %s3224_s25  ;;  %v3280_v54 = vld [vmem:[%s4881_s1 + $0x44] ss:$8 sps:$4 sm:$0xff]   ;;  %v3282_v56 = vld [vmem:[%s4881_s1 + $0x40] ss:$8 sps:$4 sm:$0xff]  }
  0x3f   : > { %840 = vmatpush1.bf16.msra.mxu1 %v3806_v48  ;;  %v3272_v50 = vld [vmem:[%s3812_s14 + $0x8] ss:$12 sps:$4 sm:$0xff]   ;;  %v3295_v55 = vld [vmem:[%s3812_s14 + $0x20] ss:$12 sps:$4 sm:$0xff]   ;;  %v3302_v60 = vld [vmem:[%s3812_s14 + $0x38] ss:$12 sps:$4 sm:$0xff]  }
  0x40   : > { %1033 = vmatprep.subr.bf16.mxu1 %v3265_v40  ;;  %759 = vmatpush1.bf16.msra.mxu0 %v3273_v47  ;;  %v3283_v57 = vld [vmem:[%s4881_s1 + $0x54] ss:$8 sps:$4 sm:$0xff]   ;;  %v3285_v58 = vld [vmem:[%s4881_s1 + $0x50] ss:$8 sps:$4 sm:$0xff]   ;;  %v3286_v59 = vld [vmem:[%s4881_s1 + $0x64] ss:$8 sps:$4 sm:$0xff]  }
  0x41   : > { %760 = vmatprep.subr.bf16.mxu0 %v3274_v49  ;;  %v3288_v61 = vld [vmem:[%s4881_s1 + $0x60] ss:$8 sps:$4 sm:$0xff]   ;;  %v3289_v62 = vld [vmem:[%s4881_s1 + $0x74] ss:$8 sps:$4 sm:$0xff]   ;;  %v3291_v63 = vld [vmem:[%s4881_s1 + $0x70] ss:$8 sps:$4 sm:$0xff]  }
  0x42   : > { %2907 = vmatmul.mubr.msk.bf16.vlgmr.msra.gmra.mrb[0].mxu1 %vm733_vm1, %v3272_v50  ;;  %v3292_v0 = vld [vmem:[%s4881_s1 + $0x84] ss:$8 sps:$4 sm:$0xff]   ;;  %v3294_v3 = vld [vmem:[%s4881_s1 + $0x80] ss:$8 sps:$4 sm:$0xff]   ;;  %v3296_v4 = vld [vmem:[%s4881_s1 + $0x94] ss:$8 sps:$4 sm:$0xff]  }
  0x43   : > { %1034 = vmatpush1.bf16.msra.mxu1 %v3268_v42  ;;  %881 = vmatprep.mubr.bf16.mxu1 %v3591_v43  ;;  %v3322_v1 = vld [vmem:[%s3812_s14 + $0x4] ss:$12 sps:$4 sm:$0xff]   ;;  %v3316_v7 = vld [vmem:[%s3812_s14 + $0x68] ss:$12 sps:$4 sm:$0xff]   ;;  %v3320_v20 = vld [vmem:[%s3812_s14] ss:$12 sps:$4 sm:$0xff]  }
  0x44   : > { %1035 = vmatprep.subr.bf16.mxu1 %v3270_v46  ;;  %761 = vmatpush1.bf16.msra.mxu0 %v3276_v51  ;;  %v3309_v2 = vld [vmem:[%s3812_s14 + $0x50] ss:$12 sps:$4 sm:$0xff]   ;;  %v3323_v22 = vld [vmem:[%s3812_s14 + $0x78] ss:$12 sps:$4 sm:$0xff]   ;;  %v3329_v23 = vld [vmem:[%s3812_s14 + $0x94] ss:$12 sps:$4 sm:$0xff]  }
  0x45   : > { %762 = vmatprep.subr.bf16.mxu0 %v3277_v52  ;;  %788 = vmatprep.mubr.bf16.mxu0 %v3322_v1  ;;  %v3298_v5 = vld [vmem:[%s4881_s1 + $0x90] ss:$8 sps:$4 sm:$0xff]   ;;  %v3299_v6 = vld [vmem:[%s4881_s1 + $0xa4] ss:$8 sps:$4 sm:$0xff]   ;;  %v3301_v9 = vld [vmem:[%s4881_s1 + $0xa0] ss:$8 sps:$4 sm:$0xff]  }
  0x46   : > { %v3325_v8 = vld [vmem:[%s3812_s14 + $0x7c] ss:$12 sps:$4 sm:$0xff]   ;;  %v3328_v24 = vld [vmem:[%s3812_s14 + $0x18] ss:$12 sps:$4 sm:$0xff]   ;;  %v3332_v25 = vld [vmem:[%s3812_s14 + $0x34] ss:$12 sps:$4 sm:$0xff]  }
  0x47   : > { %1036 = vmatpush1.bf16.msra.mxu1 %v3273_v47  ;;  %v3303_v10 = vld [vmem:[%s4881_s1 + $0xb4] ss:$8 sps:$4 sm:$0xff]   ;;  %v3305_v11 = vld [vmem:[%s4881_s1 + $0xb0] ss:$8 sps:$4 sm:$0xff]   ;;  %v3306_v12 = vld [vmem:[%s4881_s1 + $0xc4] ss:$8 sps:$4 sm:$0xff]  }
  0x48   : > { %1037 = vmatprep.subr.bf16.mxu1 %v3274_v49  ;;  %763 = vmatpush1.bf16.msra.mxu0 %v3279_v53  ;;  %v3308_v13 = vld [vmem:[%s4881_s1 + $0xc0] ss:$8 sps:$4 sm:$0xff]   ;;  %v3310_v14 = vld [vmem:[%s4881_s1 + $0xd4] ss:$8 sps:$4 sm:$0xff]   ;;  %v3312_v15 = vld [vmem:[%s4881_s1 + $0xd0] ss:$8 sps:$4 sm:$0xff]  }
  0x49   : > { %764 = vmatprep.subr.bf16.mxu0 %v3280_v54  ;;  %v3313_v16 = vld [vmem:[%s4881_s1 + $0xe4] ss:$8 sps:$4 sm:$0xff]   ;;  %v3315_v17 = vld [vmem:[%s4881_s1 + $0xe0] ss:$8 sps:$4 sm:$0xff]   ;;  %v3317_v18 = vld [vmem:[%s4881_s1 + $0xf4] ss:$8 sps:$4 sm:$0xff]  }
  0x4a   : > { %2908 = vmatmul.mubr.msk.bf16.gmra.mrb[4].mxu1 %vm733_vm1, %v3295_v55  ;;  %v3319_v19 = vld [vmem:[%s4881_s1 + $0xf0] ss:$8 sps:$4 sm:$0xff]   ;;  %v3360_v45 = vld [vmem:[%s4885_s5 + $0x4] ss:$8 sps:$4 sm:$0xff]   ;;  %v3358_v47 = vld [vmem:[%s4885_s5] ss:$8 sps:$4 sm:$0xff]  }
  0x4b   : > { %1038 = vmatpush1.bf16.msra.mxu1 %v3276_v51  ;;  %891 = vmatprep.mubr.bf16.mxu1 %v3591_v43  ;;  %v3326_v21 = vld [vmem:[%s3812_s14 + $0x1c] ss:$12 sps:$4 sm:$0xff]   ;;  %v3335_v27 = vld [vmem:[%s3812_s14 + $0xac] ss:$12 sps:$4 sm:$0xff]   ;;  %v3341_v31 = vld [vmem:[%s3812_s14 + $0xc4] ss:$12 sps:$4 sm:$0xff]  }
  0x4c   : > { %1039 = vmatprep.subr.bf16.mxu1 %v3277_v52  ;;  %765 = vmatpush1.bf16.msra.mxu0 %v3282_v56  ;;  %v3331_v26 = vld [vmem:[%s3812_s14 + $0x90] ss:$12 sps:$4 sm:$0xff]   ;;  %v3338_v29 = vld [vmem:[%s3812_s14 + $0x4c] ss:$12 sps:$4 sm:$0xff]   ;;  %v3337_v30 = vld [vmem:[%s3812_s14 + $0xa8] ss:$12 sps:$4 sm:$0xff]  }
  0x4d   : > { %766 = vmatprep.subr.bf16.mxu0 %v3283_v57  ;;  %v3334_v28 = vld [vmem:[%s3812_s14 + $0x30] ss:$12 sps:$4 sm:$0xff]   ;;  %v3340_v32 = vld [vmem:[%s3812_s14 + $0x48] ss:$12 sps:$4 sm:$0xff]   ;;  %v3343_v34 = vld [vmem:[%s3812_s14 + $0xc0] ss:$12 sps:$4 sm:$0xff]  }
  0x4e   : > { %v3344_v33 = vld [vmem:[%s3812_s14 + $0x64] ss:$12 sps:$4 sm:$0xff]   ;;  %v3347_v35 = vld [vmem:[%s3812_s14 + $0xdc] ss:$12 sps:$4 sm:$0xff]   ;;  %v3346_v36 = vld [vmem:[%s3812_s14 + $0x60] ss:$12 sps:$4 sm:$0xff]  }
  0x4f   : > { %1040 = vmatpush1.bf16.msra.mxu1 %v3279_v53  ;;  %v3349_v37 = vld [vmem:[%s3812_s14 + $0xd8] ss:$12 sps:$4 sm:$0xff]   ;;  %v3350_v38 = vld [vmem:[%s3812_s14 + $0x80] ss:$12 sps:$4 sm:$0xff]   ;;  %v3352_v40 = vld [vmem:[%s3812_s14 + $0xb0] ss:$12 sps:$4 sm:$0xff]  }
  0x50   : > { %1041 = vmatprep.subr.bf16.mxu1 %v3280_v54  ;;  %767 = vmatpush1.bf16.msra.mxu0 %v3285_v58  ;;  %v3351_v39 = vld [vmem:[%s3812_s14 + $0x98] ss:$12 sps:$4 sm:$0xff]   ;;  %v3353_v41 = vld [vmem:[%s3812_s14 + $0xc8] ss:$12 sps:$4 sm:$0xff]   ;;  %v3354_v42 = vld [vmem:[%s3812_s14 + $0xe0] ss:$12 sps:$4 sm:$0xff]  }
  0x51   : > { %768 = vmatprep.subr.bf16.mxu0 %v3286_v59  ;;  %v3355_v46 = vld [vmem:[%s4885_s5 + $0xd0] ss:$8 sps:$4 sm:$0xff]   ;;  %v3361_v49 = vld [vmem:[%s4885_s5 + $0xe0] ss:$8 sps:$4 sm:$0xff]   ;;  %v3369_v51 = vld [vmem:[%s4885_s5 + $0xf4] ss:$8 sps:$4 sm:$0xff]  }
  0x52   : > { %2909 = vmatmul.mubr.msk.bf16.gmra.mrb[8].mxu1 %vm733_vm1, %v3302_v60  ;;  %v3364_v50 = vld [vmem:[%s4885_s5 + $0x10] ss:$8 sps:$4 sm:$0xff]   ;;  %v3372_v52 = vld [vmem:[%s4885_s5 + $0x24] ss:$8 sps:$4 sm:$0xff]   ;;  %v3370_v54 = vld [vmem:[%s4885_s5 + $0x20] ss:$8 sps:$4 sm:$0xff]  }
  0x53   : > { %1042 = vmatpush1.bf16.msra.mxu1 %v3282_v56  ;;  %901 = vmatprep.mubr.bf16.mxu1 %v3591_v43  ;;  %v3367_v53 = vld [vmem:[%s4885_s5 + $0xf0] ss:$8 sps:$4 sm:$0xff]   ;;  %v3375_v55 = vld [vmem:[%s4885_s5 + $0x104] ss:$8 sps:$4 sm:$0xff]   ;;  %v3378_v56 = vld [vmem:[%s4885_s5 + $0x34] ss:$8 sps:$4 sm:$0xff]  }
  0x54   : > { %1043 = vmatprep.subr.bf16.mxu1 %v3283_v57  ;;  %769 = vmatpush1.bf16.msra.mxu0 %v3288_v61  ;;  %v3373_v57 = vld [vmem:[%s4885_s5 + $0x100] ss:$8 sps:$4 sm:$0xff]   ;;  %v3381_v60 = vld [vmem:[%s4885_s5 + $0x114] ss:$8 sps:$4 sm:$0xff]   ;;  %s2856_s29 = sshll.u32 %s3792_s22, 3  ;;  %s3157_s14 = sshll.u32 %s2810_s13, 7 }
  0x55   : > { %770 = vmatprep.subr.bf16.mxu0 %v3289_v62  ;;  %s437_s21 = scalar_lea.vmem [#allocation4], %s2856_s29  ;;  %s4837_s26 = scalar_lea.hbm %s4889_s9, %s3157_s14 }
  0x56   : > { %s2742_s23 = sshll.u32 %s437_s21, 4  ;;  %s2729_s27 = scalar_lea.sflag [#allocation5], %s3792_s22  ;;  %s4839_s23 = int_to_ptr.vmem [resolvable:$true] %s2742_s23 }
  0x57   : > { %1044 = vmatpush1.bf16.msra.mxu1 %v3285_v58  ;;  %v3376_v58 = vld [vmem:[%s4885_s5 + $0x30] ss:$8 sps:$4 sm:$0xff]   ;;  %s3527_s28 = scalar_lea.vmem %s4839_s23, 128  ;;  %s3592_s13 = smov [#allocation4]  }
  0x58   : > { %1045 = vmatprep.subr.bf16.mxu1 %v3286_v59  ;;  %771 = vmatpush1.bf16.msra.mxu0 %v3291_v63  ;;  %p3528_p13 = scmp.ne.s32.totalorder %s4839_s23, %s3527_s28  ;;  %s3531_s29 = sshll.u32 %s3592_s13, 4  ;;  %s3532_s29 = int_to_ptr.vmem [resolvable:$false] %s3531_s29 }
  0x59   : > { %772 = vmatprep.subr.bf16.mxu0 %v3292_v0  ;;  %s3533_s16 = scalar_lea.vmem %s3532_s29, 256  ;;  %p3534_p2 = scmp.lt.s32.totalorder %s4839_s23, %s3532_s29 }
  0x5a   : > { %2910 = vmatmul.mubr.msk.bf16.gmra.mrb[12].mxu1 %vm733_vm1, %v3309_v2  ;;  %p3529_p0 = pnand %p3528_p13, %p3681_p6  ;;  %p3535_p3 = scmp.lt.s32.totalorder %s3533_s16, %s3527_s28 }
  0x5b   : > { %1046 = vmatpush1.bf16.msra.mxu1 %v3288_v61  ;;  %911 = vmatprep.mubr.bf16.mxu1 %v3591_v43  ;;  %v3384_v61 = vld [vmem:[%s4885_s5 + $0x44] ss:$8 sps:$4 sm:$0xff]  }
  0x5c   : > { %1047 = vmatprep.subr.bf16.mxu1 %v3289_v62  ;;  %773 = vmatpush1.bf16.msra.mxu0 %v3294_v3  ;;  %p3530_p1 = pneg %p3529_p0  ;;  %p3536_p4 = por %p3535_p3, %p3534_p2 }
  0x5d   : > { %774 = vmatprep.subr.bf16.mxu0 %v3296_v4 }
  0x5e   : > { %p3537_p5 = pnand %p3536_p4, %p3530_p1 }
  0x5f   : > { %1048 = vmatpush1.bf16.msra.mxu1 %v3291_v63  ;;  %v3379_v63 = vld [vmem:[%s4885_s5 + $0x110] ss:$8 sps:$4 sm:$0xff]  }
  0x60   : > { %1049 = vmatprep.subr.bf16.mxu1 %v3292_v0  ;;  %775 = vmatpush1.bf16.msra.mxu0 %v3298_v5  ;;  %v3382_v0 = vld [vmem:[%s4885_s5 + $0x40] ss:$8 sps:$4 sm:$0xff]  }
  0x61   : > { %776 = vmatprep.subr.bf16.mxu0 %v3299_v6 }
  0x62   : > { %2911 = vmatmul.mubr.msk.bf16.gmra.mrb[16].mxu1 %vm733_vm1, %v3316_v7 }
  0x63   : > { %1050 = vmatpush1.bf16.msra.mxu1 %v3294_v3  ;;  %1065 = vmatprep.mubr.bf16.mxu1 %v3325_v8  ;;  %v3387_v3 = vld [vmem:[%s4885_s5 + $0x124] ss:$8 sps:$4 sm:$0xff]   ;;  %v3393_v8 = vld [vmem:[%s4885_s5 + $0x134] ss:$8 sps:$4 sm:$0xff]  }
  0x64   : > { %1051 = vmatprep.subr.bf16.mxu1 %v3296_v4  ;;  %777 = vmatpush1.bf16.msra.mxu0 %v3301_v9  ;;  %v3390_v4 = vld [vmem:[%s4885_s5 + $0x54] ss:$8 sps:$4 sm:$0xff]  }
  0x65   : > { %778 = vmatprep.subr.bf16.mxu0 %v3303_v10 }
  0x67   : > { %1052 = vmatpush1.bf16.msra.mxu1 %v3298_v5  ;;  %v3385_v5 = vld [vmem:[%s4885_s5 + $0x120] ss:$8 sps:$4 sm:$0xff]  }
  0x68   : > { %1053 = vmatprep.subr.bf16.mxu1 %v3299_v6  ;;  %779 = vmatpush1.bf16.msra.mxu0 %v3305_v11  ;;  %v3388_v6 = vld [vmem:[%s4885_s5 + $0x50] ss:$8 sps:$4 sm:$0xff]  }
  0x69   : > { %780 = vmatprep.subr.bf16.mxu0 %v3306_v12 }
  0x6b   : > { %1054 = vmatpush1.bf16.msra.mxu1 %v3301_v9  ;;  %v3396_v9 = vld [vmem:[%s4885_s5 + $0x64] ss:$8 sps:$4 sm:$0xff]  }
  0x6c   : > { %1055 = vmatprep.subr.bf16.mxu1 %v3303_v10  ;;  %781 = vmatpush1.bf16.msra.mxu0 %v3308_v13 }
  0x6d   : > { %782 = vmatprep.subr.bf16.mxu0 %v3310_v14 }
  0x6f   : > { %1056 = vmatpush1.bf16.msra.mxu1 %v3305_v11  ;;  %v3391_v11 = vld [vmem:[%s4885_s5 + $0x130] ss:$8 sps:$4 sm:$0xff]  }
  0x70   : > { %1057 = vmatprep.subr.bf16.mxu1 %v3306_v12  ;;  %783 = vmatpush1.bf16.msra.mxu0 %v3312_v15  ;;  %v3394_v12 = vld [vmem:[%s4885_s5 + $0x60] ss:$8 sps:$4 sm:$0xff]  }
  0x71   : > { %784 = vmatprep.subr.bf16.mxu0 %v3313_v16 }
  0x73   : > { %1058 = vmatpush1.bf16.msra.mxu1 %v3308_v13 }
  0x74   : > { %1059 = vmatprep.subr.bf16.mxu1 %v3310_v14  ;;  %785 = vmatpush1.bf16.msra.mxu0 %v3315_v17 }
  0x75   : > { %786 = vmatprep.subr.bf16.mxu0 %v3317_v18 }
  0x77   : > { %1060 = vmatpush1.bf16.msra.mxu1 %v3312_v15  ;;  %v3399_v15 = vld [vmem:[%s4885_s5 + $0x144] ss:$8 sps:$4 sm:$0xff]  }
  0x78   : > { %1061 = vmatprep.subr.bf16.mxu1 %v3313_v16  ;;  %787 = vmatpush1.bf16.msra.mxu0 %v3319_v19  ;;  %v3402_v16 = vld [vmem:[%s4885_s5 + $0x74] ss:$8 sps:$4 sm:$0xff]  }
  0x7b   : > { %1062 = vmatpush1.bf16.msra.mxu1 %v3315_v17  ;;  %789 = vmatmul.mubr.bf16.vlgmr.msra.gmra.mrb[0].mxu0 %v3320_v20  ;;  %v3397_v17 = vld [vmem:[%s4885_s5 + $0x140] ss:$8 sps:$4 sm:$0xff]   ;;  %v3405_v20 = vld [vmem:[%s4885_s5 + $0x154] ss:$8 sps:$4 sm:$0xff]  }
  0x7c   : > { %1063 = vmatprep.subr.bf16.mxu1 %v3317_v18  ;;  %798 = vmatprep.mubr.bf16.mxu0 %v3326_v21  ;;  %v3400_v18 = vld [vmem:[%s4885_s5 + $0x70] ss:$8 sps:$4 sm:$0xff]   ;;  %v3408_v21 = vld [vmem:[%s4885_s5 + $0x84] ss:$8 sps:$4 sm:$0xff]  }
  0x7f   : > { %1064 = vmatpush1.bf16.msra.mxu1 %v3319_v19 }
  0x80   : > { %2947 = vmatprep.subr.msk.bf16.mxu1 %vm749_vm0, %v3794_v44  ;;  %v3357_v44 = vld [vmem:[%s4885_s5 + $0xd4] ss:$8 sps:$4 sm:$0xff]  }
  0x81   : > { %1709 = vmatprep.subr.bf16.mxu0 %v3357_v44  ;;  %v3429_v44 = vld [vmem:[%s4885_s5 + $0x194] ss:$8 sps:$4 sm:$0xff]  }
  0x82   : > { %1066 = vmatmul.mubr.bf16.vlgmr.msra.gmra.mrb[20].mxu1 %v3323_v22  ;;  %1710 = vmatpush1.bf16.msra.mxu0 %v3355_v46  ;;  %v3427_v46 = vld [vmem:[%s4885_s5 + $0x190] ss:$8 sps:$4 sm:$0xff]  }
  0x83   : > { %1117 = vmatpush1.bf16.msra.mxu1 %v3806_v48  ;;  %1075 = vmatprep.mubr.bf16.mxu1 %v3329_v23  ;;  %v3366_v48 = vld [vmem:[%s4885_s5 + $0x14] ss:$8 sps:$4 sm:$0xff]   ;;  %v3403_v23 = vld [vmem:[%s4885_s5 + $0x150] ss:$8 sps:$4 sm:$0xff]  }
  0x84   : > { %799 = vmatmul.mubr.bf16.gmra.mrb[4].mxu0 %v3328_v24  ;;  %1883 = vmatprep.subr.bf16.mxu1 %v3360_v45  ;;  %v3406_v24 = vld [vmem:[%s4885_s5 + $0x80] ss:$8 sps:$4 sm:$0xff]   ;;  %v3432_v45 = vld [vmem:[%s4885_s5 + $0xc4] ss:$8 sps:$4 sm:$0xff]  }
  0x85   : > { %808 = vmatprep.mubr.bf16.mxu0 %v3332_v25 }
  0x8a   : > { %1076 = vmatmul.mubr.bf16.gmra.mrb[24].mxu1 %v3331_v26  ;;  %v3409_v26 = vld [vmem:[%s4885_s5 + $0x160] ss:$8 sps:$4 sm:$0xff]  }
  0x8b   : > { %1085 = vmatprep.mubr.bf16.mxu1 %v3335_v27  ;;  %v3411_v27 = vld [vmem:[%s4885_s5 + $0x164] ss:$8 sps:$4 sm:$0xff]  }
  0x8c   : > { %809 = vmatmul.mubr.bf16.gmra.mrb[8].mxu0 %v3334_v28 }
  0x8d   : > { %818 = vmatprep.mubr.bf16.mxu0 %v3338_v29  ;;  %v3412_v29 = vld [vmem:[%s4885_s5 + $0x90] ss:$8 sps:$4 sm:$0xff]  }
  0x92   : > { %1086 = vmatmul.mubr.bf16.gmra.mrb[28].mxu1 %v3337_v30  ;;  %v3414_v30 = vld [vmem:[%s4885_s5 + $0x94] ss:$8 sps:$4 sm:$0xff]  }
  0x93   : > { %1095 = vmatprep.mubr.bf16.mxu1 %v3341_v31  ;;  %v3417_v31 = vld [vmem:[%s4885_s5 + $0x174] ss:$8 sps:$4 sm:$0xff]  }
  0x94   : > { %819 = vmatmul.mubr.bf16.gmra.mrb[12].mxu0 %v3340_v32  ;;  %v3420_v32 = vld [vmem:[%s4885_s5 + $0xa4] ss:$8 sps:$4 sm:$0xff]  }
  0x95   : > { %828 = vmatprep.mubr.bf16.mxu0 %v3344_v33  ;;  %v3415_v33 = vld [vmem:[%s4885_s5 + $0x170] ss:$8 sps:$4 sm:$0xff]  }
  0x9a   : > { %1096 = vmatmul.mubr.bf16.gmra.mrb[32].mxu1 %v3343_v34  ;;  %v3418_v34 = vld [vmem:[%s4885_s5 + $0xa0] ss:$8 sps:$4 sm:$0xff]  }
  0x9b   : > { %1105 = vmatprep.mubr.bf16.mxu1 %v3347_v35 }
  0x9c   : > { %829 = vmatmul.mubr.bf16.gmra.mrb[16].mxu0 %v3346_v36  ;;  %v3423_v36 = vld [vmem:[%s4885_s5 + $0x184] ss:$8 sps:$4 sm:$0xff]  }
  0xa2   : > { %1106 = vmatmul.mubr.bf16.gmra.mrb[36].mxu1 %v3349_v37  ;;  %v3426_v37 = vld [vmem:[%s4885_s5 + $0xb4] ss:$8 sps:$4 sm:$0xff]  }
  0xa3   : > { %1148 = vmatprep.mubr.bf16.mxu1 %v3591_v43 }
  0xaa   : > { %2948 = vmatmul.mubr.msk.bf16.vlgmr.msra.gmra.mrb[20].mxu1 %vm733_vm1, %v3350_v38 }
  0xab   : > { %1158 = vmatprep.mubr.bf16.mxu1 %v3591_v43  ;;  %1884 = vmatpush1.bf16.msra.mxu1 %v3358_v47  ;;  %v3430_v47 = vld [vmem:[%s4885_s5 + $0xc0] ss:$8 sps:$4 sm:$0xff]  }
  0xac   : > { %1885 = vmatprep.subr.bf16.mxu1 %v3366_v48 }
  0xaf   : > { %1886 = vmatpush1.bf16.msra.mxu1 %v3364_v50 }
  0xb0   : > { %1887 = vmatprep.subr.bf16.mxu1 %v3372_v52  ;;  %v3438_v52 = vld [vmem:[%s4885_s5 + $0x274] ss:$8 sps:$4 sm:$0xff]  }
  0xb2   : > { %2949 = vmatmul.mubr.msk.bf16.gmra.mrb[24].mxu1 %vm733_vm1, %v3351_v39 }
  0xb3   : > { %1168 = vmatprep.mubr.bf16.mxu1 %v3591_v43  ;;  %1888 = vmatpush1.bf16.msra.mxu1 %v3370_v54 }
  0xb4   : > { %1889 = vmatprep.subr.bf16.mxu1 %v3378_v56 }
  0xb7   : > { %1890 = vmatpush1.bf16.msra.mxu1 %v3376_v58 }
  0xb8   : > { %1891 = vmatprep.subr.bf16.mxu1 %v3384_v61 }
  0xba   : > { %2950 = vmatmul.mubr.msk.bf16.gmra.mrb[28].mxu1 %vm733_vm1, %v3352_v40 }
  0xbb   : > { %1178 = vmatprep.mubr.bf16.mxu1 %v3591_v43  ;;  %1892 = vmatpush1.bf16.msra.mxu1 %v3382_v0 }
  0xbc   : > { %1893 = vmatprep.subr.bf16.mxu1 %v3390_v4 }
  0xbf   : > { %1894 = vmatpush1.bf16.msra.mxu1 %v3388_v6 }
  0xc0   : > { %1895 = vmatprep.subr.bf16.mxu1 %v3396_v9 }
  0xc2   : > { %2951 = vmatmul.mubr.msk.bf16.gmra.mrb[32].mxu1 %vm733_vm1, %v3353_v41  ;;  %v3421_v41 = vld [vmem:[%s4885_s5 + $0x180] ss:$8 sps:$4 sm:$0xff]  }
  0xc3   : > { %1188 = vmatprep.mubr.bf16.mxu1 %v3591_v43  ;;  %v3363_v43 = vld [vmem:[%s4885_s5 + $0xe4] ss:$8 sps:$4 sm:$0xff]   ;;  %1896 = vmatpush1.bf16.msra.mxu1 %v3394_v12 }
  0xc4   : > { %1711 = vmatprep.subr.bf16.mxu0 %v3363_v43  ;;  %1897 = vmatprep.subr.bf16.mxu1 %v3402_v16  ;;  %v1220_v16 = vlaneseq }
  0xc5   : > { %1712 = vmatpush1.bf16.msra.mxu0 %v3361_v49 }
  0xc6   : > { %1713 = vmatprep.subr.bf16.mxu0 %v3369_v51  ;;  %v3435_v51 = vld [vmem:[%s4885_s5 + $0x1a4] ss:$8 sps:$4 sm:$0xff]  }
  0xc7   : > { %1898 = vmatpush1.bf16.msra.mxu1 %v3400_v18 }
  0xc8   : > { %1899 = vmatprep.subr.bf16.mxu1 %v3408_v21 }
  0xc9   : > { %1714 = vmatpush1.bf16.msra.mxu0 %v3367_v53 }
  0xca   : > { %2952 = vmatmul.mubr.msk.bf16.gmra.mrb[36].mxu1 %vm733_vm1, %v3354_v42  ;;  %1715 = vmatprep.subr.bf16.mxu0 %v3375_v55  ;;  %v3424_v42 = vld [vmem:[%s4885_s5 + $0xb0] ss:$8 sps:$4 sm:$0xff]  }
  0xcb   : > { %1900 = vmatpush1.bf16.msra.mxu1 %v3406_v24 }
  0xcc   : > { %1901 = vmatprep.subr.bf16.mxu1 %v3414_v30  ;;  %v472_v30 = vld [vmem:[%s4882_s2] sm:$0x3] }
  0xcd   : > { %1716 = vmatpush1.bf16.msra.mxu0 %v3373_v57 }
  0xce   : > { %1717 = vmatprep.subr.bf16.mxu0 %v3381_v60 }
  0xcf   : > { %1902 = vmatpush1.bf16.msra.mxu1 %v3412_v29 }
  0xd0   : > { %1903 = vmatprep.subr.bf16.mxu1 %v3420_v32 }
  0xd1   : > { %1718 = vmatpush1.bf16.msra.mxu0 %v3379_v63 }
  0xd2   : > { %1719 = vmatprep.subr.bf16.mxu0 %v3387_v3 }
  0xd3   : > { %1904 = vmatpush1.bf16.msra.mxu1 %v3418_v34 }
  0xd4   : > { %1905 = vmatprep.subr.bf16.mxu1 %v3426_v37 }
  0xd5   : > { %1720 = vmatpush1.bf16.msra.mxu0 %v3385_v5 }
  0xd6   : > { %1721 = vmatprep.subr.bf16.mxu0 %v3393_v8 }
  0xd7   : > { %1906 = vmatpush1.bf16.msra.mxu1 %v3424_v42 }
  0xd8   : > { %1907 = vmatprep.subr.bf16.mxu1 %v3432_v45 }
  0xd9   : > { %1722 = vmatpush1.bf16.msra.mxu0 %v3391_v11 }
  0xda   : > { %1723 = vmatprep.subr.bf16.mxu0 %v3399_v15 }
  0xdb   : > { %1908 = vmatpush1.bf16.msra.mxu1 %v3430_v47 }
  0xdc   : > { %2491 = vmatprep.subr.bf16.mxu1 %v3438_v52 }
  0xdd   : > { %1724 = vmatpush1.bf16.msra.mxu0 %v3397_v17 }
  0xde   : > { %1725 = vmatprep.subr.bf16.mxu0 %v3405_v20 }
  0xe1   : > { %1726 = vmatpush1.bf16.msra.mxu0 %v3403_v23 }
  0xe2   : > { %1727 = vmatprep.subr.bf16.mxu0 %v3411_v27 }
  0xe5   : > { %1728 = vmatpush1.bf16.msra.mxu0 %v3409_v26 }
  0xe6   : > { %1729 = vmatprep.subr.bf16.mxu0 %v3417_v31 }
  0xe9   : > { %1730 = vmatpush1.bf16.msra.mxu0 %v3415_v33 }
  0xea   : > { %1731 = vmatprep.subr.bf16.mxu0 %v3423_v36 }
  0xed   : > { %1732 = vmatpush1.bf16.msra.mxu0 %v3421_v41 }
  0xee   : > { %1733 = vmatprep.subr.bf16.mxu0 %v3429_v44 }
  0xf1   : > { %1734 = vmatpush1.bf16.msra.mxu0 %v3427_v46 }
  0xf2   : > { %2186 = vmatprep.subr.bf16.mxu0 %v3435_v51  ;;  %v1293_v51 = vld [vmem:[%s4883_s3 + $0x10] sm:$0xff] }
 0x115   : > { %v3995_v59 = vpop.f32.mrb[0].mxu1 }
 0x116   : > { %v4003_v62 = vpop.f32.mrb[1].mxu1 }
 0x117   : > { %v4011_v1 = vpop.f32.mrb[2].mxu1 }
 0x118   : > { %v4013_v2 = vpop.f32.mrb[3].mxu1 }
 0x11d   : > { %v4027_v7 = vpop.f32.mrb[4].mxu1 }
 0x11e   : > { %v4035_v10 = vpop.f32.mrb[5].mxu1 }
 0x11f   : > { %v4043_v13 = vpop.f32.mrb[6].mxu1 }
 0x120   : > { %v4045_v14 = vpop.f32.mrb[7].mxu1 }
 0x125   : > { %v4059_v19 = vpop.f32.mrb[8].mxu1 }
 0x126   : > { %v4067_v22 = vpop.f32.mrb[9].mxu1 }
 0x127   : > { %v4075_v25 = vpop.f32.mrb[10].mxu1 }
 0x128   : > { %v4083_v28 = vpop.f32.mrb[11].mxu1 }
 0x12d   : > { %v903_v35 = vpop.f32.mrb[12].mxu1 }
 0x12e   : > { %v905_v38 = vpop.f32.mrb[13].mxu1 }
 0x12f   : > { %v907_v39 = vpop.f32.mrb[14].mxu1 }
 0x130   : > { %v909_v40 = vpop.f32.mrb[15].mxu1 }
 0x135   : > { %v913_v43 = vpop.f32.mrb[16].mxu1 }
 0x136   : > { %v915_v48 = vpop.f32.mrb[17].mxu1 }
 0x137   : > { %v917_v49 = vpop.f32.mrb[18].mxu1 }
 0x138   : > { %v919_v50 = vpop.f32.mrb[19].mxu1 }
 0x14e   : > { %v790_v53 = vpop.f32.mrb[0].mxu0 }
 0x14f   : > { %v4134_v54 = vadd.f32 %v3995_v59, %v790_v53  ;;  %v792_v55 = vpop.f32.mrb[1].mxu0 }
 0x150   : > { %v4137_v56 = vadd.f32 %v4003_v62, %v792_v55  ;;  %v794_v57 = vpop.f32.mrb[2].mxu0  ;;  %v1296_v55 = vld [vmem:[%s4883_s3 + $0x28] sm:$0xf] }
 0x151   : > { %v4140_v58 = vadd.f32 %v4011_v1, %v794_v57  ;;  %v796_v60 = vpop.f32.mrb[3].mxu0 }
 0x152   : > { %v4143_v61 = vadd.f32 %v4013_v2, %v796_v60 }
 0x157   : > { %v800_v63 = vpop.f32.mrb[4].mxu0 }
 0x158   : > { %v4146_v0 = vadd.f32 %v4027_v7, %v800_v63  ;;  %v802_v3 = vpop.f32.mrb[5].mxu0 }
 0x159   : > { %v4149_v59 = vadd.f32 %v4035_v10, %v802_v3  ;;  %v804_v4 = vpop.f32.mrb[6].mxu0 }
 0x15a   : > { %v4152_v62 = vadd.f32 %v4043_v13, %v804_v4  ;;  %v806_v5 = vpop.f32.mrb[7].mxu0  ;;  %v4264_v4 = vld [vmem:[%s4884_s4] sm:$0xff] }
 0x15b   : > { %v4155_v1 = vadd.f32 %v4045_v14, %v806_v5  ;;  %4925 = vst [vmem:[#allocation17_spill] sm:$0xff] %v4264_v4 }
 0x15f   : > { %v810_v6 = vpop.f32.mrb[8].mxu0 }
 0x160   : > { %v4158_v2 = vadd.f32 %v4059_v19, %v810_v6  ;;  %v812_v8 = vpop.f32.mrb[9].mxu0 }
 0x161   : > { %v4161_v7 = vadd.f32 %v4067_v22, %v812_v8  ;;  %v814_v9 = vpop.f32.mrb[10].mxu0  ;;  %v1221_v22 = vshrl.u32 %v1220_v16, 7 }
 0x162   : > { %v4164_v10 = vadd.f32 %v4075_v25, %v814_v9  ;;  %v816_v11 = vpop.f32.mrb[11].mxu0 }
 0x163   : > { %v4167_v12 = vadd.f32 %v4083_v28, %v816_v11  ;;  %v4179_v26 = vsub.s32 0, %v1221_v22  ;;  %v4181_v27 = vsub.s32 1, %v1221_v22  ;;  %v4188_v31 = vsub.s32 5, %v1221_v22 }
 0x164   : > { %v4192_v34 = vsub.s32 6, %v1221_v22  ;;  %v4211_v41 = vsub.s32 7, %v1221_v22  ;;  %v4213_v42 = vsub.s32 2, %v1221_v22  ;;  %v4215_v44 = vsub.s32 3, %v1221_v22 }
 0x165   : > { %4919 = vst [vmem:[#allocation11_spill] sm:$0xff] %v4179_v26  ;;  %4920 = vst [vmem:[#allocation12_spill] sm:$0xff] %v4181_v27  ;;  %v4200_v37 = vrot.slane %v472_v30, %v4179_v26  ;;  %v4220_v46 = vsub.s32 4, %v1221_v22  ;;  %v4256_v63 = vrot.slane %v1293_v51, %v4179_v26 }
 0x166   : > { %4924 = vst [vmem:[#allocation16_spill] sm:$0xff] %v4215_v44  ;;  %v4288_v16 = vrot.slane %v1293_v51, %v4213_v42 }
 0x167   : > { %v820_v13 = vpop.f32.mrb[12].mxu0 }
 0x168   : > { %v4169_v15 = vadd.f32 %v903_v35, %v820_v13  ;;  %v822_v14 = vpop.f32.mrb[13].mxu0  ;;  %v1291_v35 = vld [vmem:[%s4883_s3] sm:$0xff]  ;;  %v4282_v13 = vrot.slane %v1293_v51, %v4181_v27 }
 0x169   : > { %v4171_v17 = vadd.f32 %v905_v38, %v822_v14  ;;  %v824_v18 = vpop.f32.mrb[14].mxu0  ;;  %v4203_v38 = vrot.slane %v472_v30, %v4181_v27  ;;  %v4218_v45 = vrot.slane %v1291_v35, %v4188_v31  ;;  %v4223_v47 = vrot.slane %v1291_v35, %v4192_v34 }
 0x16a   : > { %v4173_v19 = vadd.f32 %v907_v39, %v824_v18  ;;  %v826_v20 = vpop.f32.mrb[15].mxu0  ;;  %v1292_v39 = vld [vmem:[%s4883_s3 + $0x8] sm:$0xff]  ;;  %v4241_v52 = vrot.slane %v1291_v35, %v4211_v41  ;;  %v4244_v53 = vrot.slane %v1291_v35, %v4213_v42  ;;  %v4270_v6 = vrot.slane %v1291_v35, %v4215_v44 }
 0x16b   : > { %4915 = vst [vmem:[#allocation7_spill] sm:$0xff] %v4171_v17  ;;  %v4175_v21 = vadd.f32 %v909_v40, %v826_v20  ;;  %v1294_v40 = vld [vmem:[%s4883_s3 + $0x18] sm:$0xff]  ;;  %v4250_v57 = vrot.slane %v1292_v39, %v4192_v34  ;;  %v4253_v60 = vrot.slane %v1292_v39, %v4181_v27  ;;  %v4267_v5 = vrot.slane %v1292_v39, %v4211_v41 }
 0x16c   : > { %4916 = vst [vmem:[#allocation8_spill] sm:$0xff] %v4173_v19  ;;  %v4259_v3 = vrot.slane %v1294_v40, %v4213_v42  ;;  %v4273_v8 = vrot.slane %v1294_v40, %v4215_v44  ;;  %v4276_v9 = vrot.slane %v1294_v40, %v4211_v41  ;;  %v4279_v11 = vrot.slane %v1292_v39, %v4213_v42 }
 0x16d   : > { %4917 = vst [vmem:[#allocation9_spill] sm:$0xff] %v4175_v21  ;;  %v4285_v14 = vrot.slane %v1296_v55, %v4179_v26  ;;  %v4291_v18 = vrot.slane %v1294_v40, %v4179_v26  ;;  %v4294_v20 = vrot.slane %v1292_v39, %v4215_v44  ;;  %v4297_v22 = vrot.slane %v1291_v35, %v4220_v46 }
 0x16e   : > { %v4308_v30 = vrot.slane %v1294_v40, %v4188_v31  ;;  %v4358_v17 = vrot.slane %v1296_v55, %v4215_v44 }
 0x16f   : > { %v830_v23 = vpop.f32.mrb[16].mxu0  ;;  %4926 = vst [vmem:[#allocation18_spill] sm:$0xff] %v4291_v18  ;;  %4927 = vst [vmem:[#allocation19_spill] sm:$0xff] %v4294_v20  ;;  %v4329_v20 = vrot.slane %v1293_v51, %v4220_v46 }
 0x170   : > { %v4177_v24 = vadd.f32 %v913_v43, %v830_v23  ;;  %v832_v25 = vpop.f32.mrb[17].mxu0  ;;  %v4226_v43 = vrot.slane %v1291_v35, %v4179_v26  ;;  %v4300_v23 = vrot.slane %v1294_v40, %v4220_v46  ;;  %4929 = vst [vmem:[#allocation21_spill] sm:$0xff] %v4308_v30  ;;  %v4326_v30 = vrot.slane %v1296_v55, %v4213_v42 }
 0x171   : > { %v4183_v28 = vadd.f32 %v915_v48, %v832_v25  ;;  %v834_v29 = vpop.f32.mrb[18].mxu0  ;;  %v4229_v48 = vrot.slane %v1291_v35, %v4181_v27  ;;  %v4303_v25 = vrot.slane %v1294_v40, %v4181_v27  ;;  %v1400_v35 = vrot.slane %v4264_v4, %v4179_v26 }
 0x172   : > { %4918 = vst [vmem:[#allocation10_spill] sm:$0xff] %v4177_v24  ;;  %v4190_v32 = vadd.f32 %v917_v49, %v834_v29  ;;  %v836_v33 = vpop.f32.mrb[19].mxu0  ;;  %v4232_v49 = vrot.slane %v1292_v39, %v4188_v31  ;;  %v1528_v29 = vrot.slane %v4264_v4, %v4181_v27  ;;  %v4322_v24 = vrot.slane %v1296_v55, %v4181_v27 }
 0x173   : > { %4921 = vst [vmem:[#allocation13_spill] sm:$0xff] %v4183_v28  ;;  %v4197_v36 = vadd.f32 %v919_v50, %v836_v33  ;;  %v4235_v50 = vrot.slane %v1292_v39, %v4179_v26  ;;  %4928 = vst [vmem:[#allocation20_spill] sm:$0xff] %v4303_v25  ;;  %v4311_v33 = vrot.slane %v1293_v51, %v4215_v44 }
 0x174   : > { %4922 = vst [vmem:[#allocation14_spill] sm:$0xff] %v4190_v32  ;;  %v4314_v32 = vrot.slane %v1292_v39, %v4220_v46  ;;  %v4319_v28 = vrot.slane %v1294_v40, %v4192_v34  ;;  %4932 = vst [vmem:[#allocation24_spill] sm:$0xff] %v4322_v24  ;;  %v4332_v39 = vrot.slane %v1293_v51, %v4188_v31 }
 0x175   : > { %4923 = vst [vmem:[#allocation15_spill] sm:$0xff] %v4197_v36  ;;  %4933 = vst [vmem:[#allocation25_spill] sm:$0xff] %v4326_v30  ;;  %v1532_v40 = vrot.slane %v4264_v4, %v4188_v31  ;;  %v4355_v18 = vrot.slane %v1400_v35, %v4179_v26  ;;  %v2314_v35 = vrot.slane %v4264_v4, %v4211_v41 }
 0x176   : > { %4930 = vst [vmem:[#allocation22_spill] sm:$0xff] %v4314_v32  ;;  %4931 = vst [vmem:[#allocation23_spill] sm:$0xff] %v4319_v28  ;;  %v1404_v28 = vrot.slane %v4264_v4, %v4220_v46 }
 0x177   : > { %4934 = vst [vmem:[#allocation26_spill] sm:$0xff] %v4332_v39  ;;  %4937 = vst [vmem:[#allocation29_spill] sm:$0xff] %v4355_v18 }
 0x17d   : > { %v1150_v36 = vpop.f32.mrb[20].mxu1 }
 0x17e   : > { %v1199_v25 = vmax.f32 %v4134_v54, %v1150_v36  ;;  %v1152_v21 = vpop.f32.mrb[21].mxu1  ;;  %v1295_v54 = vld [vmem:[%s4883_s3 + $0x20] sm:$0xf]  ;;  %v4343_v36 = vrot.slane %v1293_v51, %v4211_v41 }
 0x17f   : > { %v1200_v32 = vmax.f32 %v4137_v56, %v1152_v21  ;;  %v1154_v19 = vpop.f32.mrb[22].mxu1  ;;  %v4348_v56 = vrot.slane %v1528_v29, %v4181_v27  ;;  %v2009_v21 = vrot.slane %v4264_v4, %v4192_v34  ;;  %v4365_v29 = vrot.slane %v1295_v54, %v4181_v27 }
 0x180   : > { %4935 = vst [vmem:[#allocation27_spill] sm:$0xff] %v4343_v36  ;;  %v1230_v30 = vadd.f32 %v4200_v37, %v1199_v25  ;;  %v1201_v39 = vmax.f32 %v4140_v58, %v1154_v19  ;;  %v1156_v24 = vpop.f32.mrb[23].mxu1  ;;  %v4362_v19 = vrot.slane %v1295_v54, %v4179_v26 }
 0x181   : > { %4936 = vst [vmem:[#allocation28_spill] sm:$0xff] %v4348_v56  ;;  %v1231_v31 = vadd.f32 %v4203_v38, %v1200_v32  ;;  %v1202_v46 = vmax.f32 %v4143_v61, %v1156_v24  ;;  %4939 = vst [vmem:[#allocation31_spill] sm:$0xff] %v4365_v29  ;;  %v4369_v61 = vrot.slane %v1532_v40, %v4181_v27 }
 0x182   : > { %v1250_v25 = vmax.f32 %v1230_v30, 0.0  ;;  %v1232_v58 = vadd.f32 %v4200_v37, %v1201_v39  ;;  %4938 = vst [vmem:[#allocation30_spill] sm:$0xff] %v4362_v19  ;;  %v4372_v24 = vrot.slane %v1404_v28, %v4179_v26  ;;  %v4375_v30 = vrot.slane %v2009_v21, %v4213_v42 }
 0x183   : > { %v1251_v56 = vmax.f32 %v1231_v31, 0.0  ;;  %v1233_v32 = vadd.f32 %v4203_v38, %v1202_v46  ;;  %4940 = vst [vmem:[#allocation32_spill] sm:$0xff] %v4369_v61  ;;  %v4380_v39 = vrot.slane %v1293_v51, %v4192_v34  ;;  %v2005_v28 = vrot.slane %v4264_v4, %v4213_v42 }
 0x184   : > { %4941 = vst [vmem:[#allocation33_spill] sm:$0xff] %v4372_v24  ;;  %v1252_v55 = vmax.f32 %v1232_v58, 0.0  ;;  %4942 = vst [vmem:[#allocation34_spill] sm:$0xff] %v4375_v30  ;;  %v1455_v40 = vmul.f32 %v4218_v45, %v1250_v25  ;;  %v1308_v27 = vmul.f32 %v4226_v43, %v1250_v25  ;;  %v2237_v29 = vmul.f32 %v4343_v36, %v1250_v25 }
 0x185   : > { %4943 = vst [vmem:[#allocation35_spill] sm:$0xff] %v4380_v39  ;;  %1272 = vst.msk [vmem:[#allocation2 + $0x8] sm:$0xff] %vm1271_vm2, %v1251_v56  ;;  %v1253_v31 = vmax.f32 %v1233_v32, 0.0  ;;  %v1160_v46 = vpop.f32.mrb[24].mxu1  ;;  %v1932_v32 = vmul.f32 %v4288_v16, %v1250_v25 }
 0x186   : > { %v1203_v21 = vmax.f32 %v4146_v0, %v1160_v46  ;;  %v1162_v58 = vpop.f32.mrb[25].mxu1  ;;  %v1467_v26 = vmul.f32 %v4223_v47, %v1252_v55  ;;  %v1324_v41 = vmul.f32 %v4229_v48, %v1252_v55  ;;  %v1944_v34 = vmul.f32 %v4311_v33, %v1252_v55 }
 0x187   : > { %1274 = vst.msk [vmem:[#allocation2 + $0x18] sm:$0xff] %vm1271_vm2, %v1253_v31  ;;  %v1204_v51 = vmax.f32 %v4149_v59, %v1162_v58  ;;  %v1164_v56 = vpop.f32.mrb[26].mxu1  ;;  %v2249_v4 = vmul.f32 %v4362_v19, %v1252_v55  ;;  %v4406_v55 = vrot.slane %v1295_v54, %v4213_v42 }
 0x188   : > { %v1234_v0 = vadd.f32 %v4200_v37, %v1203_v21  ;;  %v1205_v46 = vmax.f32 %v4152_v62, %v1164_v56  ;;  %v1166_v30 = vpop.f32.mrb[27].mxu1  ;;  %v1471_v24 = vadd.f32 %v1467_v26, %v1455_v40  ;;  %v1330_v61 = vadd.f32 %v1324_v41, %v1308_v27 }
 0x189   : > { %v1235_v39 = vadd.f32 %v4203_v38, %v1204_v51  ;;  %v1206_v31 = vmax.f32 %v4155_v1, %v1166_v30  ;;  %v1948_v18 = vadd.f32 %v1944_v34, %v1932_v32  ;;  %v4400_v59 = vadd.f32 %v2249_v4, %v2237_v29  ;;  %4946 = vst [vmem:[#allocation38_spill] sm:$0xff] %v4406_v55 }
 0x18a   : > { %v4402_v58 = vmax.f32 %v1234_v0, 0.0  ;;  %v1236_v25 = vadd.f32 %v4200_v37, %v1205_v46  ;;  %v4409_v21 = vrot.slane %v1295_v54, %v4215_v44  ;;  %v4413_v27 = vrot.slane %v2314_v35, %v4215_v44 }
 0x18b   : > { %4944 = vst [vmem:[#allocation36_spill] sm:$0xff] %v4400_v59  ;;  %v1255_v62 = vmax.f32 %v1235_v39, 0.0  ;;  %v1237_v26 = vadd.f32 %v4203_v38, %v1206_v31  ;;  %v4416_v1 = vrot.slane %v2005_v28, %v4213_v42 }
 0x18c   : > { %4945 = vst [vmem:[#allocation37_spill] sm:$0xff] %v4402_v58  ;;  %4947 = vst [vmem:[#allocation39_spill] sm:$0xff] %v4409_v21  ;;  %v4418_v4 = vmax.f32 %v1236_v25, 0.0  ;;  %v1299_v29 = vld [vmem:[#allocation2 + $0x8] sm:$0xff]  ;;  %v1483_v30 = vmul.f32 %v4241_v52, %v4402_v58  ;;  %v1344_v40 = vmul.f32 %v4244_v53, %v4402_v58  ;;  %v1960_v54 = vmul.f32 %v4329_v20, %v4402_v58 }
 0x18d   : > { %4948 = vst [vmem:[#allocation40_spill] sm:$0xff] %v4413_v27  ;;  %4949 = vst [vmem:[#allocation41_spill] sm:$0xff] %v4416_v1  ;;  %v1257_v39 = vmax.f32 %v1237_v26, 0.0  ;;  %v1170_v35 = vpop.f32.mrb[28].mxu1  ;;  %v1456_v41 = vmul.f32 %v4232_v49, %v1299_v29  ;;  %v1309_v42 = vmul.f32 %v4235_v50, %v1299_v29  ;;  %v1933_v28 = vmul.f32 %v4259_v3, %v1299_v29 }
 0x18e   : > { %1276 = vst.msk [vmem:[#allocation2 + $0x28] sm:$0xff] %vm1271_vm2, %v1255_v62  ;;  %v1207_v34 = vmax.f32 %v4158_v2, %v1170_v35  ;;  %v1172_v51 = vpop.f32.mrb[29].mxu1  ;;  %v1315_v56 = vld [vmem:[#allocation2 + $0x18] sm:$0xff]  ;;  %v1487_v32 = vadd.f32 %v1483_v30, %v1471_v24  ;;  %v1499_v0 = vmul.f32 %v4256_v63, %v4418_v4  ;;  %v1350_v46 = vadd.f32 %v1344_v40, %v1330_v61 }
 0x18f   : > { %1278 = vst.msk [vmem:[#allocation2 + $0x38] sm:$0xff] %vm1271_vm2, %v1257_v39  ;;  %v1208_v31 = vmax.f32 %v4161_v7, %v1172_v51  ;;  %v1174_v25 = vpop.f32.mrb[30].mxu1  ;;  %v1468_v62 = vmul.f32 %v4250_v57, %v1315_v56  ;;  %v1325_v26 = vmul.f32 %v4253_v60, %v1315_v56  ;;  %v1364_v44 = vmul.f32 %v4270_v6, %v4418_v4 }
 0x190   : > { %v1238_v2 = vadd.f32 %v4200_v37, %v1207_v34  ;;  %v1209_v24 = vmax.f32 %v4164_v10, %v1174_v25  ;;  %v1176_v30 = vpop.f32.mrb[31].mxu1  ;;  %v1503_v35 = vadd.f32 %v1499_v0, %v1487_v32  ;;  %v1945_v61 = vmul.f32 %v4273_v8, %v1315_v56 }
 0x191   : > { %v1239_v40 = vadd.f32 %v4203_v38, %v1208_v31  ;;  %v1210_v7 = vmax.f32 %v4167_v12, %v1176_v30  ;;  %v1472_v39 = vadd.f32 %v1468_v62, %v1456_v41  ;;  %v1331_v51 = vadd.f32 %v1325_v26, %v1309_v42 }
 0x192   : > { %v4444_v1 = vmax.f32 %v1238_v2, 0.0  ;;  %v1240_v21 = vadd.f32 %v4200_v37, %v1209_v24  ;;  %v1370_v55 = vadd.f32 %v1364_v44, %v1350_v46  ;;  %v1949_v59 = vadd.f32 %v1945_v61, %v1933_v28  ;;  %v4953_v61 = vld [vmem:[#allocation18_spill] sm:$0xff] }
 0x193   : > { %v1259_v27 = vmax.f32 %v1239_v40, 0.0  ;;  %v1241_v34 = vadd.f32 %v4203_v38, %v1210_v7  ;;  %v2238_v10 = vmul.f32 %v4276_v9, %v1299_v29  ;;  %v2250_v32 = vmul.f32 %v4285_v14, %v1315_v56 }
 0x194   : > { %4950 = vst [vmem:[#allocation42_spill] sm:$0xff] %v4444_v1  ;;  %v4450_v0 = vmax.f32 %v1240_v21, 0.0  ;;  %v1515_v12 = vmul.f32 %v4282_v13, %v4444_v1  ;;  %v1384_v41 = vmul.f32 %v4297_v22, %v4444_v1  ;;  %v4456_v42 = vadd.f32 %v1960_v54, %v1948_v18  ;;  %v4952_v54 = vld [vmem:[#allocation7_spill] sm:$0xff] }
 0x195   : > { %v1335_v31 = vld [vmem:[#allocation2 + $0x28] sm:$0xff]  ;;  %1280 = vst.msk [vmem:[#allocation2 + $0x48] sm:$0xff] %vm1271_vm2, %v1259_v27  ;;  %v1261_v44 = vmax.f32 %v1241_v34, 0.0  ;;  %v1180_v28 = vpop.f32.mrb[32].mxu1  ;;  %v4954_v34 = vld [vmem:[#allocation8_spill] sm:$0xff]  ;;  %v2254_v36 = vadd.f32 %v2250_v32, %v2238_v10 }
 0x196   : > { %4951 = vst [vmem:[#allocation43_spill] sm:$0xff] %v4456_v42  ;;  %v1484_v46 = vmul.f32 %v4267_v5, %v1335_v31  ;;  %v1345_v29 = vmul.f32 %v4279_v11, %v1335_v31  ;;  %v1961_v21 = vmul.f32 %v4300_v23, %v1335_v31  ;;  %v1211_v56 = vmax.f32 %v4169_v15, %v1180_v28  ;;  %v1182_v25 = vpop.f32.mrb[33].mxu1  ;;  %v4463_v62 = vld [vmem:[#allocation2 + $0x38] sm:$0xff]  ;;  %v4960_v32 = vld [vmem:[#allocation22_spill] sm:$0xff] }
 0x197   : > { %v1457_v26 = vmul.f32 %v4218_v45, %v4450_v0  ;;  %v4467_v18 = vadd.f32 %v1515_v12, %v1503_v35  ;;  %v1312_v27 = vmul.f32 %v4226_v43, %v4450_v0  ;;  %1282 = vst.msk [vmem:[#allocation2 + $0x58] sm:$0xff] %vm1271_vm2, %v1261_v44  ;;  %v1212_v2 = vmax.f32 %v4952_v54, %v1182_v25  ;;  %v1184_v24 = vpop.f32.mrb[34].mxu1  ;;  %v4955_v35 = vld [vmem:[#allocation19_spill] sm:$0xff]  ;;  %v4956_v44 = vld [vmem:[#allocation9_spill] sm:$0xff] }
 0x198   : > { %v1488_v30 = vadd.f32 %v1484_v46, %v1472_v39  ;;  %v1500_v15 = vmul.f32 %v4953_v61, %v4463_v62  ;;  %v1351_v40 = vadd.f32 %v1345_v29, %v1331_v51  ;;  %v1242_v7 = vadd.f32 %v4200_v37, %v1211_v56  ;;  %v1186_v45 = vpop.f32.mrb[35].mxu1  ;;  %v4957_v56 = vld [vmem:[#allocation21_spill] sm:$0xff] }
 0x199   : > { %v1213_v28 = vmax.f32 %v4954_v34, %v1184_v24  ;;  %v1365_v12 = vmul.f32 %v4955_v35, %v4463_v62  ;;  %v4479_v58 = vadd.f32 %v1384_v41, %v1370_v55  ;;  %v1243_v43 = vadd.f32 %v4203_v38, %v1212_v2  ;;  %v4958_v55 = vld [vmem:[#allocation24_spill] sm:$0xff] }
 0x19a   : > { %v1214_v25 = vmax.f32 %v4956_v44, %v1186_v45  ;;  %v1504_v54 = vadd.f32 %v1500_v15, %v1488_v30  ;;  %v1965_v39 = vadd.f32 %v1961_v21, %v1949_v59  ;;  %v4483_v46 = vmax.f32 %v1242_v7, 0.0  ;;  %v4959_v7 = vld [vmem:[#allocation20_spill] sm:$0xff] }
 0x19b   : > { %v1244_v51 = vadd.f32 %v4200_v37, %v1213_v28  ;;  %v1371_v29 = vadd.f32 %v1365_v12, %v1351_v40  ;;  %v1977_v24 = vmul.f32 %v4957_v56, %v4463_v62  ;;  %v1263_v34 = vmax.f32 %v1243_v43, 0.0  ;;  %v4961_v28 = vld [vmem:[#allocation23_spill] sm:$0xff]  ;;  %v4962_v12 = vld [vmem:[#allocation10_spill] sm:$0xff] }
 0x19c   : > { %v1245_v19 = vadd.f32 %v4203_v38, %v1214_v25  ;;  %v2266_v41 = vmul.f32 %v4958_v55, %v1335_v31  ;;  %v4492_v2 = vld [vmem:[#allocation2 + $0x48] sm:$0xff]  ;;  %v1469_v59 = vmul.f32 %v4223_v47, %v4483_v46  ;;  %v1328_v21 = vmul.f32 %v4229_v48, %v4483_v46 }
 0x19d   : > { %v4490_v1 = vmax.f32 %v1244_v51, 0.0  ;;  %v1981_v30 = vadd.f32 %v1977_v24, %v1965_v39  ;;  %1284 = vst.msk [vmem:[#allocation2 + $0x68] sm:$0xff] %vm1271_vm2, %v1263_v34  ;;  %v1190_v40 = vpop.f32.mrb[36].mxu1  ;;  %v1516_v10 = vmul.f32 %v4959_v7, %v4492_v2  ;;  %v1385_v31 = vmul.f32 %v4960_v32, %v4492_v2 }
 0x19e   : > { %v1265_v15 = vmax.f32 %v1245_v19, 0.0  ;;  %v1993_v45 = vmul.f32 %v4961_v28, %v4492_v2  ;;  %v1215_v43 = vmax.f32 %v4962_v12, %v1190_v40  ;;  %v1192_v47 = vpop.f32.mrb[37].mxu1  ;;  %v1311_v44 = vld [vmem:[#allocation2 + $0x58] sm:$0xff]  ;;  %v1473_v25 = vadd.f32 %v1469_v59, %v1457_v26  ;;  %v4963_v19 = vld [vmem:[#allocation13_spill] sm:$0xff]  ;;  %v4964_v12 = vld [vmem:[#allocation14_spill] sm:$0xff] }
 0x19f   : > { %v1485_v48 = vmul.f32 %v4241_v52, %v4490_v1  ;;  %v1332_v39 = vadd.f32 %v1328_v21, %v1312_v27  ;;  %v1216_v51 = vmax.f32 %v4963_v19, %v1192_v47  ;;  %v1194_v24 = vpop.f32.mrb[38].mxu1  ;;  %v1458_v34 = vmul.f32 %v4232_v49, %v1311_v44  ;;  %v4965_v21 = vld [vmem:[#allocation15_spill] sm:$0xff] }
 0x1a0   : > { %1286 = vst.msk [vmem:[#allocation2 + $0x78] sm:$0xff] %vm1271_vm2, %v1265_v15  ;;  %v4511_v42 = vadd.f32 %v1516_v10, %v1504_v54  ;;  %v1313_v28 = vmul.f32 %v1311_v44, %v4235_v50  ;;  %v1246_v40 = vadd.f32 %v4200_v37, %v1215_v43  ;;  %v1217_v32 = vmax.f32 %v4964_v12, %v1194_v24  ;;  %v1196_v26 = vpop.f32.mrb[39].mxu1 }
 0x1a1   : > { %v4516_v59 = vadd.f32 %v1385_v31, %v1371_v29  ;;  %v1489_v52 = vadd.f32 %v1485_v48, %v1473_v25  ;;  %v1247_v27 = vadd.f32 %v4203_v38, %v1216_v51  ;;  %v1218_v15 = vmax.f32 %v4965_v21, %v1196_v26 }
 0x1a2   : > { %v1348_v47 = vmul.f32 %v4244_v53, %v4490_v1  ;;  %v1935_v49 = vmul.f32 %v4259_v3, %v1311_v44  ;;  %v4523_v54 = vmax.f32 %v1246_v40, 0.0  ;;  %v1248_v50 = vadd.f32 %v4200_v37, %v1217_v32  ;;  %v4966_v37 = vld [vmem:[#allocation25_spill] sm:$0xff] }
 0x1a3   : > { %v4526_v10 = vadd.f32 %v1993_v45, %v1981_v30  ;;  %v2240_v43 = vmul.f32 %v4276_v9, %v1311_v44  ;;  %v1267_v29 = vmax.f32 %v1247_v27, 0.0  ;;  %v1249_v31 = vadd.f32 %v4203_v38, %v1218_v15 }
 0x1a4   : > { %v1352_v25 = vadd.f32 %v1348_v47, %v1332_v39  ;;  %v2270_v48 = vadd.f32 %v2266_v41, %v2254_v36  ;;  %v4530_v19 = vmax.f32 %v1248_v50, 0.0  ;;  %v1327_v51 = vld [vmem:[#allocation2 + $0x68] sm:$0xff]  ;;  %v1501_v53 = vmul.f32 %v4256_v63, %v4523_v54 }
 0x1a5   : > { %v1368_v3 = vmul.f32 %v4270_v6, %v4523_v54  ;;  %v2282_v30 = vmul.f32 %v4966_v37, %v4463_v62  ;;  %1288 = vst.msk [vmem:[#allocation2 + $0x88] sm:$0xff] %vm1271_vm2, %v1267_v29  ;;  %v1269_v9 = vmax.f32 %v1249_v31, 0.0  ;;  %v1470_v32 = vmul.f32 %v4250_v57, %v1327_v51 }
 0x1a6   : > { %v1329_v38 = vmul.f32 %v1327_v51, %v4253_v60  ;;  %v1947_v36 = vmul.f32 %v4273_v8, %v1327_v51  ;;  %v1505_v45 = vadd.f32 %v1501_v53, %v1489_v52  ;;  %v1517_v63 = vmul.f32 %v4282_v13, %v4530_v19 }
 0x1a7   : > { %v1347_v41 = vld [vmem:[#allocation2 + $0x78] sm:$0xff]  ;;  %v1372_v44 = vadd.f32 %v1368_v3, %v1352_v25  ;;  %v1388_v6 = vmul.f32 %v4297_v22, %v4530_v19  ;;  %1290 = vst.msk [vmem:[#allocation2 + $0x98] sm:$0xff] %vm1271_vm2, %v1269_v9  ;;  %v1474_v62 = vadd.f32 %v1470_v32, %v1458_v34  ;;  %v2252_v13 = vmul.f32 %v4285_v14, %v1327_v51  ;;  %v4970_v9 = vld [vmem:[#allocation22_spill] sm:$0xff] }
 0x1a8   : > { %v1486_v39 = vmul.f32 %v4267_v5, %v1347_v41  ;;  %v1333_v24 = vadd.f32 %v1329_v38, %v1313_v28  ;;  %v1349_v57 = vmul.f32 %v1347_v41, %v4279_v11  ;;  %v1521_v60 = vadd.f32 %v1517_v63, %v1505_v45  ;;  %v4967_v14 = vld [vmem:[#allocation28_spill] sm:$0xff] }
 0x1a9   : > { %v1392_v40 = vadd.f32 %v1388_v6, %v1372_v44  ;;  %v1951_v8 = vadd.f32 %v1947_v36, %v1935_v49  ;;  %v1963_v12 = vmul.f32 %v4300_v23, %v1347_v41  ;;  %v2268_v27 = vmul.f32 %v4958_v55, %v1347_v41  ;;  %v4968_v55 = vld [vmem:[#allocation29_spill] sm:$0xff]  ;;  %v4971_v41 = vld [vmem:[#allocation23_spill] sm:$0xff] }
 0x1aa   : > { %v1490_v26 = vadd.f32 %v1486_v39, %v1474_v62  ;;  %v1353_v52 = vadd.f32 %v1349_v57, %v1333_v24  ;;  %v1523_v22 = vmax.f32 %v4467_v18, %v1521_v60  ;;  %v2286_v5 = vadd.f32 %v2282_v30, %v2270_v48  ;;  %v4969_v18 = vld [vmem:[#allocation26_spill] sm:$0xff]  ;;  %v4972_v39 = vld [vmem:[#allocation43_spill] sm:$0xff] }
 0x1ab   : > { %v1394_v34 = vmax.f32 %v4479_v58, %v1392_v40  ;;  %v1967_v21 = vadd.f32 %v1963_v12, %v1951_v8  ;;  %v2256_v28 = vadd.f32 %v2252_v13, %v2240_v43  ;;  %v2298_v11 = vmul.f32 %v4358_v17, %v4492_v2  ;;  %v4973_v40 = vld [vmem:[#allocation42_spill] sm:$0xff]  ;;  %v4974_v8 = vld [vmem:[#allocation35_spill] sm:$0xff] }
 0x1ac   : > { %v1934_v15 = vmul.f32 %v4288_v16, %v4450_v0  ;;  %v1946_v23 = vmul.f32 %v4311_v33, %v4483_v46  ;;  %v1367_v47 = vld [vmem:[#allocation2 + $0x88] sm:$0xff]  ;;  %v1543_v49 = vadd.f32 %v4967_v14, %v1523_v22  ;;  %v1962_v58 = vmul.f32 %v4329_v20, %v4490_v1  ;;  %v4975_v13 = vld [vmem:[#allocation27_spill] sm:$0xff]  ;;  %v4976_v22 = vld [vmem:[#allocation32_spill] sm:$0xff] }
 0x1ad   : > { %v1415_v50 = vadd.f32 %v4968_v55, %v1394_v34  ;;  %v1976_v43 = vmul.f32 %v4969_v18, %v4418_v4  ;;  %v1502_v29 = vmul.f32 %v4953_v61, %v1367_v47  ;;  %v1369_v2 = vmul.f32 %v1367_v47, %v4955_v35  ;;  %v4981_v14 = vld [vmem:[#allocation31_spill] sm:$0xff] }
 0x1ae   : > { %v1979_v16 = vmul.f32 %v4957_v56, %v1367_v47  ;;  %v2272_v31 = vadd.f32 %v2268_v27, %v2256_v28  ;;  %v1387_v25 = vld [vmem:[#allocation2 + $0x98] sm:$0xff]  ;;  %v1545_v33 = vmax.f32 %v1543_v49, 0.0  ;;  %v2284_v51 = vmul.f32 %v4966_v37, %v1367_v47 }
 0x1af   : > { %v1417_v48 = vmax.f32 %v1415_v50, 0.0  ;;  %v2302_v53 = vadd.f32 %v2298_v11, %v2286_v5  ;;  %v1506_v3 = vadd.f32 %v1502_v29, %v1490_v26  ;;  %v1518_v30 = vmul.f32 %v4959_v7, %v1387_v25 }
 0x1b0   : > { %v1373_v20 = vadd.f32 %v1369_v2, %v1353_v52  ;;  %v1389_v32 = vmul.f32 %v1387_v25, %v4970_v9  ;;  %v1547_v38 = vpack.c.bf16 %v1545_v33, %v1545_v33  ;;  %v1983_v61 = vadd.f32 %v1979_v16, %v1967_v21  ;;  %v4977_v21 = vld [vmem:[#allocation33_spill] sm:$0xff]  ;;  %v4983_v16 = vld [vmem:[#allocation36_spill] sm:$0xff] }
 0x1b1   : > { %v1419_v36 = vpack.c.bf16 %v1417_v48, %v1417_v48  ;;  %v1995_v35 = vmul.f32 %v4971_v41, %v1387_v25  ;;  %v1522_v45 = vadd.f32 %v1518_v30, %v1506_v3  ;;  %v2288_v63 = vadd.f32 %v2284_v51, %v2272_v31  ;;  %v3436_v48 = vld [vmem:[%s4885_s5 + $0x270] ss:$8 sps:$4 sm:$0xff]   ;;  %v3444_v41 = vld [vmem:[%s4885_s5 + $0x284] ss:$8 sps:$4 sm:$0xff]  }
 0x1b2   : > { %v1393_v56 = vadd.f32 %v1389_v32, %v1373_v20  ;;  %v2300_v44 = vmul.f32 %v4358_v17, %v1387_v25  ;;  %v1950_v62 = vadd.f32 %v1946_v23, %v1934_v15  ;;  %v1978_v37 = vmul.f32 %v4969_v18, %v4523_v54  ;;  %v4979_v23 = vld [vmem:[#allocation30_spill] sm:$0xff] }
 0x1b3   : > { %v1999_v6 = vadd.f32 %v1995_v35, %v1983_v61  ;;  %v1980_v7 = vadd.f32 %v1976_v43, %v4972_v39  ;;  %v1524_v24 = vmax.f32 %v4511_v42, %v1522_v45  ;;  %v1992_v12 = vmul.f32 %v4974_v8, %v4973_v40  ;;  %v3441_v61 = vld [vmem:[%s4885_s5 + $0x1b4] ss:$8 sps:$4 sm:$0xff]  }
 0x1b4   : > { %v1395_v57 = vmax.f32 %v4516_v59, %v1393_v56  ;;  %v2304_v60 = vadd.f32 %v2300_v44, %v2288_v63  ;;  %v1966_v52 = vadd.f32 %v1962_v58, %v1950_v62  ;;  %v1994_v17 = vmul.f32 %v4974_v8, %v4530_v19  ;;  %v4978_v59 = vld [vmem:[#allocation34_spill] sm:$0xff]  ;;  %v4982_v58 = vld [vmem:[#allocation40_spill] sm:$0xff]  ;;  %v4985_v35 = vld [vmem:[#allocation39_spill] sm:$0xff] }
 0x1b5   : > { %v2001_v26 = vmax.f32 %v4526_v10, %v1999_v6  ;;  %v2239_v27 = vmul.f32 %v4975_v13, %v4450_v0  ;;  %v1544_v34 = vadd.f32 %v4976_v22, %v1524_v24  ;;  %v1996_v28 = vadd.f32 %v1992_v12, %v1980_v7  ;;  %v4980_v10 = vld [vmem:[#allocation37_spill] sm:$0xff]  ;;  %v3439_v6 = vld [vmem:[%s4885_s5 + $0x1b0] ss:$8 sps:$4 sm:$0xff]   ;;  %v3465_v13 = vld [vmem:[%s4885_s5 + $0x1f4] ss:$8 sps:$4 sm:$0xff]  }
 0x1b6   : > { %v1416_v5 = vadd.f32 %v4977_v21, %v1395_v57  ;;  %v2306_v42 = vmax.f32 %v2302_v53, %v2304_v60  ;;  %v1982_v15 = vadd.f32 %v1978_v37, %v1966_v52  ;;  %v2251_v47 = vmul.f32 %v4979_v23, %v4483_v46  ;;  %v3433_v46 = vld [vmem:[%s4885_s5 + $0x1a0] ss:$8 sps:$4 sm:$0xff]   ;;  %v3448_v24 = vld [vmem:[%s4885_s5 + $0x290] ss:$8 sps:$4 sm:$0xff]   ;;  %v3453_v57 = vld [vmem:[%s4885_s5 + $0x1d4] ss:$8 sps:$4 sm:$0xff]  }
 0x1b7   : > { %v2021_v11 = vadd.f32 %v4978_v59, %v2001_v26  ;;  %v2265_v49 = vmul.f32 %v4981_v14, %v4980_v10  ;;  %v1546_v55 = vmax.f32 %v1544_v34, 0.0  ;;  %v2267_v0 = vmul.f32 %v4981_v14, %v4490_v1  ;;  %v4984_v53 = vld [vmem:[#allocation38_spill] sm:$0xff]  ;;  %v3462_v26 = vld [vmem:[%s4885_s5 + $0x2b4] ss:$8 sps:$4 sm:$0xff]   ;;  %v3463_v22 = vld [vmem:[%s4885_s5 + $0x1f0] ss:$8 sps:$4 sm:$0xff]  }
 0x1b8   : > { %v1418_v50 = vmax.f32 %v1416_v5, 0.0  ;;  %v2326_v18 = vadd.f32 %v4982_v58, %v2306_v42  ;;  %v1998_v29 = vadd.f32 %v1994_v17, %v1982_v15  ;;  %v2255_v2 = vadd.f32 %v2251_v47, %v2239_v27  ;;  %v3442_v62 = vld [vmem:[%s4885_s5 + $0x280] ss:$8 sps:$4 sm:$0xff]   ;;  %v3456_v60 = vld [vmem:[%s4885_s5 + $0x2a4] ss:$8 sps:$4 sm:$0xff]  }
 0x1b9   : > { %v2023_v43 = vmax.f32 %v2021_v11, 0.0  ;;  %v2269_v31 = vadd.f32 %v2265_v49, %v4983_v16  ;;  %v1548_v25 = vpack.c.bf16 %v1546_v55, %v1546_v55  ;;  %v2281_v3 = vmul.f32 %v4984_v53, %v4418_v4  ;;  %v3445_v7 = vld [vmem:[%s4885_s5 + $0x1c0] ss:$8 sps:$4 sm:$0xff]   ;;  %v3459_v12 = vld [vmem:[%s4885_s5 + $0x1e4] ss:$8 sps:$4 sm:$0xff]  }
 0x1ba   : > { %v1420_v33 = vpack.c.bf16 %v1418_v50, %v1418_v50  ;;  %v2328_v51 = vmax.f32 %v2326_v18, 0.0  ;;  %v2000_v30 = vmax.f32 %v1996_v28, %v1998_v29  ;;  %v2271_v20 = vadd.f32 %v2267_v0, %v2255_v2  ;;  %v3454_v8 = vld [vmem:[%s4885_s5 + $0x2a0] ss:$8 sps:$4 sm:$0xff]   ;;  %v3460_v17 = vld [vmem:[%s4885_s5 + $0x2b0] ss:$8 sps:$4 sm:$0xff]  }
 0x1bb   : > { %v2025_v1 = vpack.c.bf16 %v2023_v43, %v2023_v43  ;;  %v2283_v9 = vmul.f32 %v4984_v53, %v4523_v54  ;;  %3005 = vmatprep.mubr.msk.bf16.mxu0 %vm1271_vm2, %v1548_v25  ;;  %v2285_v4 = vadd.f32 %v2281_v3, %v2269_v31  ;;  %v2297_v45 = vmul.f32 %v4985_v35, %v4973_v40  ;;  %v4986_v54 = vld [vmem:[#allocation41_spill] sm:$0xff]  ;;  %v3451_v40 = vld [vmem:[%s4885_s5 + $0x1d0] ss:$8 sps:$4 sm:$0xff]   ;;  %v3474_v5 = vld [vmem:[%s4885_s5 + $0x2d4] ss:$8 sps:$4 sm:$0xff]  }
 0x1bc   : > { %3032 = vmatprep.mubr.msk.bf16.mxu1 %vm1271_vm2, %v1420_v33  ;;  %v2330_v32 = vpack.c.bf16 %v2328_v51, %v2328_v51  ;;  %1742 = vmatmul.mubr.bf16.vlgmr.msra.gmra.mrb[20].mxu0 %v1547_v38  ;;  %v4618_v56 = vadd.f32 %v4986_v54, %v2000_v30  ;;  %v2299_v44 = vmul.f32 %v4985_v35, %v4530_v19  ;;  %v3447_v19 = vld [vmem:[%s4885_s5 + $0x1c4] ss:$8 sps:$4 sm:$0xff]   ;;  %v3450_v38 = vld [vmem:[%s4885_s5 + $0x294] ss:$8 sps:$4 sm:$0xff]   ;;  %v3457_v52 = vld [vmem:[%s4885_s5 + $0x1e0] ss:$8 sps:$4 sm:$0xff]  }
 0x1bd   : > { %1916 = vmatmul.mubr.bf16.vlgmr.msra.gmra.mrb[40].mxu1 %v1419_v36  ;;  %v2287_v63 = vadd.f32 %v2283_v9, %v2271_v20  ;;  %2187 = vmatpush1.bf16.msra.mxu0 %v3433_v46  ;;  %v4628_v37 = vadd.f32 %v2297_v45, %v2285_v4  ;;  %v3468_v27 = vld [vmem:[%s4885_s5 + $0x2c4] ss:$8 sps:$4 sm:$0xff]   ;;  %v3466_v34 = vld [vmem:[%s4885_s5 + $0x2c0] ss:$8 sps:$4 sm:$0xff]   ;;  %v3472_v28 = vld [vmem:[%s4885_s5 + $0x2d0] ss:$8 sps:$4 sm:$0xff]  }
 0x1be   : > { %2492 = vmatpush1.bf16.msra.mxu1 %v3436_v48  ;;  %3085 = vmatprep.mubr.msk.bf16.mxu0 %vm1271_vm2, %v2025_v1  ;;  %v3471_v21 = vld [vmem:[%s4885_s5 + $0x204] ss:$8 sps:$4 sm:$0xff]   ;;  %v3469_v42 = vld [vmem:[%s4885_s5 + $0x200] ss:$8 sps:$4 sm:$0xff]   ;;  %v3477_v59 = vld [vmem:[%s4885_s5 + $0x214] ss:$8 sps:$4 sm:$0xff]  }
 0x1bf   : > { %3138 = vmatprep.mubr.msk.bf16.mxu1 %vm1271_vm2, %v2330_v32  ;;  %v4638_v36 = vadd.f32 %v2299_v44, %v2287_v63  ;;  %2188 = vmatprep.subr.bf16.mxu0 %v3441_v61  ;;  %v3480_v11 = vld [vmem:[%s4885_s5 + $0x2e4] ss:$8 sps:$4 sm:$0xff]   ;;  %v3475_v15 = vld [vmem:[%s4885_s5 + $0x210] ss:$8 sps:$4 sm:$0xff]   ;;  %v3478_v23 = vld [vmem:[%s4885_s5 + $0x2e0] ss:$8 sps:$4 sm:$0xff]  }
 0x1c0   : > { %2493 = vmatprep.subr.bf16.mxu1 %v3444_v41  ;;  %v3483_v47 = vld [vmem:[%s4885_s5 + $0x224] ss:$8 sps:$4 sm:$0xff]   ;;  %v3486_v10 = vld [vmem:[%s4885_s5 + $0x2f4] ss:$8 sps:$4 sm:$0xff]   ;;  %v3481_v14 = vld [vmem:[%s4885_s5 + $0x220] ss:$8 sps:$4 sm:$0xff]  }
 0x1c1   : > { %v2305_v39 = vmax.f32 %v4628_v37, %v4638_v36  ;;  %2189 = vmatpush1.bf16.msra.mxu0 %v3439_v6  ;;  %v3484_v49 = vld [vmem:[%s4885_s5 + $0x2f0] ss:$8 sps:$4 sm:$0xff]   ;;  %v3489_v55 = vld [vmem:[%s4885_s5 + $0x234] ss:$8 sps:$4 sm:$0xff]   ;;  %v3492_v50 = vld [vmem:[%s4885_s5 + $0x304] ss:$8 sps:$4 sm:$0xff]  }
 0x1c2   : > { %2494 = vmatpush1.bf16.msra.mxu1 %v3442_v62  ;;  %2190 = vmatprep.subr.bf16.mxu0 %v3447_v19  ;;  %v3487_v58 = vld [vmem:[%s4885_s5 + $0x230] ss:$8 sps:$4 sm:$0xff]   ;;  %v3490_v18 = vld [vmem:[%s4885_s5 + $0x300] ss:$8 sps:$4 sm:$0xff]   ;;  %v3495_v0 = vld [vmem:[%s4885_s5 + $0x244] ss:$8 sps:$4 sm:$0xff]  }
 0x1c3   : > { %2495 = vmatprep.subr.bf16.mxu1 %v3450_v38  ;;  %v3498_v43 = vld [vmem:[%s4885_s5 + $0x314] ss:$8 sps:$4 sm:$0xff]   ;;  %v4988_v2 = vld [vmem:[#allocation17_spill] sm:$0xff]  ;;  %v3496_v25 = vld [vmem:[%s4885_s5 + $0x310] ss:$8 sps:$4 sm:$0xff]   ;;  %v2022_v32 = vmax.f32 %v4618_v56, 0.0 }
 0x1c4   : > { %v4987_v29 = vld [vmem:[#allocation16_spill] sm:$0xff]  ;;  %v3493_v31 = vld [vmem:[%s4885_s5 + $0x240] ss:$8 sps:$4 sm:$0xff]   ;;  %v3504_v46 = vld [vmem:[%s4885_s5 + $0x324] ss:$8 sps:$4 sm:$0xff]  }
 0x1c5   : > { %2191 = vmatpush1.bf16.msra.mxu0 %v3445_v7  ;;  %v2310_v16 = vrot.slane %v4988_v2, %v4987_v29  ;;  %v3501_v33 = vld [vmem:[%s4885_s5 + $0x254] ss:$8 sps:$4 sm:$0xff]   ;;  %v3499_v51 = vld [vmem:[%s4885_s5 + $0x250] ss:$8 sps:$4 sm:$0xff]   ;;  %v3502_v53 = vld [vmem:[%s4885_s5 + $0x320] ss:$8 sps:$4 sm:$0xff]   ;;  %v2024_v41 = vpack.c.bf16 %v2022_v32, %v2022_v32 }
 0x1c6   : > { %2496 = vmatpush1.bf16.msra.mxu1 %v3448_v24  ;;  %2192 = vmatprep.subr.bf16.mxu0 %v3453_v57  ;;  %v3507_v3 = vld [vmem:[%s4885_s5 + $0x264] ss:$8 sps:$4 sm:$0xff]   ;;  %v3510_v1 = vld [vmem:[%s4885_s5 + $0x334] ss:$8 sps:$4 sm:$0xff]   ;;  %v3505_v20 = vld [vmem:[%s4885_s5 + $0x260] ss:$8 sps:$4 sm:$0xff]  }
 0x1c7   : > { %2497 = vmatprep.subr.bf16.mxu1 %v3456_v60  ;;  %v2320_v48 = vrot.slane %v2310_v16, %v4987_v29  ;;  %v3508_v9 = vld [vmem:[%s4885_s5 + $0x330] ss:$8 sps:$4 sm:$0xff]   ;;  %v3511_v35 = vld [vmem:[%s4887_s7 + $0x40] sm:$0xff]   ;;  %v3513_v54 = vld [vmem:[%s4887_s7 + $0x48] sm:$0xff]  }
 0x1c8   : > { %v3512_v45 = vld [vmem:[%s4887_s7] sm:$0xff]   ;;  %v3514_v56 = vld [vmem:[%s4887_s7 + $0x8] sm:$0xff]   ;;  %v3515_v63 = vld [vmem:[%s4887_s7 + $0x50] sm:$0xff]  }
 0x1c9   : > { %2193 = vmatpush1.bf16.msra.mxu0 %v3451_v40  ;;  %v2325_v30 = vadd.f32 %v2320_v48, %v2305_v39  ;;  %v3516_v44 = vld [vmem:[%s4887_s7 + $0x10] sm:$0xff]   ;;  %v3517_v6 = vld [vmem:[%s4887_s7 + $0x58] sm:$0xff]   ;;  %v3519_v37 = vld [vmem:[%s4887_s7 + $0x60] sm:$0xff]  }
 0x1ca   : > { %2498 = vmatpush1.bf16.msra.mxu1 %v3454_v8  ;;  %2194 = vmatprep.subr.bf16.mxu0 %v3459_v12  ;;  %v3518_v62 = vld [vmem:[%s4887_s7 + $0x18] sm:$0xff]   ;;  %v3520_v19 = vld [vmem:[%s4887_s7 + $0x20] sm:$0xff]   ;;  %v3521_v38 = vld [vmem:[%s4887_s7 + $0x68] sm:$0xff]  }
 0x1cb   : > { %2499 = vmatprep.subr.bf16.mxu1 %v3462_v26  ;;  %v2327_v61 = vmax.f32 %v2325_v30, 0.0  ;;  %v3522_v36 = vld [vmem:[%s4887_s7 + $0x28] sm:$0xff]   ;;  %v3523_v39 = vld [vmem:[%s4887_s7 + $0x70] sm:$0xff]   ;;  %v3525_v24 = vld [vmem:[%s4887_s7 + $0x78] sm:$0xff]  }
 0x1cc   : > { %v3524_v7 = vld [vmem:[%s4887_s7 + $0x30] sm:$0xff]   ;;  %v3526_v57 = vld [vmem:[%s4887_s7 + $0x38] sm:$0xff]  }
 0x1cd   : > { %2195 = vmatpush1.bf16.msra.mxu0 %v3457_v52  ;;  %v2329_v4 = vpack.c.bf16 %v2327_v61, %v2327_v61 }
 0x1ce   : > { %2500 = vmatpush1.bf16.msra.mxu1 %v3460_v17  ;;  %2196 = vmatprep.subr.bf16.mxu0 %v3465_v13 }
 0x1cf   : > { %2501 = vmatprep.subr.bf16.mxu1 %v3468_v27 }
 0x1d1   : > { %2197 = vmatpush1.bf16.msra.mxu0 %v3463_v22 }
 0x1d2   : > { %2502 = vmatpush1.bf16.msra.mxu1 %v3466_v34  ;;  %2198 = vmatprep.subr.bf16.mxu0 %v3471_v21  ;;  %v2534_v34 = vld [vmem:[%s4886_s6] sm:$0x3] }
 0x1d3   : > { %2503 = vmatprep.subr.bf16.mxu1 %v3474_v5 }
 0x1d5   : > { %2199 = vmatpush1.bf16.msra.mxu0 %v3469_v42 }
 0x1d6   : > { %2504 = vmatpush1.bf16.msra.mxu1 %v3472_v28  ;;  %2200 = vmatprep.subr.bf16.mxu0 %v3477_v59  ;;  %v4989_v28 = vld [vmem:[#allocation11_spill] sm:$0xff] }
 0x1d7   : > { %2505 = vmatprep.subr.bf16.mxu1 %v3480_v11  ;;  %v2539_v59 = vrot.slane %v2534_v34, %v4989_v28 }
 0x1d9   : > { %2201 = vmatpush1.bf16.msra.mxu0 %v3475_v15 }
 0x1da   : > { %2506 = vmatpush1.bf16.msra.mxu1 %v3478_v23  ;;  %2202 = vmatprep.subr.bf16.mxu0 %v3483_v47  ;;  %v4990_v47 = vld [vmem:[#allocation12_spill] sm:$0xff] }
 0x1db   : > { %2507 = vmatprep.subr.bf16.mxu1 %v3486_v10  ;;  %v2543_v10 = vrot.slane %v2534_v34, %v4990_v47 }
 0x1dd   : > { %2203 = vmatpush1.bf16.msra.mxu0 %v3481_v14 }
 0x1de   : > { %2508 = vmatpush1.bf16.msra.mxu1 %v3484_v49  ;;  %2204 = vmatprep.subr.bf16.mxu0 %v3489_v55 }
 0x1df   : > { %2509 = vmatprep.subr.bf16.mxu1 %v3492_v50 }
 0x1e1   : > { %2205 = vmatpush1.bf16.msra.mxu0 %v3487_v58 }
 0x1e2   : > { %2510 = vmatpush1.bf16.msra.mxu1 %v3490_v18  ;;  %2206 = vmatprep.subr.bf16.mxu0 %v3495_v0 }
 0x1e3   : > { %2511 = vmatprep.subr.bf16.mxu1 %v3498_v43 }
 0x1e5   : > { %2207 = vmatpush1.bf16.msra.mxu0 %v3493_v31 }
 0x1e6   : > { %2512 = vmatpush1.bf16.msra.mxu1 %v3496_v25  ;;  %2208 = vmatprep.subr.bf16.mxu0 %v3501_v33  ;;  %v3139_v33 = vld [vmem:[%s4888_s8] ss:$0 sm:$0xff] }
 0x1e7   : > { %2513 = vmatprep.subr.bf16.mxu1 %v3504_v46 }
 0x1e9   : > { %2209 = vmatpush1.bf16.msra.mxu0 %v3499_v51 }
 0x1ea   : > { %2514 = vmatpush1.bf16.msra.mxu1 %v3502_v53  ;;  %2210 = vmatprep.subr.bf16.mxu0 %v3507_v3 }
 0x1eb   : > { %2515 = vmatprep.subr.bf16.mxu1 %v3510_v1 }
 0x1ed   : > { %2211 = vmatpush1.bf16.msra.mxu0 %v3505_v20 }
 0x1ee   : > { %2516 = vmatpush1.bf16.msra.mxu1 %v3508_v9  ;;  %3160 = vmatprep.subr.bf16.mxu0 %v3511_v35 }
 0x1f0   : > { %2219 = vmatmul.mubr.bf16.vlgmr.msra.gmra.mrb[24].mxu0 %v2024_v41 }
 0x1f1   : > { %2524 = vmatmul.mubr.bf16.vlgmr.msra.gmra.mrb[44].mxu1 %v2329_v4  ;;  %3161 = vmatpush3.bf16.msra.mxu0 %v3512_v45 }
 0x1f2   : > { %3162 = vmatprep.subr.bf16.mxu0 %v3513_v54 }
 0x1f5   : > { %3163 = vmatpush3.bf16.msra.mxu0 %v3514_v56 }
 0x1f6   : > { %3164 = vmatprep.subr.bf16.mxu0 %v3515_v63 }
 0x1f9   : > { %3165 = vmatpush3.bf16.msra.mxu0 %v3516_v44 }
 0x1fa   : > { %3166 = vmatprep.subr.bf16.mxu0 %v3517_v6 }
 0x1fd   : > { %3167 = vmatpush3.bf16.msra.mxu0 %v3518_v62 }
 0x1fe   : > { %3168 = vmatprep.subr.bf16.mxu0 %v3519_v37 }
 0x201   : > { %3169 = vmatpush3.bf16.msra.mxu0 %v3520_v19 }
 0x202   : > { %3170 = vmatprep.subr.bf16.mxu0 %v3521_v38 }
 0x205   : > { %3171 = vmatpush3.bf16.msra.mxu0 %v3522_v36 }
 0x206   : > { %3172 = vmatprep.subr.bf16.mxu0 %v3523_v39 }
 0x209   : > { %3173 = vmatpush3.bf16.msra.mxu0 %v3524_v7 }
 0x20a   : > { %3174 = vmatprep.subr.bf16.mxu0 %v3525_v24 }
 0x20d   : > { %3175 = vmatpush3.bf16.msra.mxu0 %v3526_v57 }
 0x28f   : > { %v1743_v60 = vpop.f32.mrb[20].mxu0 }
 0x290   : > { %v1917_v40 = vpop.f32.mrb[40].mxu1  ;;  %v1745_v12 = vpop.f32.mrb[21].mxu0 }
 0x291   : > { %v1918_v8 = vadd.f32 %v1917_v40, %v1743_v60  ;;  %v1919_v26 = vpop.f32.mrb[41].mxu1  ;;  %v1747_v17 = vpop.f32.mrb[22].mxu0 }
 0x292   : > { %v1920_v52 = vadd.f32 %v1919_v26, %v1745_v12  ;;  %v1921_v13 = vpop.f32.mrb[42].mxu1  ;;  %v1748_v27 = vpop.f32.mrb[23].mxu0 }
 0x293   : > { %v1922_v22 = vpop.f32.mrb[43].mxu1 }
 0x2c3   : > { %v2220_v21 = vpop.f32.mrb[24].mxu0 }
 0x2c4   : > { %v2525_v5 = vpop.f32.mrb[44].mxu1  ;;  %v2227_v42 = vadd.f32 %v2220_v21, %v1918_v8  ;;  %v2222_v11 = vpop.f32.mrb[25].mxu0 }
 0x2c5   : > { %v2527_v15 = vpop.f32.mrb[45].mxu1  ;;  %v2228_v23 = vadd.f32 %v2222_v11, %v1920_v52  ;;  %v2224_v14 = vpop.f32.mrb[26].mxu0 }
 0x2c6   : > { %v2529_v49 = vpop.f32.mrb[46].mxu1  ;;  %v2532_v55 = vadd.f32 %v2525_v5, %v2227_v42  ;;  %v2225_v50 = vpop.f32.mrb[27].mxu0 }
 0x2c7   : > { %v2530_v58 = vpop.f32.mrb[47].mxu1  ;;  %v2533_v18 = vadd.f32 %v2527_v15, %v2228_v23 }
 0x2c8   : > { %v2546_v0 = vadd.f32 %v2539_v59, %v2532_v55 }
 0x2c9   : > { %v2547_v43 = vadd.f32 %v2543_v10, %v2533_v18 }
 0x2ca   : > { %v2548_v29 = vmax.f32 %v2546_v0, 0.0 }
 0x2cb   : > { %v2549_v2 = vmax.f32 %v2547_v43, 0.0 }
 0x2cc   : > { %v2550_v31 = vpack.c.bf16 %v2548_v29, %v2548_v29 }
 0x2cd   : > { %v2551_v16 = vpack.c.bf16 %v2549_v2, %v2549_v2 }
 0x2cf   : > { %2719 = vmatprep.mubr.bf16.mxu0 %v2551_v16 }
 0x2d0   : > { %2720 = vmatmul.mubr.bf16.vlgmr.msra.gmra.mrb[28].mxu0 %v2550_v31 }
 0x3a3   : > { %v3176_v25 = vpop.f32.mrb[28].mxu0 }
 0x3a4   : > { %v3177_v46 = vpop.f32.mrb[29].mxu0 }
 0x3a5   : > { %v3178_v48 = vadd.f32 %v3177_v46, %v3176_v25  ;;  %v3179_v51 = vpop.f32.mrb[30].mxu0 }
 0x3a6   : > { %v3180_v53 = vpop.f32.mrb[31].mxu0 }
 0x3a7   : > { %v2722_v3 = vadd.f32 %v3178_v48, %v3139_v33 }
 0x3a9   : > { %2727 = vst [vmem:[%s437_s21] sm:$0xff] %v2722_v3 }
 0x3aa   : > { %3540 = shalt.err (!%p3537_p5)
}
 0x3ab   : > { %s3541_s22 = scalar_lea.hbm %s4837_s26, 128  ;;  %s3545_s21 = scalar_lea.hbm %s4889_s9, 512 }
 0x3ac   : > { %p3542_p7 = scmp.ne.s32.totalorder %s4837_s26, %s3541_s22  ;;  %p3546_p11 = scmp.lt.u32.totalorder %s4837_s26, %s4889_s9 }
 0x3ad   : > { %p3547_p12 = scmp.lt.u32.totalorder %s3545_s21, %s3541_s22  ;;  %p3549_p0 = scmp.lt.u32.totalorder %s3541_s22, %s4837_s26 }
 0x3ae   : > { %p3543_p9 = pnand %p3542_p7, %p3681_p6 }
 0x3af   : > { %p3548_p13 = por %p3547_p12, %p3546_p11 }
 0x3b0   : > { %p3544_p10 = pneg %p3543_p9 }
 0x3b1   : > { %p3550_p1 = por %p3549_p0, %p3548_p13 }
 0x3b3   : > { %p3551_p2 = pnand %p3550_p1, %p3544_p10 }
 0x3b5   : > { %3554 = shalt.err (!%p3551_p2)
}
 0x3b6   : > { %3225 = dma.vmem_to_hbm [thread:$0]  (%p3681_p6), %s4839_s23, 128, %s4837_s26, %s2729_s27  }
 0x3b7 PF: > { %p3231_p3 = scmp.ge.s32.totalorder %s3589_s12, 2  ;;  %s2754_s28 = sand.u32 1, %s3577_s30  }
 0x3b8   : > { %s2755_s13 = scalar_lea.sflag [#allocation5], %s2754_s28 }
 0x3b9   : > { %p3228_p4 = pnand %p3231_p3, %p3685_p8 }
 0x3bb   : > { %3572 = dma.done.wait (!%p3228_p4), %s2755_s13, 128  }
 0x3bc   : > { %3574 = vsyncadd (!%p3228_p4), %s2755_s13, 4294967168  ;;  %p19_p5 = scmp.ge.s32.totalorder %s3666_s15, 6   ;;  %s4991_s30 = smov %s3581_s10 }
 0x3bd   : > { %s4992_s10 = smov %s3585_s11  ;;  %s4993_s11 = smov %s3679_s18 }
 0x3be   : > { %s4994_s12 = smov %s3666_s15  ;;  %21 = sbr.rel (!%p19_p5) target bundleno = 3 (0x3), region = 132 }
 0x3c5   :  { %2760 = vsyncpa [#allocation5], 1 }
 0x3c6   :  { %2762 = vsyncpa [#allocation5 + $0x1], 1 }

</bundles_post_ra>
